<compile_context>
chip_gen: v7x
topology: tpu7x:2x2x1
jax: 0.10.0
libtpu: 0.0.40
codegen_flags: <defaults>
</compile_context>

<pallas_src>
import jax
import jax.numpy as jnp
import numpy as np
from jax import lax
from jax.experimental import pallas as pl
from jax.experimental.pallas import tpu as pltpu

K = 3            # ConvTranspose2d kernel size
BN_EPS = 1e-5
COUT_PAD = 64    # lane-dense padding of the final deconv's 8 output channels


# ----------------------------- Pallas kernel --------------------------------

def _make_deconv_kernel(apply_affine, has_skip):
    """Sub-pixel ConvTranspose(3x3,s2,p1,op1) + bias + ReLU, fused BN stats.

    Optional fused prologue: per-channel affine (previous stage's BatchNorm)
    applied to the x-part input in f32.  Optional skip contraction replaces
    the channel concat.  All MXU operands are bf16; accumulation is f32.
    """

    def views(main_ref, halo_ref, is_last_tile, scale=None, shift=None):
        # main_ref: (1, TH, Wx, C) block; halo_ref: (1, 1, Wx, C) next input row.
        xm = main_ref[0].astype(jnp.float32)            # (TH, Wx, C)
        xh = halo_ref[0].astype(jnp.float32)            # (1,  Wx, C)
        if scale is not None:                           # fused BN of prev stage
            xm = xm * scale + shift
            xh = xh * scale + shift
        # Past the bottom edge the transposed conv must see zeros; the halo row
        # is real data except on the last row tile (clamped index -> zero it).
        xh = jnp.where(is_last_tile, 0.0, xh)
        xs = jnp.concatenate([xm, xh], axis=0).astype(jnp.bfloat16)  # (TH+1,Wx,C)
        th, _, c = xm.shape
        zcol = jnp.zeros((th + 1, 1, c), xs.dtype)
        xsr = jnp.concatenate([xs[:, 1:, :], zcol], axis=1)          # x[i, j+1]
        #      X = x[i,j]   Xr = x[i,j+1]   Xd = x[i+1,j]   Xdr = x[i+1,j+1]
        return xs[:th], xsr[:th], xs[1:], xsr[1:]

    def kernel(*refs):
        it = iter(refs)
        x_ref, xh_ref = next(it), next(it)
        sc_ref = next(it) if apply_affine else None
        sf_ref = next(it) if apply_affine else None
        s_ref = next(it) if has_skip else None
        sh_ref = next(it) if has_skip else None
        we_ref, wo_ref, b_ref = next(it), next(it), next(it)
        o_ref, sum_ref, sq_ref = next(it), next(it), next(it)

        is_last = pl.program_id(1) == pl.num_programs(1) - 1
        scale = sc_ref[...] if apply_affine else None    # (1, 1, Cx) f32
        shift = sf_ref[...] if apply_affine else None

        X, Xr, Xd, Xdr = views(x_ref, xh_ref, is_last, scale, shift)
        e_parts, o_parts = [X, Xr], [X, Xr, Xd, Xdr]
        if has_skip:   # concat-free second contraction over the skip tensor
            S, Sr, Sd, Sdr = views(s_ref, sh_ref, is_last)
            e_parts += [S, Sr]
            o_parts += [S, Sr, Sd, Sdr]

        th, wx = x_ref.shape[1], x_ref.shape[2]
        # Merged-K LHS (bf16): one matmul per output-row parity.
        flat = lambda parts: jnp.concatenate(parts, axis=-1).reshape(th * wx, -1)
        b = b_ref[...]                                   # (1, 2*Cout) f32
        acc_e = b + jnp.dot(flat(e_parts), we_ref[...],
                            preferred_element_type=jnp.float32)
        acc_o = b + jnp.dot(flat(o_parts), wo_ref[...],
                            preferred_element_type=jnp.float32)
        acc_e = jnp.maximum(acc_e, 0.0)
        acc_o = jnp.maximum(acc_o, 0.0)

        # fused BatchNorm statistics (per packed channel) from f32 accumulators
        sum_ref[0, 0] = (jnp.sum(acc_e, axis=0, keepdims=True)
                         + jnp.sum(acc_o, axis=0, keepdims=True))
        sq_ref[0, 0] = (jnp.sum(acc_e * acc_e, axis=0, keepdims=True)
                        + jnp.sum(acc_o * acc_o, axis=0, keepdims=True))

        c2 = o_ref.shape[-1]
        o_ref[0, :, 0, :, :] = acc_e.reshape(th, wx, c2).astype(o_ref.dtype)
        o_ref[0, :, 1, :, :] = acc_o.reshape(th, wx, c2).astype(o_ref.dtype)

    return kernel


# ------------------------------ host wrappers --------------------------------

def deconv_relu_stats(x, skip, w_even, w_odd, bias, scale, shift, *,
                      block_rows=16, out_dtype=jnp.bfloat16):
    """Sub-pixel ConvTranspose2d(3,3,s=2,p=1,op=1) + bias + ReLU, with fused
    BatchNorm statistics and optional fused input affine / skip contraction.

      x      : (N, Hx, Wx, Cx) NHWC (any float dtype)
      skip   : (N, Hx, Wx, Cs) NHWC or None
      w_even : (2*Cx [+2*Cs],  2*Cout) bf16 merged even-row taps
      w_odd  : (4*Cx [+4*Cs],  2*Cout) bf16 merged odd-row taps
      bias   : (1, 2*Cout) f32
      scale/shift : (Cx,) previous-stage BN affine applied in-kernel, or None
    Returns:
      y      : (N, Hx, 2, Wx, 2*Cout) out_dtype -- reshape to (N,2Hx,2Wx,Cout) is free
      ch_sum : (N, T, 1, 2*Cout) f32 per-tile channel sums of the ReLU output
      ch_sq  : (N, T, 1, 2*Cout) f32 per-tile channel sums of squares
    """
    N, Hx, Wx, Cx = x.shape
    c2 = w_even.shape[-1]
    apply_affine = scale is not None
    has_skip = skip is not None
    Cs = skip.shape[-1] if has_skip else 0

    # ---- row-tile size: target M = th*Wx >= 256 for MXU utilization, capped
    # by a conservative per-tile VMEM estimate (v7x 32 MiB scoped budget).
    in_b = x.dtype.itemsize
    out_b = np.dtype(out_dtype).itemsize
    row_bytes = Wx * (2 * (Cx + Cs) * in_b         # double-buffered inputs + halo
                      + 2 * 2 * c2 * out_b         # double-buffered output tile
                      + 2 * c2 * 4                 # f32 accumulators (even/odd)
                      + 6 * (Cx + Cs) * 2)         # bf16 merged LHS views
    vmem_cap_rows = max(1, (24 << 20) // int(row_bytes))
    target = max(1, min(Hx, max(block_rows, pl.cdiv(256, Wx)), vmem_cap_rows))
    th = max(d for d in range(1, target + 1) if Hx % d == 0)
    if th * Wx < 128 and Hx <= 4 * target:
        th = Hx   # awkward (e.g. prime) small Hx: one big row tile, no th=1 cliff
    T = Hx // th

    def _halo_idx(n, t):   # next input row (block size 1); clamped at bottom edge
        return (n, jnp.minimum((t + 1) * th, Hx - 1), 0, 0)

    in_specs = [
        pl.BlockSpec((1, th, Wx, Cx), lambda n, t: (n, t, 0, 0)),
        pl.BlockSpec((1, 1, Wx, Cx), _halo_idx),
    ]
    args = [x, x]
    if apply_affine:
        in_specs += [pl.BlockSpec((1, 1, Cx), lambda n, t: (0, 0, 0))] * 2
        args += [scale.reshape(1, 1, Cx).astype(jnp.float32),
                 shift.reshape(1, 1, Cx).astype(jnp.float32)]
    if has_skip:
        in_specs += [
            pl.BlockSpec((1, th, Wx, Cs), lambda n, t: (n, t, 0, 0)),
            pl.BlockSpec((1, 1, Wx, Cs), _halo_idx),
        ]
        args += [skip, skip]
    # Constant-index weights / bias (bf16 weights halve their VMEM residency).
    in_specs += [
        pl.BlockSpec(w_even.shape, lambda n, t: (0, 0)),
        pl.BlockSpec(w_odd.shape, lambda n, t: (0, 0)),
        pl.BlockSpec((1, c2), lambda n, t: (0, 0)),
    ]
    args += [w_even, w_odd, bias.reshape(1, c2).astype(jnp.float32)]

    out_specs = (
        pl.BlockSpec((1, th, 2, Wx, c2), lambda n, t: (n, t, 0, 0, 0)),
        pl.BlockSpec((1, 1, 1, c2), lambda n, t: (n, t, 0, 0)),
        pl.BlockSpec((1, 1, 1, c2), lambda n, t: (n, t, 0, 0)),
    )
    out_shape = (
        jax.ShapeDtypeStruct((N, Hx, 2, Wx, c2), out_dtype),
        jax.ShapeDtypeStruct((N, T, 1, c2), jnp.float32),
        jax.ShapeDtypeStruct((N, T, 1, c2), jnp.float32),
    )

    return pl.pallas_call(
        _make_deconv_kernel(apply_affine, has_skip),
        grid=(N, T),
        in_specs=in_specs,
        out_specs=out_specs,
        out_shape=out_shape,
        compiler_params=pltpu.CompilerParams(
            dimension_semantics=("parallel", "parallel")),
    )(*args)


def _pack_subpixel_weights(w_t):
    """ConvTranspose2d weight (Cin, Cout, 3, 3) -> list of 6 (Cin, 2*Cout) taps.

    Lane layout of each tap: [even output column | odd output column].
    Tap order: (X even-rows), (Xr even-rows), (X odd), (Xr odd), (Xd odd), (Xdr odd)
    with X=x[i,j], Xr=x[i,j+1], Xd=x[i+1,j], Xdr=x[i+1,j+1].
    """
    cin, cout = w_t.shape[0], w_t.shape[1]
    m = lambda kh, kw: w_t[:, :, kh, kw]
    z = jnp.zeros((cin, cout), w_t.dtype)
    return [
        jnp.concatenate([m(1, 1), m(1, 2)], axis=1),
        jnp.concatenate([z,       m(1, 0)], axis=1),
        jnp.concatenate([m(2, 1), m(2, 2)], axis=1),
        jnp.concatenate([z,       m(2, 0)], axis=1),
        jnp.concatenate([m(0, 1), m(0, 2)], axis=1),
        jnp.concatenate([z,       m(0, 0)], axis=1),
    ]


def _pack_merged_weights(w_t_x, w_t_s=None, dtype=jnp.bfloat16):
    """Merged-K bf16 weights: (K_even, 2*Cout) and (K_odd, 2*Cout)."""
    px = _pack_subpixel_weights(w_t_x)
    we, wo = [px[0], px[1]], [px[2], px[3], px[4], px[5]]
    if w_t_s is not None:
        ps = _pack_subpixel_weights(w_t_s)
        we += [ps[0], ps[1]]
        wo += [ps[2], ps[3], ps[4], ps[5]]
    return (jnp.concatenate(we, axis=0).astype(dtype),
            jnp.concatenate(wo, axis=0).astype(dtype))


def _bn_affine(ch_sum, ch_sq, gamma, beta, count, c):
    """Fold training-mode BatchNorm batch stats into per-channel (scale, shift)."""
    s = jnp.sum(ch_sum, axis=(0, 1, 2))
    q = jnp.sum(ch_sq, axis=(0, 1, 2))
    half = s.shape[0] // 2
    s = (s[:half] + s[half:])[:c]      # even + odd column halves
    q = (q[:half] + q[half:])[:c]
    mean = s / count
    var = jnp.maximum(q / count - mean * mean, 0.0)
    scale = gamma * lax.rsqrt(var + BN_EPS)
    shift = beta - mean * scale
    return scale, shift


def up_forward(x_nchw, skip_connection_nchw, params, *, block_rows=16):
    """Mirrors Up.forward(x, skip_connection); NCHW in / NCHW out."""
    to_nhwc = lambda a: jnp.transpose(a, (0, 2, 3, 1))
    x = to_nhwc(x_nchw)
    skip0 = to_nhwc(skip_connection_nchw[0])
    skip1 = to_nhwc(skip_connection_nchw[1])
    N = x.shape[0]

    # ---- deconv3 + ReLU (fused bn3 statistics) ----
    y3, s3, q3 = deconv_relu_stats(x, None, params["w3e"], params["w3o"],
                                   params["b3p"], None, None,
                                   block_rows=block_rows)
    _, h3r, _, w3c, c23 = y3.shape
    c3 = c23 // 2
    h3 = y3.reshape(N, 2 * h3r, 2 * w3c, c3)             # free row-major reshape
    scale3, shift3 = _bn_affine(s3, q3, params["g3"], params["be3"],
                                count=N * 2 * h3r * 2 * w3c, c=c3)

    # ---- deconv2 + ReLU over [bn3(h3) ; skip1]   (bn3 affine fused in-kernel) ----
    y2, s2, q2 = deconv_relu_stats(h3, skip1, params["w2e"], params["w2o"],
                                   params["b2p"], scale3, shift3,
                                   block_rows=block_rows)
    _, h2r, _, w2c, c22 = y2.shape
    c2c = c22 // 2
    h2 = y2.reshape(N, 2 * h2r, 2 * w2c, c2c)
    scale2, shift2 = _bn_affine(s2, q2, params["g2"], params["be2"],
                                count=N * 2 * h2r * 2 * w2c, c=c2c)

    # ---- deconv1 + ReLU over [bn2(h2) ; skip0]   (Cout padded 8 -> 64 lanes) ----
    y1, s1, q1 = deconv_relu_stats(h2, skip0, params["w1e"], params["w1o"],
                                   params["b1p"], scale2, shift2,
                                   block_rows=block_rows)
    _, h1r, _, w1c, c21 = y1.shape
    c_out = params["g1"].shape[0]
    scale1, shift1 = _bn_affine(s1, q1, params["g1"], params["be1"],
                                count=N * 2 * h1r * 2 * w1c, c=c_out)
    h1 = y1.reshape(N, 2 * h1r, 2 * w1c, c21 // 2)[..., :c_out]
    # bn1 affine fused into the cheap 8-channel output slice + NCHW transpose (XLA).
    out = h1.astype(jnp.float32) * scale1 + shift1
    return jnp.transpose(out, (0, 3, 1, 2))


# ------------------------------- parameters ----------------------------------

def make_params(key, in_channels, out_channels):
    ks = jax.random.split(key, 12)
    nrm = lambda k, shape, s=0.05: s * jax.random.normal(k, shape, jnp.float32)

    wt3, b3 = nrm(ks[0], (in_channels, 128, K, K)), nrm(ks[1], (128,))
    wt2, b2 = nrm(ks[2], (128 * 2, 64, K, K)), nrm(ks[3], (64,))
    wt1, b1 = nrm(ks[4], (64 * 2, out_channels, K, K)), nrm(ks[5], (out_channels,))
    g3, be3 = 1.0 + nrm(ks[6], (128,), 0.1), nrm(ks[7], (128,), 0.1)
    g2, be2 = 1.0 + nrm(ks[8], (64,), 0.1), nrm(ks[9], (64,), 0.1)
    g1, be1 = 1.0 + nrm(ks[10], (out_channels,), 0.1), nrm(ks[11], (out_channels,), 0.1)

    # pad the final deconv's output channels 8 -> 64 for lane-dense stores (c2=128)
    wt1p = jnp.pad(wt1, ((0, 0), (0, COUT_PAD - out_channels), (0, 0), (0, 0)))
    b1pd = jnp.pad(b1, (0, COUT_PAD - out_channels))

    w3e, w3o = _pack_merged_weights(wt3)
    w2e, w2o = _pack_merged_weights(wt2[:128], wt2[128:])   # x-part / skip-part
    w1e, w1o = _pack_merged_weights(wt1p[:64], wt1p[64:])

    return dict(
        # merged-K bf16 sub-pixel weights / f32 biases for the Pallas kernels
        w3e=w3e, w3o=w3o, b3p=jnp.tile(b3, 2).reshape(1, -1),
        w2e=w2e, w2o=w2o, b2p=jnp.tile(b2, 2).reshape(1, -1),
        w1e=w1e, w1o=w1o, b1p=jnp.tile(b1pd, 2).reshape(1, -1),
        # BatchNorm affine parameters
        g3=g3, be3=be3, g2=g2, be2=be2, g1=g1, be1=be1,
        # raw ConvTranspose2d weights/biases (pure-JAX reference path)
        wt3=wt3, b3=b3, wt2=wt2, b2=b2, wt1=wt1, b1=b1,
    )


# --------------------------- pure-JAX reference ------------------------------

def _deconv_relu_ref(x, w_t, b):
    taps = jnp.transpose(jnp.flip(w_t, (2, 3)), (2, 3, 0, 1))      # HWIO conv taps
    y = lax.conv_general_dilated(
        x, taps, window_strides=(1, 1), padding=[(1, 2), (1, 2)],
        lhs_dilation=(2, 2), dimension_numbers=("NHWC", "HWIO", "NHWC"),
        precision=lax.Precision.HIGHEST)
    return jnp.maximum(y + b, 0.0)


def _bn_ref(x, g, be):
    mean = jnp.mean(x, axis=(0, 1, 2), keepdims=True)
    var = jnp.mean(jnp.square(x - mean), axis=(0, 1, 2), keepdims=True)
    return (x - mean) * lax.rsqrt(var + BN_EPS) * g + be


def up_forward_ref(x_nchw, skips_nchw, params):
    to_nhwc = lambda a: jnp.transpose(a, (0, 2, 3, 1))
    x, s0, s1 = to_nhwc(x_nchw), to_nhwc(skips_nchw[0]), to_nhwc(skips_nchw[1])
    h = _bn_ref(_deconv_relu_ref(x, params["wt3"], params["b3"]),
                params["g3"], params["be3"])
    h = jnp.concatenate([h, s1], axis=-1)
    h = _bn_ref(_deconv_relu_ref(h, params["wt2"], params["b2"]),
                params["g2"], params["be2"])
    h = jnp.concatenate([h, s0], axis=-1)
    h = _bn_ref(_deconv_relu_ref(h, params["wt1"], params["b1"]),
                params["g1"], params["be1"])
    return jnp.transpose(h, (0, 3, 1, 2))


# ---------------------------------- main -------------------------------------

if __name__ == "__main__":
    in_channels, out_channels = 16, 8
    N, H, W = 2, 4, 4

    kp, kx, k0, k1 = jax.random.split(jax.random.PRNGKey(0), 4)
    params = make_params(kp, in_channels, out_channels)

    x = jax.random.normal(kx, (N, in_channels, H, W), jnp.float32)        # NCHW
    skip0 = jax.random.normal(k0, (N, 64, 4 * H, 4 * W), jnp.float32)     # cat before deconv1
    skip1 = jax.random.normal(k1, (N, 128, 2 * H, 2 * W), jnp.float32)    # cat before deconv2
    skips = (skip0, skip1)

    out = jax.block_until_ready(jax.jit(up_forward)(x, skips, params))
    assert out.shape == (N, out_channels, 8 * H, 8 * W), out.shape

    # bf16 MXU operands + bf16 intermediates widen the tolerance vs. the
    # f32 HIGHEST-precision reference.
    ref = jax.block_until_ready(up_forward_ref(x, skips, params))
    np.testing.assert_allclose(np.asarray(out), np.asarray(ref),
                               rtol=5e-2, atol=5e-2)
    print("KERNEL_OK")
</pallas_src>

<mosaic_0001>
module attributes {stable_mosaic.version = 11 : i64} {
  func.func @kernel(%arg0: i32, %arg1: i32, %arg2: memref<1x4x4x16xf32, #tpu.memory_space<vmem>>, %arg3: memref<1x1x4x16xf32, #tpu.memory_space<vmem>>, %arg4: memref<32x256xbf16, #tpu.memory_space<vmem>>, %arg5: memref<64x256xbf16, #tpu.memory_space<vmem>>, %arg6: memref<1x256xf32, #tpu.memory_space<vmem>>, %arg7: memref<1x4x2x4x256xbf16, #tpu.memory_space<vmem>>, %arg8: memref<1x1x1x256xf32, #tpu.memory_space<vmem>>, %arg9: memref<1x1x1x256xf32, #tpu.memory_space<vmem>>) attributes {dimension_semantics = [#tpu.dimension_semantics<parallel>, #tpu.dimension_semantics<parallel>], iteration_bounds = array<i64: 2, 1>, scalar_prefetch = 0 : i64, scratch_operands = 0 : i64, tpu.core_type = #tpu.core_type<tc>, window_params = [{transform_indices = @transform_0, window_bounds = array<i64: 1, 4, 4, 16>}, {transform_indices = @transform_1, window_bounds = array<i64: 1, 1, 4, 16>}, {pipeline_mode = #tpu.pipeline_mode<synchronous>, transform_indices = @transform_2, window_bounds = array<i64: 32, 256>}, {pipeline_mode = #tpu.pipeline_mode<synchronous>, transform_indices = @transform_3, window_bounds = array<i64: 64, 256>}, {pipeline_mode = #tpu.pipeline_mode<synchronous>, transform_indices = @transform_4, window_bounds = array<i64: 1, 256>}, {transform_indices = @transform_5, window_bounds = array<i64: 1, 4, 2, 4, 256>}, {transform_indices = @transform_6, window_bounds = array<i64: 1, 1, 1, 256>}, {transform_indices = @transform_7, window_bounds = array<i64: 1, 1, 1, 256>}]} {
    %c0_i32 = arith.constant 0 : i32
    %0 = arith.cmpi eq, %arg1, %c0_i32 : i32
    %c0 = arith.constant 0 : index
    %c0_0 = arith.constant 0 : index
    %c0_1 = arith.constant 0 : index
    %c0_2 = arith.constant 0 : index
    %1 = vector.load %arg2[%c0, %c0_0, %c0_1, %c0_2] : memref<1x4x4x16xf32, #tpu.memory_space<vmem>>, vector<1x4x4x16xf32>
    %2 = vector.shape_cast %1 : vector<1x4x4x16xf32> to vector<4x4x16xf32>
    %c0_3 = arith.constant 0 : index
    %c0_4 = arith.constant 0 : index
    %c0_5 = arith.constant 0 : index
    %c0_6 = arith.constant 0 : index
    %3 = vector.load %arg3[%c0_3, %c0_4, %c0_5, %c0_6] : memref<1x1x4x16xf32, #tpu.memory_space<vmem>>, vector<1x1x4x16xf32>
    %4 = vector.shape_cast %3 : vector<1x1x4x16xf32> to vector<1x4x16xf32>
    %cst = arith.constant 0.000000e+00 : f32
    %5 = vector.broadcast %cst : f32 to vector<1x4x16xf32>
    %6 = arith.select %0, %5, %4 : vector<1x4x16xf32>
    %7 = tpu.concatenate %2, %6 in 0 : vector<4x4x16xf32>, vector<1x4x16xf32> -> vector<5x4x16xf32>
    %8 = arith.truncf %7 : vector<5x4x16xf32> to vector<5x4x16xbf16>
    %cst_7 = arith.constant 0.000000e+00 : bf16
    %9 = vector.broadcast %cst_7 : bf16 to vector<5x1x16xbf16>
    %10 = vector.extract_strided_slice %8 {offsets = [0, 1, 0], sizes = [5, 3, 16], strides = [1, 1, 1]} : vector<5x4x16xbf16> to vector<5x3x16xbf16>
    %11 = tpu.concatenate %10, %9 in 1 : vector<5x3x16xbf16>, vector<5x1x16xbf16> -> vector<5x4x16xbf16>
    %12 = vector.extract_strided_slice %8 {offsets = [0, 0, 0], sizes = [4, 4, 16], strides = [1, 1, 1]} : vector<5x4x16xbf16> to vector<4x4x16xbf16>
    %13 = vector.extract_strided_slice %11 {offsets = [0, 0, 0], sizes = [4, 4, 16], strides = [1, 1, 1]} : vector<5x4x16xbf16> to vector<4x4x16xbf16>
    %14 = vector.extract_strided_slice %8 {offsets = [1, 0, 0], sizes = [4, 4, 16], strides = [1, 1, 1]} : vector<5x4x16xbf16> to vector<4x4x16xbf16>
    %15 = vector.extract_strided_slice %11 {offsets = [1, 0, 0], sizes = [4, 4, 16], strides = [1, 1, 1]} : vector<5x4x16xbf16> to vector<4x4x16xbf16>
    %c0_8 = arith.constant 0 : index
    %c0_9 = arith.constant 0 : index
    %16 = vector.load %arg6[%c0_8, %c0_9] : memref<1x256xf32, #tpu.memory_space<vmem>>, vector<1x256xf32>
    %17 = tpu.concatenate %12, %13 in 2 : vector<4x4x16xbf16>, vector<4x4x16xbf16> -> vector<4x4x32xbf16>
    %18 = vector.shape_cast %17 : vector<4x4x32xbf16> to vector<16x32xbf16>
    %c0_10 = arith.constant 0 : index
    %c0_11 = arith.constant 0 : index
    %19 = vector.load %arg4[%c0_10, %c0_11] : memref<32x256xbf16, #tpu.memory_space<vmem>>, vector<32x256xbf16>
    %cst_12 = arith.constant dense<0.000000e+00> : vector<16x256xf32>
    %20 = tpu.matmul %18, %19, %cst_12 {dimension_numbers = #tpu.dot_dimension_numbers<[1], [0], [0], [1], [0, 0, 1, 1], [], []>} : vector<16x32xbf16>, vector<32x256xbf16>, vector<16x256xf32> -> vector<16x256xf32>
    %21 = vector.broadcast %16 : vector<1x256xf32> to vector<16x256xf32>
    %22 = arith.addf %21, %20 : vector<16x256xf32>
    %23 = tpu.concatenate %12, %13, %14, %15 in 2 : vector<4x4x16xbf16>, vector<4x4x16xbf16>, vector<4x4x16xbf16>, vector<4x4x16xbf16> -> vector<4x4x64xbf16>
    %24 = vector.shape_cast %23 : vector<4x4x64xbf16> to vector<16x64xbf16>
    %c0_13 = arith.constant 0 : index
    %c0_14 = arith.constant 0 : index
    %25 = vector.load %arg5[%c0_13, %c0_14] : memref<64x256xbf16, #tpu.memory_space<vmem>>, vector<64x256xbf16>
    %cst_15 = arith.constant dense<0.000000e+00> : vector<16x256xf32>
    %26 = tpu.matmul %24, %25, %cst_15 {dimension_numbers = #tpu.dot_dimension_numbers<[1], [0], [0], [1], [0, 0, 1, 1], [], []>} : vector<16x64xbf16>, vector<64x256xbf16>, vector<16x256xf32> -> vector<16x256xf32>
    %27 = vector.broadcast %16 : vector<1x256xf32> to vector<16x256xf32>
    %28 = arith.addf %27, %26 : vector<16x256xf32>
    %cst_16 = arith.constant 0.000000e+00 : f32
    %29 = vector.broadcast %cst_16 : f32 to vector<16x256xf32>
    %30 = arith.maximumf %22, %29 : vector<16x256xf32>
    %cst_17 = arith.constant 0.000000e+00 : f32
    %31 = vector.broadcast %cst_17 : f32 to vector<16x256xf32>
    %32 = arith.maximumf %28, %31 : vector<16x256xf32>
    %cst_18 = arith.constant dense<0.000000e+00> : vector<256xf32>
    %33 = vector.multi_reduction <add>, %30, %cst_18 [0] : vector<16x256xf32> to vector<256xf32>
    %34 = vector.shape_cast %33 : vector<256xf32> to vector<1x256xf32>
    %cst_19 = arith.constant dense<0.000000e+00> : vector<256xf32>
    %35 = vector.multi_reduction <add>, %32, %cst_19 [0] : vector<16x256xf32> to vector<256xf32>
    %36 = vector.shape_cast %35 : vector<256xf32> to vector<1x256xf32>
    %37 = arith.addf %34, %36 : vector<1x256xf32>
    %c0_20 = arith.constant 0 : index
    %c0_21 = arith.constant 0 : index
    %c0_22 = arith.constant 0 : index
    %c0_23 = arith.constant 0 : index
    %38 = vector.load %arg8[%c0_20, %c0_21, %c0_22, %c0_23] : memref<1x1x1x256xf32, #tpu.memory_space<vmem>>, vector<1x1x1x256xf32>
    %39 = vector.shape_cast %38 : vector<1x1x1x256xf32> to vector<1x256xf32>
    %40 = vector.shape_cast %37 : vector<1x256xf32> to vector<1x1x1x256xf32>
    tpu.vector_store %arg8[%c0_20, %c0_21, %c0_22, %c0_23], %40 {strides = array<i32>} : memref<1x1x1x256xf32, #tpu.memory_space<vmem>>, vector<1x1x1x256xf32>,
    %41 = arith.mulf %30, %30 : vector<16x256xf32>
    %cst_24 = arith.constant dense<0.000000e+00> : vector<256xf32>
    %42 = vector.multi_reduction <add>, %41, %cst_24 [0] : vector<16x256xf32> to vector<256xf32>
    %43 = vector.shape_cast %42 : vector<256xf32> to vector<1x256xf32>
    %44 = arith.mulf %32, %32 : vector<16x256xf32>
    %cst_25 = arith.constant dense<0.000000e+00> : vector<256xf32>
    %45 = vector.multi_reduction <add>, %44, %cst_25 [0] : vector<16x256xf32> to vector<256xf32>
    %46 = vector.shape_cast %45 : vector<256xf32> to vector<1x256xf32>
    %47 = arith.addf %43, %46 : vector<1x256xf32>
    %c0_26 = arith.constant 0 : index
    %c0_27 = arith.constant 0 : index
    %c0_28 = arith.constant 0 : index
    %c0_29 = arith.constant 0 : index
    %48 = vector.load %arg9[%c0_26, %c0_27, %c0_28, %c0_29] : memref<1x1x1x256xf32, #tpu.memory_space<vmem>>, vector<1x1x1x256xf32>
    %49 = vector.shape_cast %48 : vector<1x1x1x256xf32> to vector<1x256xf32>
    %50 = vector.shape_cast %47 : vector<1x256xf32> to vector<1x1x1x256xf32>
    tpu.vector_store %arg9[%c0_26, %c0_27, %c0_28, %c0_29], %50 {strides = array<i32>} : memref<1x1x1x256xf32, #tpu.memory_space<vmem>>, vector<1x1x1x256xf32>,
    %51 = vector.shape_cast %30 : vector<16x256xf32> to vector<4x4x256xf32>
    %52 = arith.truncf %51 : vector<4x4x256xf32> to vector<4x4x256xbf16>
    %c0_30 = arith.constant 0 : index
    %c0_31 = arith.constant 0 : index
    %c0_32 = arith.constant 0 : index
    %c0_33 = arith.constant 0 : index
    %c0_34 = arith.constant 0 : index
    %53 = vector.load %arg7[%c0_30, %c0_31, %c0_32, %c0_33, %c0_34] : memref<1x4x2x4x256xbf16, #tpu.memory_space<vmem>>, vector<1x4x1x4x256xbf16>
    %54 = vector.shape_cast %53 : vector<1x4x1x4x256xbf16> to vector<4x4x256xbf16>
    %55 = vector.shape_cast %52 : vector<4x4x256xbf16> to vector<1x4x1x4x256xbf16>
    tpu.vector_store %arg7[%c0_30, %c0_31, %c0_32, %c0_33, %c0_34], %55 {strides = array<i32>} : memref<1x4x2x4x256xbf16, #tpu.memory_space<vmem>>, vector<1x4x1x4x256xbf16>,
    %56 = vector.shape_cast %32 : vector<16x256xf32> to vector<4x4x256xf32>
    %57 = arith.truncf %56 : vector<4x4x256xf32> to vector<4x4x256xbf16>
    %c0_35 = arith.constant 0 : index
    %c0_36 = arith.constant 0 : index
    %c1 = arith.constant 1 : index
    %c0_37 = arith.constant 0 : index
    %c0_38 = arith.constant 0 : index
    %58 = vector.load %arg7[%c0_35, %c0_36, %c1, %c0_37, %c0_38] : memref<1x4x2x4x256xbf16, #tpu.memory_space<vmem>>, vector<1x4x1x4x256xbf16>
    %59 = vector.shape_cast %58 : vector<1x4x1x4x256xbf16> to vector<4x4x256xbf16>
    %60 = vector.shape_cast %57 : vector<4x4x256xbf16> to vector<1x4x1x4x256xbf16>
    tpu.vector_store %arg7[%c0_35, %c0_36, %c1, %c0_37, %c0_38], %60 {strides = array<i32>} : memref<1x4x2x4x256xbf16, #tpu.memory_space<vmem>>, vector<1x4x1x4x256xbf16>,
    return
  }
  func.func @transform_0(%arg0: i32, %arg1: i32) -> (i32, i32, i32, i32) {
    %c0_i32 = arith.constant 0 : i32
    %c0_i32_0 = arith.constant 0 : i32
    %c0_i32_1 = arith.constant 0 : i32
    return %arg0, %arg1, %c0_i32, %c0_i32_0 : i32, i32, i32, i32
  }
  func.func @transform_1(%arg0: i32, %arg1: i32) -> (i32, i32, i32, i32) {
    %c1_i32 = arith.constant 1 : i32
    %0 = arith.addi %arg1, %c1_i32 : i32
    %c4_i32 = arith.constant 4 : i32
    %1 = arith.muli %0, %c4_i32 : i32
    %c3_i32 = arith.constant 3 : i32
    %2 = arith.minsi %1, %c3_i32 : i32
    %c0_i32 = arith.constant 0 : i32
    %c0_i32_0 = arith.constant 0 : i32
    %c0_i32_1 = arith.constant 0 : i32
    return %arg0, %2, %c0_i32, %c0_i32_0 : i32, i32, i32, i32
  }
  func.func @transform_2(%arg0: i32, %arg1: i32) -> (i32, i32) {
    %c0_i32 = arith.constant 0 : i32
    %c0_i32_0 = arith.constant 0 : i32
    %c0_i32_1 = arith.constant 0 : i32
    return %c0_i32, %c0_i32_0 : i32, i32
  }
  func.func @transform_3(%arg0: i32, %arg1: i32) -> (i32, i32) {
    %c0_i32 = arith.constant 0 : i32
    %c0_i32_0 = arith.constant 0 : i32
    %c0_i32_1 = arith.constant 0 : i32
    return %c0_i32, %c0_i32_0 : i32, i32
  }
  func.func @transform_4(%arg0: i32, %arg1: i32) -> (i32, i32) {
    %c0_i32 = arith.constant 0 : i32
    %c0_i32_0 = arith.constant 0 : i32
    %c0_i32_1 = arith.constant 0 : i32
    return %c0_i32, %c0_i32_0 : i32, i32
  }
  func.func @transform_5(%arg0: i32, %arg1: i32) -> (i32, i32, i32, i32, i32) {
    %c0_i32 = arith.constant 0 : i32
    %c0_i32_0 = arith.constant 0 : i32
    %c0_i32_1 = arith.constant 0 : i32
    %c0_i32_2 = arith.constant 0 : i32
    return %arg0, %arg1, %c0_i32, %c0_i32_0, %c0_i32_1 : i32, i32, i32, i32, i32
  }
  func.func @transform_6(%arg0: i32, %arg1: i32) -> (i32, i32, i32, i32) {
    %c0_i32 = arith.constant 0 : i32
    %c0_i32_0 = arith.constant 0 : i32
    %c0_i32_1 = arith.constant 0 : i32
    return %arg0, %arg1, %c0_i32, %c0_i32_0 : i32, i32, i32, i32
  }
  func.func @transform_7(%arg0: i32, %arg1: i32) -> (i32, i32, i32, i32) {
    %c0_i32 = arith.constant 0 : i32
    %c0_i32_0 = arith.constant 0 : i32
    %c0_i32_1 = arith.constant 0 : i32
    return %arg0, %arg1, %c0_i32, %c0_i32_0 : i32, i32, i32, i32
  }
}

module attributes {stable_mosaic.version = 11 : i64} {
  func.func @kernel(%arg0: i32, %arg1: i32, %arg2: memref<1x8x8x128xbf16, #tpu.memory_space<vmem>>, %arg3: memref<1x1x8x128xbf16, #tpu.memory_space<vmem>>, %arg4: memref<1x1x128xf32, #tpu.memory_space<vmem>>, %arg5: memref<1x1x128xf32, #tpu.memory_space<vmem>>, %arg6: memref<1x8x8x128xf32, #tpu.memory_space<vmem>>, %arg7: memref<1x1x8x128xf32, #tpu.memory_space<vmem>>, %arg8: memref<512x128xbf16, #tpu.memory_space<vmem>>, %arg9: memref<1024x128xbf16, #tpu.memory_space<vmem>>, %arg10: memref<1x128xf32, #tpu.memory_space<vmem>>, %arg11: memref<1x8x2x8x128xbf16, #tpu.memory_space<vmem>>, %arg12: memref<1x1x1x128xf32, #tpu.memory_space<vmem>>, %arg13: memref<1x1x1x128xf32, #tpu.memory_space<vmem>>) attributes {dimension_semantics = [#tpu.dimension_semantics<parallel>, #tpu.dimension_semantics<parallel>], iteration_bounds = array<i64: 2, 1>, scalar_prefetch = 0 : i64, scratch_operands = 0 : i64, tpu.core_type = #tpu.core_type<tc>, window_params = [{transform_indices = @transform_0, window_bounds = array<i64: 1, 8, 8, 128>}, {transform_indices = @transform_1, window_bounds = array<i64: 1, 1, 8, 128>}, {pipeline_mode = #tpu.pipeline_mode<synchronous>, transform_indices = @transform_2, window_bounds = array<i64: 1, 1, 128>}, {pipeline_mode = #tpu.pipeline_mode<synchronous>, transform_indices = @transform_3, window_bounds = array<i64: 1, 1, 128>}, {transform_indices = @transform_4, window_bounds = array<i64: 1, 8, 8, 128>}, {transform_indices = @transform_5, window_bounds = array<i64: 1, 1, 8, 128>}, {pipeline_mode = #tpu.pipeline_mode<synchronous>, transform_indices = @transform_6, window_bounds = array<i64: 512, 128>}, {pipeline_mode = #tpu.pipeline_mode<synchronous>, transform_indices = @transform_7, window_bounds = array<i64: 1024, 128>}, {pipeline_mode = #tpu.pipeline_mode<synchronous>, transform_indices = @transform_8, window_bounds = array<i64: 1, 128>}, {transform_indices = @transform_9, window_bounds = array<i64: 1, 8, 2, 8, 128>}, {transform_indices = @transform_10, window_bounds = array<i64: 1, 1, 1, 128>}, {transform_indices = @transform_11, window_bounds = array<i64: 1, 1, 1, 128>}]} {
    %c0_i32 = arith.constant 0 : i32
    %0 = arith.cmpi eq, %arg1, %c0_i32 : i32
    %c0 = arith.constant 0 : index
    %c0_0 = arith.constant 0 : index
    %c0_1 = arith.constant 0 : index
    %1 = vector.load %arg4[%c0, %c0_0, %c0_1] : memref<1x1x128xf32, #tpu.memory_space<vmem>>, vector<1x1x128xf32>
    %c0_2 = arith.constant 0 : index
    %c0_3 = arith.constant 0 : index
    %c0_4 = arith.constant 0 : index
    %2 = vector.load %arg5[%c0_2, %c0_3, %c0_4] : memref<1x1x128xf32, #tpu.memory_space<vmem>>, vector<1x1x128xf32>
    %c0_5 = arith.constant 0 : index
    %c0_6 = arith.constant 0 : index
    %c0_7 = arith.constant 0 : index
    %c0_8 = arith.constant 0 : index
    %3 = vector.load %arg2[%c0_5, %c0_6, %c0_7, %c0_8] : memref<1x8x8x128xbf16, #tpu.memory_space<vmem>>, vector<1x8x8x128xbf16>
    %4 = vector.shape_cast %3 : vector<1x8x8x128xbf16> to vector<8x8x128xbf16>
    %5 = arith.extf %4 : vector<8x8x128xbf16> to vector<8x8x128xf32>
    %c0_9 = arith.constant 0 : index
    %c0_10 = arith.constant 0 : index
    %c0_11 = arith.constant 0 : index
    %c0_12 = arith.constant 0 : index
    %6 = vector.load %arg3[%c0_9, %c0_10, %c0_11, %c0_12] : memref<1x1x8x128xbf16, #tpu.memory_space<vmem>>, vector<1x1x8x128xbf16>
    %7 = vector.shape_cast %6 : vector<1x1x8x128xbf16> to vector<1x8x128xbf16>
    %8 = arith.extf %7 : vector<1x8x128xbf16> to vector<1x8x128xf32>
    %9 = vector.broadcast %1 : vector<1x1x128xf32> to vector<8x8x128xf32>
    %10 = arith.mulf %5, %9 : vector<8x8x128xf32>
    %11 = vector.broadcast %2 : vector<1x1x128xf32> to vector<8x8x128xf32>
    %12 = arith.addf %10, %11 : vector<8x8x128xf32>
    %13 = vector.broadcast %1 : vector<1x1x128xf32> to vector<1x8x128xf32>
    %14 = arith.mulf %8, %13 : vector<1x8x128xf32>
    %15 = vector.broadcast %2 : vector<1x1x128xf32> to vector<1x8x128xf32>
    %16 = arith.addf %14, %15 : vector<1x8x128xf32>
    %cst = arith.constant 0.000000e+00 : f32
    %17 = vector.broadcast %cst : f32 to vector<1x8x128xf32>
    %18 = arith.select %0, %17, %16 : vector<1x8x128xf32>
    %19 = tpu.concatenate %12, %18 in 0 : vector<8x8x128xf32>, vector<1x8x128xf32> -> vector<9x8x128xf32>
    %20 = arith.truncf %19 : vector<9x8x128xf32> to vector<9x8x128xbf16>
    %cst_13 = arith.constant 0.000000e+00 : bf16
    %21 = vector.broadcast %cst_13 : bf16 to vector<9x1x128xbf16>
    %22 = vector.extract_strided_slice %20 {offsets = [0, 1, 0], sizes = [9, 7, 128], strides = [1, 1, 1]} : vector<9x8x128xbf16> to vector<9x7x128xbf16>
    %23 = tpu.concatenate %22, %21 in 1 : vector<9x7x128xbf16>, vector<9x1x128xbf16> -> vector<9x8x128xbf16>
    %24 = vector.extract_strided_slice %20 {offsets = [0, 0, 0], sizes = [8, 8, 128], strides = [1, 1, 1]} : vector<9x8x128xbf16> to vector<8x8x128xbf16>
    %25 = vector.extract_strided_slice %23 {offsets = [0, 0, 0], sizes = [8, 8, 128], strides = [1, 1, 1]} : vector<9x8x128xbf16> to vector<8x8x128xbf16>
    %26 = vector.extract_strided_slice %20 {offsets = [1, 0, 0], sizes = [8, 8, 128], strides = [1, 1, 1]} : vector<9x8x128xbf16> to vector<8x8x128xbf16>
    %27 = vector.extract_strided_slice %23 {offsets = [1, 0, 0], sizes = [8, 8, 128], strides = [1, 1, 1]} : vector<9x8x128xbf16> to vector<8x8x128xbf16>
    %c0_14 = arith.constant 0 : index
    %c0_15 = arith.constant 0 : index
    %c0_16 = arith.constant 0 : index
    %c0_17 = arith.constant 0 : index
    %28 = vector.load %arg6[%c0_14, %c0_15, %c0_16, %c0_17] : memref<1x8x8x128xf32, #tpu.memory_space<vmem>>, vector<1x8x8x128xf32>
    %29 = vector.shape_cast %28 : vector<1x8x8x128xf32> to vector<8x8x128xf32>
    %c0_18 = arith.constant 0 : index
    %c0_19 = arith.constant 0 : index
    %c0_20 = arith.constant 0 : index
    %c0_21 = arith.constant 0 : index
    %30 = vector.load %arg7[%c0_18, %c0_19, %c0_20, %c0_21] : memref<1x1x8x128xf32, #tpu.memory_space<vmem>>, vector<1x1x8x128xf32>
    %31 = vector.shape_cast %30 : vector<1x1x8x128xf32> to vector<1x8x128xf32>
    %cst_22 = arith.constant 0.000000e+00 : f32
    %32 = vector.broadcast %cst_22 : f32 to vector<1x8x128xf32>
    %33 = arith.select %0, %32, %31 : vector<1x8x128xf32>
    %34 = tpu.concatenate %29, %33 in 0 : vector<8x8x128xf32>, vector<1x8x128xf32> -> vector<9x8x128xf32>
    %35 = arith.truncf %34 : vector<9x8x128xf32> to vector<9x8x128xbf16>
    %cst_23 = arith.constant 0.000000e+00 : bf16
    %36 = vector.broadcast %cst_23 : bf16 to vector<9x1x128xbf16>
    %37 = vector.extract_strided_slice %35 {offsets = [0, 1, 0], sizes = [9, 7, 128], strides = [1, 1, 1]} : vector<9x8x128xbf16> to vector<9x7x128xbf16>
    %38 = tpu.concatenate %37, %36 in 1 : vector<9x7x128xbf16>, vector<9x1x128xbf16> -> vector<9x8x128xbf16>
    %39 = vector.extract_strided_slice %35 {offsets = [0, 0, 0], sizes = [8, 8, 128], strides = [1, 1, 1]} : vector<9x8x128xbf16> to vector<8x8x128xbf16>
    %40 = vector.extract_strided_slice %38 {offsets = [0, 0, 0], sizes = [8, 8, 128], strides = [1, 1, 1]} : vector<9x8x128xbf16> to vector<8x8x128xbf16>
    %41 = vector.extract_strided_slice %35 {offsets = [1, 0, 0], sizes = [8, 8, 128], strides = [1, 1, 1]} : vector<9x8x128xbf16> to vector<8x8x128xbf16>
    %42 = vector.extract_strided_slice %38 {offsets = [1, 0, 0], sizes = [8, 8, 128], strides = [1, 1, 1]} : vector<9x8x128xbf16> to vector<8x8x128xbf16>
    %c0_24 = arith.constant 0 : index
    %c0_25 = arith.constant 0 : index
    %43 = vector.load %arg10[%c0_24, %c0_25] : memref<1x128xf32, #tpu.memory_space<vmem>>, vector<1x128xf32>
    %44 = tpu.concatenate %24, %25, %39, %40 in 2 : vector<8x8x128xbf16>, vector<8x8x128xbf16>, vector<8x8x128xbf16>, vector<8x8x128xbf16> -> vector<8x8x512xbf16>
    %45 = vector.shape_cast %44 : vector<8x8x512xbf16> to vector<64x512xbf16>
    %c0_26 = arith.constant 0 : index
    %c0_27 = arith.constant 0 : index
    %46 = vector.load %arg8[%c0_26, %c0_27] : memref<512x128xbf16, #tpu.memory_space<vmem>>, vector<512x128xbf16>
    %cst_28 = arith.constant dense<0.000000e+00> : vector<64x128xf32>
    %47 = tpu.matmul %45, %46, %cst_28 {dimension_numbers = #tpu.dot_dimension_numbers<[1], [0], [0], [1], [0, 0, 1, 1], [], []>} : vector<64x512xbf16>, vector<512x128xbf16>, vector<64x128xf32> -> vector<64x128xf32>
    %48 = vector.broadcast %43 : vector<1x128xf32> to vector<64x128xf32>
    %49 = arith.addf %48, %47 : vector<64x128xf32>
    %50 = tpu.concatenate %24, %25, %26, %27, %39, %40, %41, %42 in 2 : vector<8x8x128xbf16>, vector<8x8x128xbf16>, vector<8x8x128xbf16>, vector<8x8x128xbf16>, vector<8x8x128xbf16>, vector<8x8x128xbf16>, vector<8x8x128xbf16>, vector<8x8x128xbf16> -> vector<8x8x1024xbf16>
    %51 = vector.shape_cast %50 : vector<8x8x1024xbf16> to vector<64x1024xbf16>
    %c0_29 = arith.constant 0 : index
    %c0_30 = arith.constant 0 : index
    %52 = vector.load %arg9[%c0_29, %c0_30] : memref<1024x128xbf16, #tpu.memory_space<vmem>>, vector<1024x128xbf16>
    %cst_31 = arith.constant dense<0.000000e+00> : vector<64x128xf32>
    %53 = tpu.matmul %51, %52, %cst_31 {dimension_numbers = #tpu.dot_dimension_numbers<[1], [0], [0], [1], [0, 0, 1, 1], [], []>} : vector<64x1024xbf16>, vector<1024x128xbf16>, vector<64x128xf32> -> vector<64x128xf32>
    %54 = vector.broadcast %43 : vector<1x128xf32> to vector<64x128xf32>
    %55 = arith.addf %54, %53 : vector<64x128xf32>
    %cst_32 = arith.constant 0.000000e+00 : f32
    %56 = vector.broadcast %cst_32 : f32 to vector<64x128xf32>
    %57 = arith.maximumf %49, %56 : vector<64x128xf32>
    %cst_33 = arith.constant 0.000000e+00 : f32
    %58 = vector.broadcast %cst_33 : f32 to vector<64x128xf32>
    %59 = arith.maximumf %55, %58 : vector<64x128xf32>
    %cst_34 = arith.constant dense<0.000000e+00> : vector<128xf32>
    %60 = vector.multi_reduction <add>, %57, %cst_34 [0] : vector<64x128xf32> to vector<128xf32>
    %61 = vector.shape_cast %60 : vector<128xf32> to vector<1x128xf32>
    %cst_35 = arith.constant dense<0.000000e+00> : vector<128xf32>
    %62 = vector.multi_reduction <add>, %59, %cst_35 [0] : vector<64x128xf32> to vector<128xf32>
    %63 = vector.shape_cast %62 : vector<128xf32> to vector<1x128xf32>
    %64 = arith.addf %61, %63 : vector<1x128xf32>
    %c0_36 = arith.constant 0 : index
    %c0_37 = arith.constant 0 : index
    %c0_38 = arith.constant 0 : index
    %c0_39 = arith.constant 0 : index
    %65 = vector.load %arg12[%c0_36, %c0_37, %c0_38, %c0_39] : memref<1x1x1x128xf32, #tpu.memory_space<vmem>>, vector<1x1x1x128xf32>
    %66 = vector.shape_cast %65 : vector<1x1x1x128xf32> to vector<1x128xf32>
    %67 = vector.shape_cast %64 : vector<1x128xf32> to vector<1x1x1x128xf32>
    tpu.vector_store %arg12[%c0_36, %c0_37, %c0_38, %c0_39], %67 {strides = array<i32>} : memref<1x1x1x128xf32, #tpu.memory_space<vmem>>, vector<1x1x1x128xf32>,
    %68 = arith.mulf %57, %57 : vector<64x128xf32>
    %cst_40 = arith.constant dense<0.000000e+00> : vector<128xf32>
    %69 = vector.multi_reduction <add>, %68, %cst_40 [0] : vector<64x128xf32> to vector<128xf32>
    %70 = vector.shape_cast %69 : vector<128xf32> to vector<1x128xf32>
    %71 = arith.mulf %59, %59 : vector<64x128xf32>
    %cst_41 = arith.constant dense<0.000000e+00> : vector<128xf32>
    %72 = vector.multi_reduction <add>, %71, %cst_41 [0] : vector<64x128xf32> to vector<128xf32>
    %73 = vector.shape_cast %72 : vector<128xf32> to vector<1x128xf32>
    %74 = arith.addf %70, %73 : vector<1x128xf32>
    %c0_42 = arith.constant 0 : index
    %c0_43 = arith.constant 0 : index
    %c0_44 = arith.constant 0 : index
    %c0_45 = arith.constant 0 : index
    %75 = vector.load %arg13[%c0_42, %c0_43, %c0_44, %c0_45] : memref<1x1x1x128xf32, #tpu.memory_space<vmem>>, vector<1x1x1x128xf32>
    %76 = vector.shape_cast %75 : vector<1x1x1x128xf32> to vector<1x128xf32>
    %77 = vector.shape_cast %74 : vector<1x128xf32> to vector<1x1x1x128xf32>
    tpu.vector_store %arg13[%c0_42, %c0_43, %c0_44, %c0_45], %77 {strides = array<i32>} : memref<1x1x1x128xf32, #tpu.memory_space<vmem>>, vector<1x1x1x128xf32>,
    %78 = vector.shape_cast %57 : vector<64x128xf32> to vector<8x8x128xf32>
    %79 = arith.truncf %78 : vector<8x8x128xf32> to vector<8x8x128xbf16>
    %c0_46 = arith.constant 0 : index
    %c0_47 = arith.constant 0 : index
    %c0_48 = arith.constant 0 : index
    %c0_49 = arith.constant 0 : index
    %c0_50 = arith.constant 0 : index
    %80 = vector.load %arg11[%c0_46, %c0_47, %c0_48, %c0_49, %c0_50] : memref<1x8x2x8x128xbf16, #tpu.memory_space<vmem>>, vector<1x8x1x8x128xbf16>
    %81 = vector.shape_cast %80 : vector<1x8x1x8x128xbf16> to vector<8x8x128xbf16>
    %82 = vector.shape_cast %79 : vector<8x8x128xbf16> to vector<1x8x1x8x128xbf16>
    tpu.vector_store %arg11[%c0_46, %c0_47, %c0_48, %c0_49, %c0_50], %82 {strides = array<i32>} : memref<1x8x2x8x128xbf16, #tpu.memory_space<vmem>>, vector<1x8x1x8x128xbf16>,
    %83 = vector.shape_cast %59 : vector<64x128xf32> to vector<8x8x128xf32>
    %84 = arith.truncf %83 : vector<8x8x128xf32> to vector<8x8x128xbf16>
    %c0_51 = arith.constant 0 : index
    %c0_52 = arith.constant 0 : index
    %c1 = arith.constant 1 : index
    %c0_53 = arith.constant 0 : index
    %c0_54 = arith.constant 0 : index
    %85 = vector.load %arg11[%c0_51, %c0_52, %c1, %c0_53, %c0_54] : memref<1x8x2x8x128xbf16, #tpu.memory_space<vmem>>, vector<1x8x1x8x128xbf16>
    %86 = vector.shape_cast %85 : vector<1x8x1x8x128xbf16> to vector<8x8x128xbf16>
    %87 = vector.shape_cast %84 : vector<8x8x128xbf16> to vector<1x8x1x8x128xbf16>
    tpu.vector_store %arg11[%c0_51, %c0_52, %c1, %c0_53, %c0_54], %87 {strides = array<i32>} : memref<1x8x2x8x128xbf16, #tpu.memory_space<vmem>>, vector<1x8x1x8x128xbf16>,
    return
  }
  func.func @transform_0(%arg0: i32, %arg1: i32) -> (i32, i32, i32, i32) {
    %c0_i32 = arith.constant 0 : i32
    %c0_i32_0 = arith.constant 0 : i32
    %c0_i32_1 = arith.constant 0 : i32
    return %arg0, %arg1, %c0_i32, %c0_i32_0 : i32, i32, i32, i32
  }
  func.func @transform_1(%arg0: i32, %arg1: i32) -> (i32, i32, i32, i32) {
    %c1_i32 = arith.constant 1 : i32
    %0 = arith.addi %arg1, %c1_i32 : i32
    %c8_i32 = arith.constant 8 : i32
    %1 = arith.muli %0, %c8_i32 : i32
    %c7_i32 = arith.constant 7 : i32
    %2 = arith.minsi %1, %c7_i32 : i32
    %c0_i32 = arith.constant 0 : i32
    %c0_i32_0 = arith.constant 0 : i32
    %c0_i32_1 = arith.constant 0 : i32
    return %arg0, %2, %c0_i32, %c0_i32_0 : i32, i32, i32, i32
  }
  func.func @transform_2(%arg0: i32, %arg1: i32) -> (i32, i32, i32) {
    %c0_i32 = arith.constant 0 : i32
    %c0_i32_0 = arith.constant 0 : i32
    %c0_i32_1 = arith.constant 0 : i32
    %c0_i32_2 = arith.constant 0 : i32
    return %c0_i32, %c0_i32_0, %c0_i32_1 : i32, i32, i32
  }
  func.func @transform_3(%arg0: i32, %arg1: i32) -> (i32, i32, i32) {
    %c0_i32 = arith.constant 0 : i32
    %c0_i32_0 = arith.constant 0 : i32
    %c0_i32_1 = arith.constant 0 : i32
    %c0_i32_2 = arith.constant 0 : i32
    return %c0_i32, %c0_i32_0, %c0_i32_1 : i32, i32, i32
  }
  func.func @transform_4(%arg0: i32, %arg1: i32) -> (i32, i32, i32, i32) {
    %c0_i32 = arith.constant 0 : i32
    %c0_i32_0 = arith.constant 0 : i32
    %c0_i32_1 = arith.constant 0 : i32
    return %arg0, %arg1, %c0_i32, %c0_i32_0 : i32, i32, i32, i32
  }
  func.func @transform_5(%arg0: i32, %arg1: i32) -> (i32, i32, i32, i32) {
    %c1_i32 = arith.constant 1 : i32
    %0 = arith.addi %arg1, %c1_i32 : i32
    %c8_i32 = arith.constant 8 : i32
    %1 = arith.muli %0, %c8_i32 : i32
    %c7_i32 = arith.constant 7 : i32
    %2 = arith.minsi %1, %c7_i32 : i32
    %c0_i32 = arith.constant 0 : i32
    %c0_i32_0 = arith.constant 0 : i32
    %c0_i32_1 = arith.constant 0 : i32
    return %arg0, %2, %c0_i32, %c0_i32_0 : i32, i32, i32, i32
  }
  func.func @transform_6(%arg0: i32, %arg1: i32) -> (i32, i32) {
    %c0_i32 = arith.constant 0 : i32
    %c0_i32_0 = arith.constant 0 : i32
    %c0_i32_1 = arith.constant 0 : i32
    return %c0_i32, %c0_i32_0 : i32, i32
  }
  func.func @transform_7(%arg0: i32, %arg1: i32) -> (i32, i32) {
    %c0_i32 = arith.constant 0 : i32
    %c0_i32_0 = arith.constant 0 : i32
    %c0_i32_1 = arith.constant 0 : i32
    return %c0_i32, %c0_i32_0 : i32, i32
  }
  func.func @transform_8(%arg0: i32, %arg1: i32) -> (i32, i32) {
    %c0_i32 = arith.constant 0 : i32
    %c0_i32_0 = arith.constant 0 : i32
    %c0_i32_1 = arith.constant 0 : i32
    return %c0_i32, %c0_i32_0 : i32, i32
  }
  func.func @transform_9(%arg0: i32, %arg1: i32) -> (i32, i32, i32, i32, i32) {
    %c0_i32 = arith.constant 0 : i32
    %c0_i32_0 = arith.constant 0 : i32
    %c0_i32_1 = arith.constant 0 : i32
    %c0_i32_2 = arith.constant 0 : i32
    return %arg0, %arg1, %c0_i32, %c0_i32_0, %c0_i32_1 : i32, i32, i32, i32, i32
  }
  func.func @transform_10(%arg0: i32, %arg1: i32) -> (i32, i32, i32, i32) {
    %c0_i32 = arith.constant 0 : i32
    %c0_i32_0 = arith.constant 0 : i32
    %c0_i32_1 = arith.constant 0 : i32
    return %arg0, %arg1, %c0_i32, %c0_i32_0 : i32, i32, i32, i32
  }
  func.func @transform_11(%arg0: i32, %arg1: i32) -> (i32, i32, i32, i32) {
    %c0_i32 = arith.constant 0 : i32
    %c0_i32_0 = arith.constant 0 : i32
    %c0_i32_1 = arith.constant 0 : i32
    return %arg0, %arg1, %c0_i32, %c0_i32_0 : i32, i32, i32, i32
  }
}

module attributes {stable_mosaic.version = 11 : i64} {
  func.func @kernel(%arg0: i32, %arg1: i32, %arg2: memref<1x16x16x64xbf16, #tpu.memory_space<vmem>>, %arg3: memref<1x1x16x64xbf16, #tpu.memory_space<vmem>>, %arg4: memref<1x1x64xf32, #tpu.memory_space<vmem>>, %arg5: memref<1x1x64xf32, #tpu.memory_space<vmem>>, %arg6: memref<1x16x16x64xf32, #tpu.memory_space<vmem>>, %arg7: memref<1x1x16x64xf32, #tpu.memory_space<vmem>>, %arg8: memref<256x128xbf16, #tpu.memory_space<vmem>>, %arg9: memref<512x128xbf16, #tpu.memory_space<vmem>>, %arg10: memref<1x128xf32, #tpu.memory_space<vmem>>, %arg11: memref<1x16x2x16x128xbf16, #tpu.memory_space<vmem>>, %arg12: memref<1x1x1x128xf32, #tpu.memory_space<vmem>>, %arg13: memref<1x1x1x128xf32, #tpu.memory_space<vmem>>) attributes {dimension_semantics = [#tpu.dimension_semantics<parallel>, #tpu.dimension_semantics<parallel>], iteration_bounds = array<i64: 2, 1>, scalar_prefetch = 0 : i64, scratch_operands = 0 : i64, tpu.core_type = #tpu.core_type<tc>, window_params = [{transform_indices = @transform_0, window_bounds = array<i64: 1, 16, 16, 64>}, {transform_indices = @transform_1, window_bounds = array<i64: 1, 1, 16, 64>}, {pipeline_mode = #tpu.pipeline_mode<synchronous>, transform_indices = @transform_2, window_bounds = array<i64: 1, 1, 64>}, {pipeline_mode = #tpu.pipeline_mode<synchronous>, transform_indices = @transform_3, window_bounds = array<i64: 1, 1, 64>}, {transform_indices = @transform_4, window_bounds = array<i64: 1, 16, 16, 64>}, {transform_indices = @transform_5, window_bounds = array<i64: 1, 1, 16, 64>}, {pipeline_mode = #tpu.pipeline_mode<synchronous>, transform_indices = @transform_6, window_bounds = array<i64: 256, 128>}, {pipeline_mode = #tpu.pipeline_mode<synchronous>, transform_indices = @transform_7, window_bounds = array<i64: 512, 128>}, {pipeline_mode = #tpu.pipeline_mode<synchronous>, transform_indices = @transform_8, window_bounds = array<i64: 1, 128>}, {transform_indices = @transform_9, window_bounds = array<i64: 1, 16, 2, 16, 128>}, {transform_indices = @transform_10, window_bounds = array<i64: 1, 1, 1, 128>}, {transform_indices = @transform_11, window_bounds = array<i64: 1, 1, 1, 128>}]} {
    %c0_i32 = arith.constant 0 : i32
    %0 = arith.cmpi eq, %arg1, %c0_i32 : i32
    %c0 = arith.constant 0 : index
    %c0_0 = arith.constant 0 : index
    %c0_1 = arith.constant 0 : index
    %1 = vector.load %arg4[%c0, %c0_0, %c0_1] : memref<1x1x64xf32, #tpu.memory_space<vmem>>, vector<1x1x64xf32>
    %c0_2 = arith.constant 0 : index
    %c0_3 = arith.constant 0 : index
    %c0_4 = arith.constant 0 : index
    %2 = vector.load %arg5[%c0_2, %c0_3, %c0_4] : memref<1x1x64xf32, #tpu.memory_space<vmem>>, vector<1x1x64xf32>
    %c0_5 = arith.constant 0 : index
    %c0_6 = arith.constant 0 : index
    %c0_7 = arith.constant 0 : index
    %c0_8 = arith.constant 0 : index
    %3 = vector.load %arg2[%c0_5, %c0_6, %c0_7, %c0_8] : memref<1x16x16x64xbf16, #tpu.memory_space<vmem>>, vector<1x16x16x64xbf16>
    %4 = vector.shape_cast %3 : vector<1x16x16x64xbf16> to vector<16x16x64xbf16>
    %5 = arith.extf %4 : vector<16x16x64xbf16> to vector<16x16x64xf32>
    %c0_9 = arith.constant 0 : index
    %c0_10 = arith.constant 0 : index
    %c0_11 = arith.constant 0 : index
    %c0_12 = arith.constant 0 : index
    %6 = vector.load %arg3[%c0_9, %c0_10, %c0_11, %c0_12] : memref<1x1x16x64xbf16, #tpu.memory_space<vmem>>, vector<1x1x16x64xbf16>
    %7 = vector.shape_cast %6 : vector<1x1x16x64xbf16> to vector<1x16x64xbf16>
    %8 = arith.extf %7 : vector<1x16x64xbf16> to vector<1x16x64xf32>
    %9 = vector.broadcast %1 : vector<1x1x64xf32> to vector<16x16x64xf32>
    %10 = arith.mulf %5, %9 : vector<16x16x64xf32>
    %11 = vector.broadcast %2 : vector<1x1x64xf32> to vector<16x16x64xf32>
    %12 = arith.addf %10, %11 : vector<16x16x64xf32>
    %13 = vector.broadcast %1 : vector<1x1x64xf32> to vector<1x16x64xf32>
    %14 = arith.mulf %8, %13 : vector<1x16x64xf32>
    %15 = vector.broadcast %2 : vector<1x1x64xf32> to vector<1x16x64xf32>
    %16 = arith.addf %14, %15 : vector<1x16x64xf32>
    %cst = arith.constant 0.000000e+00 : f32
    %17 = vector.broadcast %cst : f32 to vector<1x16x64xf32>
    %18 = arith.select %0, %17, %16 : vector<1x16x64xf32>
    %19 = tpu.concatenate %12, %18 in 0 : vector<16x16x64xf32>, vector<1x16x64xf32> -> vector<17x16x64xf32>
    %20 = arith.truncf %19 : vector<17x16x64xf32> to vector<17x16x64xbf16>
    %cst_13 = arith.constant 0.000000e+00 : bf16
    %21 = vector.broadcast %cst_13 : bf16 to vector<17x1x64xbf16>
    %22 = vector.extract_strided_slice %20 {offsets = [0, 1, 0], sizes = [17, 15, 64], strides = [1, 1, 1]} : vector<17x16x64xbf16> to vector<17x15x64xbf16>
    %23 = tpu.concatenate %22, %21 in 1 : vector<17x15x64xbf16>, vector<17x1x64xbf16> -> vector<17x16x64xbf16>
    %24 = vector.extract_strided_slice %20 {offsets = [0, 0, 0], sizes = [16, 16, 64], strides = [1, 1, 1]} : vector<17x16x64xbf16> to vector<16x16x64xbf16>
    %25 = vector.extract_strided_slice %23 {offsets = [0, 0, 0], sizes = [16, 16, 64], strides = [1, 1, 1]} : vector<17x16x64xbf16> to vector<16x16x64xbf16>
    %26 = vector.extract_strided_slice %20 {offsets = [1, 0, 0], sizes = [16, 16, 64], strides = [1, 1, 1]} : vector<17x16x64xbf16> to vector<16x16x64xbf16>
    %27 = vector.extract_strided_slice %23 {offsets = [1, 0, 0], sizes = [16, 16, 64], strides = [1, 1, 1]} : vector<17x16x64xbf16> to vector<16x16x64xbf16>
    %c0_14 = arith.constant 0 : index
    %c0_15 = arith.constant 0 : index
    %c0_16 = arith.constant 0 : index
    %c0_17 = arith.constant 0 : index
    %28 = vector.load %arg6[%c0_14, %c0_15, %c0_16, %c0_17] : memref<1x16x16x64xf32, #tpu.memory_space<vmem>>, vector<1x16x16x64xf32>
    %29 = vector.shape_cast %28 : vector<1x16x16x64xf32> to vector<16x16x64xf32>
    %c0_18 = arith.constant 0 : index
    %c0_19 = arith.constant 0 : index
    %c0_20 = arith.constant 0 : index
    %c0_21 = arith.constant 0 : index
    %30 = vector.load %arg7[%c0_18, %c0_19, %c0_20, %c0_21] : memref<1x1x16x64xf32, #tpu.memory_space<vmem>>, vector<1x1x16x64xf32>
    %31 = vector.shape_cast %30 : vector<1x1x16x64xf32> to vector<1x16x64xf32>
    %cst_22 = arith.constant 0.000000e+00 : f32
    %32 = vector.broadcast %cst_22 : f32 to vector<1x16x64xf32>
    %33 = arith.select %0, %32, %31 : vector<1x16x64xf32>
    %34 = tpu.concatenate %29, %33 in 0 : vector<16x16x64xf32>, vector<1x16x64xf32> -> vector<17x16x64xf32>
    %35 = arith.truncf %34 : vector<17x16x64xf32> to vector<17x16x64xbf16>
    %cst_23 = arith.constant 0.000000e+00 : bf16
    %36 = vector.broadcast %cst_23 : bf16 to vector<17x1x64xbf16>
    %37 = vector.extract_strided_slice %35 {offsets = [0, 1, 0], sizes = [17, 15, 64], strides = [1, 1, 1]} : vector<17x16x64xbf16> to vector<17x15x64xbf16>
    %38 = tpu.concatenate %37, %36 in 1 : vector<17x15x64xbf16>, vector<17x1x64xbf16> -> vector<17x16x64xbf16>
    %39 = vector.extract_strided_slice %35 {offsets = [0, 0, 0], sizes = [16, 16, 64], strides = [1, 1, 1]} : vector<17x16x64xbf16> to vector<16x16x64xbf16>
    %40 = vector.extract_strided_slice %38 {offsets = [0, 0, 0], sizes = [16, 16, 64], strides = [1, 1, 1]} : vector<17x16x64xbf16> to vector<16x16x64xbf16>
    %41 = vector.extract_strided_slice %35 {offsets = [1, 0, 0], sizes = [16, 16, 64], strides = [1, 1, 1]} : vector<17x16x64xbf16> to vector<16x16x64xbf16>
    %42 = vector.extract_strided_slice %38 {offsets = [1, 0, 0], sizes = [16, 16, 64], strides = [1, 1, 1]} : vector<17x16x64xbf16> to vector<16x16x64xbf16>
    %c0_24 = arith.constant 0 : index
    %c0_25 = arith.constant 0 : index
    %43 = vector.load %arg10[%c0_24, %c0_25] : memref<1x128xf32, #tpu.memory_space<vmem>>, vector<1x128xf32>
    %44 = tpu.concatenate %24, %25, %39, %40 in 2 : vector<16x16x64xbf16>, vector<16x16x64xbf16>, vector<16x16x64xbf16>, vector<16x16x64xbf16> -> vector<16x16x256xbf16>
    %45 = vector.shape_cast %44 : vector<16x16x256xbf16> to vector<256x256xbf16>
    %c0_26 = arith.constant 0 : index
    %c0_27 = arith.constant 0 : index
    %46 = vector.load %arg8[%c0_26, %c0_27] : memref<256x128xbf16, #tpu.memory_space<vmem>>, vector<256x128xbf16>
    %cst_28 = arith.constant dense<0.000000e+00> : vector<256x128xf32>
    %47 = tpu.matmul %45, %46, %cst_28 {dimension_numbers = #tpu.dot_dimension_numbers<[1], [0], [0], [1], [0, 0, 1, 1], [], []>} : vector<256x256xbf16>, vector<256x128xbf16>, vector<256x128xf32> -> vector<256x128xf32>
    %48 = vector.broadcast %43 : vector<1x128xf32> to vector<256x128xf32>
    %49 = arith.addf %48, %47 : vector<256x128xf32>
    %50 = tpu.concatenate %24, %25, %26, %27, %39, %40, %41, %42 in 2 : vector<16x16x64xbf16>, vector<16x16x64xbf16>, vector<16x16x64xbf16>, vector<16x16x64xbf16>, vector<16x16x64xbf16>, vector<16x16x64xbf16>, vector<16x16x64xbf16>, vector<16x16x64xbf16> -> vector<16x16x512xbf16>
    %51 = vector.shape_cast %50 : vector<16x16x512xbf16> to vector<256x512xbf16>
    %c0_29 = arith.constant 0 : index
    %c0_30 = arith.constant 0 : index
    %52 = vector.load %arg9[%c0_29, %c0_30] : memref<512x128xbf16, #tpu.memory_space<vmem>>, vector<512x128xbf16>
    %cst_31 = arith.constant dense<0.000000e+00> : vector<256x128xf32>
    %53 = tpu.matmul %51, %52, %cst_31 {dimension_numbers = #tpu.dot_dimension_numbers<[1], [0], [0], [1], [0, 0, 1, 1], [], []>} : vector<256x512xbf16>, vector<512x128xbf16>, vector<256x128xf32> -> vector<256x128xf32>
    %54 = vector.broadcast %43 : vector<1x128xf32> to vector<256x128xf32>
    %55 = arith.addf %54, %53 : vector<256x128xf32>
    %cst_32 = arith.constant 0.000000e+00 : f32
    %56 = vector.broadcast %cst_32 : f32 to vector<256x128xf32>
    %57 = arith.maximumf %49, %56 : vector<256x128xf32>
    %cst_33 = arith.constant 0.000000e+00 : f32
    %58 = vector.broadcast %cst_33 : f32 to vector<256x128xf32>
    %59 = arith.maximumf %55, %58 : vector<256x128xf32>
    %cst_34 = arith.constant dense<0.000000e+00> : vector<128xf32>
    %60 = vector.multi_reduction <add>, %57, %cst_34 [0] : vector<256x128xf32> to vector<128xf32>
    %61 = vector.shape_cast %60 : vector<128xf32> to vector<1x128xf32>
    %cst_35 = arith.constant dense<0.000000e+00> : vector<128xf32>
    %62 = vector.multi_reduction <add>, %59, %cst_35 [0] : vector<256x128xf32> to vector<128xf32>
    %63 = vector.shape_cast %62 : vector<128xf32> to vector<1x128xf32>
    %64 = arith.addf %61, %63 : vector<1x128xf32>
    %c0_36 = arith.constant 0 : index
    %c0_37 = arith.constant 0 : index
    %c0_38 = arith.constant 0 : index
    %c0_39 = arith.constant 0 : index
    %65 = vector.load %arg12[%c0_36, %c0_37, %c0_38, %c0_39] : memref<1x1x1x128xf32, #tpu.memory_space<vmem>>, vector<1x1x1x128xf32>
    %66 = vector.shape_cast %65 : vector<1x1x1x128xf32> to vector<1x128xf32>
    %67 = vector.shape_cast %64 : vector<1x128xf32> to vector<1x1x1x128xf32>
    tpu.vector_store %arg12[%c0_36, %c0_37, %c0_38, %c0_39], %67 {strides = array<i32>} : memref<1x1x1x128xf32, #tpu.memory_space<vmem>>, vector<1x1x1x128xf32>,
    %68 = arith.mulf %57, %57 : vector<256x128xf32>
    %cst_40 = arith.constant dense<0.000000e+00> : vector<128xf32>
    %69 = vector.multi_reduction <add>, %68, %cst_40 [0] : vector<256x128xf32> to vector<128xf32>
    %70 = vector.shape_cast %69 : vector<128xf32> to vector<1x128xf32>
    %71 = arith.mulf %59, %59 : vector<256x128xf32>
    %cst_41 = arith.constant dense<0.000000e+00> : vector<128xf32>
    %72 = vector.multi_reduction <add>, %71, %cst_41 [0] : vector<256x128xf32> to vector<128xf32>
    %73 = vector.shape_cast %72 : vector<128xf32> to vector<1x128xf32>
    %74 = arith.addf %70, %73 : vector<1x128xf32>
    %c0_42 = arith.constant 0 : index
    %c0_43 = arith.constant 0 : index
    %c0_44 = arith.constant 0 : index
    %c0_45 = arith.constant 0 : index
    %75 = vector.load %arg13[%c0_42, %c0_43, %c0_44, %c0_45] : memref<1x1x1x128xf32, #tpu.memory_space<vmem>>, vector<1x1x1x128xf32>
    %76 = vector.shape_cast %75 : vector<1x1x1x128xf32> to vector<1x128xf32>
    %77 = vector.shape_cast %74 : vector<1x128xf32> to vector<1x1x1x128xf32>
    tpu.vector_store %arg13[%c0_42, %c0_43, %c0_44, %c0_45], %77 {strides = array<i32>} : memref<1x1x1x128xf32, #tpu.memory_space<vmem>>, vector<1x1x1x128xf32>,
    %78 = vector.shape_cast %57 : vector<256x128xf32> to vector<16x16x128xf32>
    %79 = arith.truncf %78 : vector<16x16x128xf32> to vector<16x16x128xbf16>
    %c0_46 = arith.constant 0 : index
    %c0_47 = arith.constant 0 : index
    %c0_48 = arith.constant 0 : index
    %c0_49 = arith.constant 0 : index
    %c0_50 = arith.constant 0 : index
    %80 = vector.load %arg11[%c0_46, %c0_47, %c0_48, %c0_49, %c0_50] : memref<1x16x2x16x128xbf16, #tpu.memory_space<vmem>>, vector<1x16x1x16x128xbf16>
    %81 = vector.shape_cast %80 : vector<1x16x1x16x128xbf16> to vector<16x16x128xbf16>
    %82 = vector.shape_cast %79 : vector<16x16x128xbf16> to vector<1x16x1x16x128xbf16>
    tpu.vector_store %arg11[%c0_46, %c0_47, %c0_48, %c0_49, %c0_50], %82 {strides = array<i32>} : memref<1x16x2x16x128xbf16, #tpu.memory_space<vmem>>, vector<1x16x1x16x128xbf16>,
    %83 = vector.shape_cast %59 : vector<256x128xf32> to vector<16x16x128xf32>
    %84 = arith.truncf %83 : vector<16x16x128xf32> to vector<16x16x128xbf16>
    %c0_51 = arith.constant 0 : index
    %c0_52 = arith.constant 0 : index
    %c1 = arith.constant 1 : index
    %c0_53 = arith.constant 0 : index
    %c0_54 = arith.constant 0 : index
    %85 = vector.load %arg11[%c0_51, %c0_52, %c1, %c0_53, %c0_54] : memref<1x16x2x16x128xbf16, #tpu.memory_space<vmem>>, vector<1x16x1x16x128xbf16>
    %86 = vector.shape_cast %85 : vector<1x16x1x16x128xbf16> to vector<16x16x128xbf16>
    %87 = vector.shape_cast %84 : vector<16x16x128xbf16> to vector<1x16x1x16x128xbf16>
    tpu.vector_store %arg11[%c0_51, %c0_52, %c1, %c0_53, %c0_54], %87 {strides = array<i32>} : memref<1x16x2x16x128xbf16, #tpu.memory_space<vmem>>, vector<1x16x1x16x128xbf16>,
    return
  }
  func.func @transform_0(%arg0: i32, %arg1: i32) -> (i32, i32, i32, i32) {
    %c0_i32 = arith.constant 0 : i32
    %c0_i32_0 = arith.constant 0 : i32
    %c0_i32_1 = arith.constant 0 : i32
    return %arg0, %arg1, %c0_i32, %c0_i32_0 : i32, i32, i32, i32
  }
  func.func @transform_1(%arg0: i32, %arg1: i32) -> (i32, i32, i32, i32) {
    %c1_i32 = arith.constant 1 : i32
    %0 = arith.addi %arg1, %c1_i32 : i32
    %c16_i32 = arith.constant 16 : i32
    %1 = arith.muli %0, %c16_i32 : i32
    %c15_i32 = arith.constant 15 : i32
    %2 = arith.minsi %1, %c15_i32 : i32
    %c0_i32 = arith.constant 0 : i32
    %c0_i32_0 = arith.constant 0 : i32
    %c0_i32_1 = arith.constant 0 : i32
    return %arg0, %2, %c0_i32, %c0_i32_0 : i32, i32, i32, i32
  }
  func.func @transform_2(%arg0: i32, %arg1: i32) -> (i32, i32, i32) {
    %c0_i32 = arith.constant 0 : i32
    %c0_i32_0 = arith.constant 0 : i32
    %c0_i32_1 = arith.constant 0 : i32
    %c0_i32_2 = arith.constant 0 : i32
    return %c0_i32, %c0_i32_0, %c0_i32_1 : i32, i32, i32
  }
  func.func @transform_3(%arg0: i32, %arg1: i32) -> (i32, i32, i32) {
    %c0_i32 = arith.constant 0 : i32
    %c0_i32_0 = arith.constant 0 : i32
    %c0_i32_1 = arith.constant 0 : i32
    %c0_i32_2 = arith.constant 0 : i32
    return %c0_i32, %c0_i32_0, %c0_i32_1 : i32, i32, i32
  }
  func.func @transform_4(%arg0: i32, %arg1: i32) -> (i32, i32, i32, i32) {
    %c0_i32 = arith.constant 0 : i32
    %c0_i32_0 = arith.constant 0 : i32
    %c0_i32_1 = arith.constant 0 : i32
    return %arg0, %arg1, %c0_i32, %c0_i32_0 : i32, i32, i32, i32
  }
  func.func @transform_5(%arg0: i32, %arg1: i32) -> (i32, i32, i32, i32) {
    %c1_i32 = arith.constant 1 : i32
    %0 = arith.addi %arg1, %c1_i32 : i32
    %c16_i32 = arith.constant 16 : i32
    %1 = arith.muli %0, %c16_i32 : i32
    %c15_i32 = arith.constant 15 : i32
    %2 = arith.minsi %1, %c15_i32 : i32
    %c0_i32 = arith.constant 0 : i32
    %c0_i32_0 = arith.constant 0 : i32
    %c0_i32_1 = arith.constant 0 : i32
    return %arg0, %2, %c0_i32, %c0_i32_0 : i32, i32, i32, i32
  }
  func.func @transform_6(%arg0: i32, %arg1: i32) -> (i32, i32) {
    %c0_i32 = arith.constant 0 : i32
    %c0_i32_0 = arith.constant 0 : i32
    %c0_i32_1 = arith.constant 0 : i32
    return %c0_i32, %c0_i32_0 : i32, i32
  }
  func.func @transform_7(%arg0: i32, %arg1: i32) -> (i32, i32) {
    %c0_i32 = arith.constant 0 : i32
    %c0_i32_0 = arith.constant 0 : i32
    %c0_i32_1 = arith.constant 0 : i32
    return %c0_i32, %c0_i32_0 : i32, i32
  }
  func.func @transform_8(%arg0: i32, %arg1: i32) -> (i32, i32) {
    %c0_i32 = arith.constant 0 : i32
    %c0_i32_0 = arith.constant 0 : i32
    %c0_i32_1 = arith.constant 0 : i32
    return %c0_i32, %c0_i32_0 : i32, i32
  }
  func.func @transform_9(%arg0: i32, %arg1: i32) -> (i32, i32, i32, i32, i32) {
    %c0_i32 = arith.constant 0 : i32
    %c0_i32_0 = arith.constant 0 : i32
    %c0_i32_1 = arith.constant 0 : i32
    %c0_i32_2 = arith.constant 0 : i32
    return %arg0, %arg1, %c0_i32, %c0_i32_0, %c0_i32_1 : i32, i32, i32, i32, i32
  }
  func.func @transform_10(%arg0: i32, %arg1: i32) -> (i32, i32, i32, i32) {
    %c0_i32 = arith.constant 0 : i32
    %c0_i32_0 = arith.constant 0 : i32
    %c0_i32_1 = arith.constant 0 : i32
    return %arg0, %arg1, %c0_i32, %c0_i32_0 : i32, i32, i32, i32
  }
  func.func @transform_11(%arg0: i32, %arg1: i32) -> (i32, i32, i32, i32) {
    %c0_i32 = arith.constant 0 : i32
    %c0_i32_0 = arith.constant 0 : i32
    %c0_i32_1 = arith.constant 0 : i32
    return %arg0, %arg1, %c0_i32, %c0_i32_0 : i32, i32, i32, i32
  }
}

</mosaic_0001>

<bundles_post_ra>
// kernel: up_forward.3
= control target key start
LH: loop header
LB: loop body
LE: loop exit
PB: predicated region body
PF: predicated region fallthrough
CT: control target
= control target key end

     0   :  { %s2142_s0 = inlined_call_operand.hbm [shape: f32[2,4,4,16], index: 0, kind: input, shape index: {}, may-alias: {0,1}]   ;;  %s2143_s1 = inlined_call_operand.hbm [shape: f32[2,4,4,16], index: 1, kind: input, shape index: {}, may-alias: {0,1}]   ;;  %s2144_s2 = inlined_call_operand.hbm [shape: bf16[32,256], index: 2, kind: input, shape index: {}]   ;;  %s2145_s3 = inlined_call_operand.hbm [shape: bf16[64,256], index: 3, kind: input, shape index: {}]   ;;  %s2146_s4 = inlined_call_operand.hbm [shape: f32[1,256], index: 4, kind: input, shape index: {}]   ;;  %s2147_s5 = inlined_call_operand.vmem [shape: bf16[2,4,2,4,256], index: 5, kind: output, shape index: {0}]   ;;  %s2148_s6 = inlined_call_operand.vmem [shape: f32[2,1,1,256], index: 6, kind: output, shape index: {1}]   ;;  %s2149_s7 = inlined_call_operand.vmem [shape: f32[2,1,1,256], index: 7, kind: output, shape index: {2}]  }
   0x1   :  { %2155 = sst [smem:[#allocation14_spill]] %s2142_s0 }
   0x2   :  { %2156 = sst [smem:[#allocation15_spill]] %s2144_s2 }
   0x3   :  { %2157 = sst [smem:[#allocation16_spill]] %s2145_s3 }
   0x4   :  { %2158 = sst [smem:[#allocation17_spill]] %s2146_s4 }
   0x5   :  { %2159 = sst [smem:[#allocation18_spill]] %s2149_s7 }
   0x6   :  { %13 = vsyncpa [#allocation3], 0 }
   0x7   :  { %15 = vsyncpa [#allocation3 + $0x1], 0 }
   0x8   :  { %16 = vsyncpa [#allocation5], 0 }
   0x9   :  { %18 = vsyncpa [#allocation5 + $0x1], 0 }
   0xa   :  { %19 = vsyncpa [#allocation8], 0  ;;  %s1794_s24 = smov 0   ;;  %s1796_s25 = smov 0  }
   0xb   :  { %s1798_s26 = smov 0   ;;  %s1800_s27 = smov 0  }
   0xc   :  { %s1802_s28 = smov 0   ;;  %s1804_s29 = smov 0  }
   0xd LB: > { %s2152_s30 = sadd.s32 4294967295, %s1736_s29   ;;  %p59_p0 = scmp.ne.s32.totalorder %s1720_s25, %s1716_s24  ;;  %s1736_s29 = sphi %s1804_s29, %s25_s29   ;;  %s1732_s28 = sphi %s1802_s28, %s2182_s28   ;;  %s1728_s27 = sphi %s1800_s27, %s2181_s27   ;;  %s1724_s26 = sphi %s1798_s26, %s2180_s26   ;;  %s1720_s25 = sphi %s1796_s25, %s2179_s25   ;;  %s1716_s24 = sphi %s1794_s24, %s2178_s24  }
   0xe   : > { %p1826_p1 = scmp.eq.s32.totalorder %s2152_s30, 0  ;;  %p1340_p2 = scmp.ge.s32.totalorder %s1736_s29, 1 }
   0xf   : > { %p253_p3 = scmp.lt.s32.totalorder %s1736_s29, 3  ;;  %s1738_s11 = smov [#allocation6]  }
  0x10   : > { %s2160_s8 = scalar_select %p1826_p1, 1, 0 }
  0x11   : > { %p1834_p4 = por %p1826_p1, %p59_p0  ;;  %p1838_p5 = pnand %p1340_p2, %p253_p3 }
  0x12   : > { %s265_s12 = sshll.u32 %s1738_s11, 4  ;;  %s1739_s14 = smov [#allocation7]   ;;  %s1842_s12 = int_to_ptr.vmem [resolvable:$true] %s265_s12 }
  0x13   : > { %s2161_s9 = scalar_select %p1834_p4, 1, 0 }
  0x14   : > { %s2162_s10 = scalar_select %p1838_p5, 1, 0 }
  0x15   : > { %p1426_p6 = pneg %p1838_p5  ;;  %s278_s15 = sshll.u32 %s1739_s14, 4  ;;  %s1852_s15 = int_to_ptr.vmem [resolvable:$true] %s278_s15 }
  0x16   : > { %s1740_s16 = smov [#allocation9]   ;;  %s2164_s2 = sld [smem:[#allocation15_spill]] }
  0x17   : > { %p1848_p7 = pnand %p1426_p6, %p1826_p1  ;;  %s1854_s17 = sshll.u32 %s1740_s16, 4  ;;  %s293_s17 = int_to_ptr.vmem [resolvable:$true] %s1854_s17 }
  0x19   : > { %p1864_p9 = pneg %p1848_p7 }
  0x1c   : > { %s1530_s20 = scalar_lea.hbm %s2164_s2, 512 }
  0x1d   : > { %p1531_p8 = scmp.ne.s32.totalorder %s2164_s2, %s1530_s20  ;;  %p1537_p12 = scmp.lt.u32.totalorder %s1530_s20, %s2164_s2 }
  0x1f   : > { %p1533_p10 = pnand %p1864_p9, %p1531_p8 }
  0x21   : > { %p1534_p11 = pneg %p1533_p10 }
  0x23   : > { %p1539_p13 = pnand %p1537_p12, %p1534_p11 }
  0x25   : > { %1542 = shalt.err (!%p1539_p13)
}
  0x26   : > { %s1543_s14 = scalar_lea.vmem %s1842_s12, 512  ;;  %p1551_p6 = scmp.lt.s32.totalorder %s1842_s12, %s1842_s12 }
  0x27   : > { %p1544_p0 = scmp.ne.s32.totalorder %s1842_s12, %s1543_s14  ;;  %p1552_p1 = scmp.lt.s32.totalorder %s1543_s14, %s1543_s14 }
  0x29   : > { %p1546_p2 = pnand %p1544_p0, %p1864_p9  ;;  %p1553_p8 = por %p1552_p1, %p1551_p6 }
  0x2b   : > { %p1547_p3 = pneg %p1546_p2 }
  0x2d   : > { %p1554_p10 = pnand %p1553_p8, %p1547_p3 }
  0x2f   : > { %1557 = shalt.err (!%p1554_p10)
}
  0x30   : > { %s1741_s16 = smov 128   ;;  %s1742_s18 = smov 8  }
  0x31   : > { %1429 = dma.hbm_to_vmem [thread:$0]  (!%p1848_p7), %s2164_s2, 512, %s1842_s12, [#allocation5], %s1741_s16, %s1741_s16, %s1742_s18  }
  0x32   : > { %s2166_s3 = sld [smem:[#allocation16_spill]] }
  0x38   : > { %s1558_s24 = scalar_lea.hbm %s2166_s3, 1024 }
  0x39   : > { %p1559_p1 = scmp.ne.s32.totalorder %s2166_s3, %s1558_s24  ;;  %p1565_p13 = scmp.lt.u32.totalorder %s1558_s24, %s2166_s3 }
  0x3b   : > { %p1561_p11 = pnand %p1559_p1, %p1864_p9 }
  0x3d   : > { %p1562_p12 = pneg %p1561_p11 }
  0x3f   : > { %p1567_p0 = pnand %p1565_p13, %p1562_p12 }
  0x41   : > { %1570 = shalt.err (!%p1567_p0)
}
  0x42   : > { %s1571_s12 = scalar_lea.vmem %s1852_s15, 1024  ;;  %p1579_p8 = scmp.lt.s32.totalorder %s1852_s15, %s1852_s15 }
  0x43   : > { %p1572_p2 = scmp.ne.s32.totalorder %s1852_s15, %s1571_s12  ;;  %p1580_p10 = scmp.lt.s32.totalorder %s1571_s12, %s1571_s12 }
  0x45   : > { %p1574_p3 = pnand %p1572_p2, %p1864_p9  ;;  %p1581_p1 = por %p1580_p10, %p1579_p8 }
  0x47   : > { %p1575_p6 = pneg %p1574_p3 }
  0x49   : > { %p1582_p11 = pnand %p1581_p1, %p1575_p6 }
  0x4b   : > { %1585 = shalt.err (!%p1582_p11)
}
  0x4c   : > { %1432 = dma.hbm_to_vmem [thread:$0]  (!%p1848_p7), %s2166_s3, 1024, %s1852_s15, [#allocation8], %s1741_s16, %s1741_s16, %s1742_s18  }
  0x4d   : > { %s2167_s4 = sld [smem:[#allocation17_spill]] }
  0x53   : > { %s1586_s21 = scalar_lea.hbm %s2167_s4, 32 }
  0x54   : > { %p1587_p12 = scmp.ne.s32.totalorder %s2167_s4, %s1586_s21  ;;  %p1593_p2 = scmp.lt.u32.totalorder %s1586_s21, %s2167_s4 }
  0x56   : > { %p1589_p13 = pnand %p1587_p12, %p1864_p9 }
  0x58   : > { %p1590_p0 = pneg %p1589_p13 }
  0x5a   : > { %p1595_p3 = pnand %p1593_p2, %p1590_p0 }
  0x5c   : > { %1598 = shalt.err (!%p1595_p3)
}
  0x5d   : > { %s1599_s12 = scalar_lea.vmem %s293_s17, 32  ;;  %p1607_p1 = scmp.lt.s32.totalorder %s293_s17, %s293_s17 }
  0x5e   : > { %p1600_p6 = scmp.ne.s32.totalorder %s293_s17, %s1599_s12  ;;  %p1608_p11 = scmp.lt.s32.totalorder %s1599_s12, %s1599_s12 }
  0x60   : > { %p1602_p8 = pnand %p1600_p6, %p1864_p9  ;;  %p1609_p4 = por %p1608_p11, %p1607_p1 }
  0x62   : > { %p1603_p10 = pneg %p1602_p8 }
  0x64   : > { %p1610_p5 = pnand %p1609_p4, %p1603_p10 }
  0x66   : > { %1613 = shalt.err (!%p1610_p5)
}
  0x67   : > { %1435 = dma.hbm_to_vmem [thread:$0]  (!%p1848_p7), %s2167_s4, 32, %s293_s17, [#allocation8]  }
  0x68   : > { %s46_s23 = sadd.s32 1, %s1724_s26  ;;  %s37_s18 = sadd.s32 1, %s1732_s28 }
  0x69   : > { %p53_p4 = scmp.ne.s32.totalorder %s1724_s26, %s1720_s25  ;;  %p39_p5 = scmp.ge.s32.totalorder %s37_s18, 2 }
  0x6a   : > { %p54_p9 = scmp.eq.s32.totalorder %s1736_s29, 0  ;;  %p1446_p12 = scmp.lt.s32.totalorder %s1736_s29, 2 }
  0x6b   : > { %s1934_s13 = sand.u32 1, %s1724_s26   ;;  %s2184_s18 = smov (%p39_p5, %s37_s18), 0 }
  0x6c   : > { %p55_p13 = por %p54_p9, %p53_p4  ;;  %s41_s7 = ssub.s32 %s1732_s28, %s2184_s18 }
  0x6d   : > { %s1345_s17 = sshll.u32 %s1934_s13, 4  ;;  %p44_p7 = scmp.eq.s32.totalorder %s41_s7, 0 }
  0x6e   : > { %s1401_s30 = sshll.u32 %s1732_s28, 8  ;;  %s307_s19 = scalar_lea.vmem [#allocation2], %s1345_s17 }
  0x6f   : > { %s316_s20 = sshll.u32 %s307_s19, 4  ;;  %s2168_s0 = sld [smem:[#allocation14_spill]]  ;;  %s1952_s20 = int_to_ptr.vmem [resolvable:$true] %s316_s20 }
  0x70   : > { %s1943_s21 = scalar_select %p44_p7, %s1724_s26, %s46_s23  }
  0x71   : > { %p1956_p0 = pnand %p1446_p12, %p55_p13  ;;  %s304_s15 = scalar_lea.sflag [#allocation3], %s1934_s13 }
  0x73   : > { %p1616_p3 = pneg %p1956_p0 }
  0x75   : > { %s1950_s11 = scalar_lea.hbm %s2168_s0, %s1401_s30  ;;  %s1619_s17 = scalar_lea.hbm %s2168_s0, 512 }
  0x76   : > { %s1614_s16 = scalar_lea.hbm %s1950_s11, 256  ;;  %p1620_p10 = scmp.lt.u32.totalorder %s1950_s11, %s2168_s0 }
  0x77   : > { %p1615_p2 = scmp.ne.s32.totalorder %s1950_s11, %s1614_s16  ;;  %p1621_p1 = scmp.lt.u32.totalorder %s1619_s17, %s1614_s16 }
  0x78   : > { %p1623_p4 = scmp.lt.u32.totalorder %s1614_s16, %s1950_s11 }
  0x79   : > { %p1617_p6 = pnand %p1616_p3, %p1615_p2  ;;  %p1622_p11 = por %p1621_p1, %p1620_p10 }
  0x7b   : > { %p1618_p8 = pneg %p1617_p6  ;;  %p1624_p5 = por %p1623_p4, %p1622_p11 }
  0x7d   : > { %p1625_p9 = pnand %p1624_p5, %p1618_p8 }
  0x7f   : > { %1628 = shalt.err (!%p1625_p9)
}
  0x80   : > { %s1629_s24 = scalar_lea.vmem %s1952_s20, 256  ;;  %s1743_s23 = smov [#allocation2]  }
  0x81   : > { %p1630_p12 = scmp.ne.s32.totalorder %s1952_s20, %s1629_s24  ;;  %s1634_s7 = sshll.u32 %s1743_s23, 4  ;;  %s1635_s7 = int_to_ptr.vmem [resolvable:$false] %s1634_s7 }
  0x82   : > { %s1636_s19 = scalar_lea.vmem %s1635_s7, 512  ;;  %p1637_p2 = scmp.lt.s32.totalorder %s1952_s20, %s1635_s7 }
  0x83   : > { %p1632_p13 = pnand %p1630_p12, %p1616_p3  ;;  %p1638_p6 = scmp.lt.s32.totalorder %s1636_s19, %s1629_s24 }
  0x85   : > { %p1633_p7 = pneg %p1632_p13  ;;  %p1639_p10 = por %p1638_p6, %p1637_p2 }
  0x87   : > { %p1640_p1 = pnand %p1639_p10, %p1633_p7 }
  0x89   : > { %1643 = shalt.err (!%p1640_p1)
}
  0x8a   : > { %s1744_s16 = smov 64   ;;  %s1745_s17 = smov 4  }
  0x8b   : > { %1439 = dma.hbm_to_vmem [thread:$0]  (!%p1956_p0), %s1950_s11, 256, %s1952_s20, %s304_s15, %s1744_s16, %s1744_s16, %s1745_s17  }
  0x8c   : > { %s1348_s22 = sshll.u32 %s1934_s13, 2  ;;  %s1403_s23 = sadd.s32 192, %s1401_s30 }
  0x8d   : > { %s1995_s19 = scalar_lea.hbm %s2143_s1, %s1403_s23  ;;  %s330_s12 = scalar_lea.vmem [#allocation4], %s1348_s22 }
  0x8e   : > { %s343_s0 = sshll.u32 %s330_s12, 4  ;;  %s2170_s2 = sand.u32 1, %s1736_s29   ;;  %s344_s0 = int_to_ptr.vmem [resolvable:$true] %s343_s0 }
  0x8f   : > { %s327_s3 = scalar_lea.sflag [#allocation5], %s2170_s2  ;;  %s1644_s4 = scalar_lea.hbm %s1995_s19, 64 }
  0x90   : > { %p1645_p8 = scmp.ne.s32.totalorder %s1995_s19, %s1644_s4  ;;  %s1649_s20 = scalar_lea.hbm %s2143_s1, 512 }
  0x91   : > { %p1650_p5 = scmp.lt.u32.totalorder %s1995_s19, %s2143_s1  ;;  %p1651_p9 = scmp.lt.u32.totalorder %s1649_s20, %s1644_s4 }
  0x92   : > { %p1647_p11 = pnand %p1645_p8, %p1616_p3  ;;  %p1653_p13 = scmp.lt.u32.totalorder %s1644_s4, %s1995_s19 }
  0x93   : > { %p1652_p12 = por %p1651_p9, %p1650_p5 }
  0x94   : > { %p1648_p4 = pneg %p1647_p11 }
  0x95   : > { %p1654_p7 = por %p1653_p13, %p1652_p12 }
  0x97   : > { %p1655_p2 = pnand %p1654_p7, %p1648_p4 }
  0x99   : > { %1658 = shalt.err (!%p1655_p2)
}
  0x9a   : > { %s1659_s2 = scalar_lea.vmem %s344_s0, 64  ;;  %s1746_s12 = smov [#allocation4]  }
  0x9b   : > { %p1660_p6 = scmp.ne.s32.totalorder %s344_s0, %s1659_s2  ;;  %s1664_s16 = sshll.u32 %s1746_s12, 4  ;;  %s1665_s16 = int_to_ptr.vmem [resolvable:$false] %s1664_s16 }
  0x9c   : > { %s1666_s17 = scalar_lea.vmem %s1665_s16, 128  ;;  %p1667_p8 = scmp.lt.s32.totalorder %s344_s0, %s1665_s16 }
  0x9d   : > { %p1662_p10 = pnand %p1660_p6, %p1616_p3  ;;  %p1668_p11 = scmp.lt.s32.totalorder %s1666_s17, %s1659_s2 }
  0x9f   : > { %p1663_p1 = pneg %p1662_p10  ;;  %p1669_p5 = por %p1668_p11, %p1667_p8 }
  0xa1   : > { %p1670_p9 = pnand %p1669_p5, %p1663_p1 }
  0xa3   : > { %1673 = shalt.err (!%p1670_p9)
}
  0xa4   : > { %1442 = dma.hbm_to_vmem [thread:$0]  (!%p1956_p0), %s1995_s19, 64, %s344_s0, %s327_s3  }
  0xa5   : > { %p2171_p4 = scmp.ne.s32.totalorder %s2162_s10, 0 }
  0xa6   : > { %s354_s4 = sand.u32 (!%p2171_p4), 1, %s1720_s25   ;;  %p2172_p3 = scmp.ne.s32.totalorder (!%p2171_p4), %s2161_s9, 0 }
  0xa7   : > { %352 = sbr.rel (%p2171_p4) target bundleno = 577 (0x241), region = 40  ;;  %s1352_s22 = sshll.u32 (!%p2171_p4), %s354_s4, 4 }
  0xa8   : > { %s355_s23 = scalar_lea.sflag (!%p2171_p4), [#allocation3], %s354_s4  ;;  %s358_s24 = scalar_lea.vmem (!%p2171_p4), [#allocation2], %s1352_s22 }
  0xae   : > { %1699 = dma.done.wait (%p2172_p3), %s355_s23, 256  }
  0xaf   : > { %1701 = vsyncadd (%p2172_p3), %s355_s23, 4294967040  ;;  %s2173_s7 = sadd.s32 4294967295, %s1736_s29  }
  0xb0   : > { %s363_s14 = sand.u32 1, %s2173_s7  }
  0xb1   : > { %s364_s13 = scalar_lea.sflag [#allocation5], %s363_s14 }
  0xb2   : > { %1703 = dma.done.wait (%p2172_p3), %s364_s13, 64  }
  0xb3   : > { %1705 = vsyncadd (%p2172_p3), %s364_s13, 4294967232  ;;  %p2174_p0 = scmp.ne.s32.totalorder %s2160_s8, 0 }
  0xb5   : > { %1707 = dma.done.wait (%p2174_p0), [#allocation5], 512  }
  0xb6   : > { %1709 = vsyncadd (%p2174_p0), [#allocation5], 4294966784 }
  0xb7   : > { %1711 = dma.done.wait (%p2174_p0), [#allocation8], 1056  }
  0xb8   : > { %1713 = vsyncadd (%p2174_p0), [#allocation8], 4294966240  ;;  %v1747_v0 = vmov 0.0|0.0   ;;  %s1748_s0 = smov 32   ;;  %v1749_v1 = vmov 0   ;;  %vm524_vm0 = vcmask 1041408   ;;  %v567_v50 = vlaneseq }
  0xb9   : > { %671 = vrot.lane.b32.xlu1 %v1747_v0, %s1748_s0  ;;  %635 = vmatprep.mubr.bf16.mxu0 %v1749_v1  ;;  %v471_v2 = vld [vmem:[%s358_s24 + $0x4] sm:$0xf]  ;;  %v472_v3 = vld [vmem:[%s358_s24 + $0x8] sm:$0xf]  ;;  %v473_v4 = vld [vmem:[%s358_s24 + $0xc] sm:$0xf] }
  0xba   : > { %804 = vmatprep.mubr.bf16.mxu1 %v1749_v1  ;;  %v2040_v5 = vpack.c.bf16 %v471_v2, %v471_v2  ;;  %v2042_v6 = vpack.c.bf16 %v472_v3, %v472_v3  ;;  %v2044_v7 = vpack.c.bf16 %v473_v4, %v473_v4  ;;  %v470_v8 = vld [vmem:[%s358_s24] sm:$0xf]  ;;  %vm525_vm1 = vsmask.f32 1280  ;;  %v1512_v10 = vld [vmem:[#allocation6 + $0x4] ss:$8 sps:$4 sm:$0xff]  }
  0xbb   : > { %v2046_v9 = vpack.c.bf16 %v470_v8, %v470_v8  ;;  %v1514_v15 = vld [vmem:[#allocation7 + $0x4] ss:$8 sps:$4 sm:$0xff]   ;;  %603 = vmatprep.subr.bf16.mxu0 %v1512_v10  ;;  %v1516_v20 = vld [vmem:[#allocation6] ss:$8 sps:$4 sm:$0xff]   ;;  %vm2062_vm2 = vmand %vm524_vm0, %vm525_vm1  ;;  %s1750_s3 = smov 16   ;;  %v517_v42 = vrot.slane %v1749_v1, 1 }
  0xbc   : > { %665 = vrot.lane.b32.xlu0 %v2040_v5, %s1748_s0  ;;  %v499_v11 = vshrl.u32 %v2042_v6, 16  ;;  %v501_v12 = vshll.u32 %v2042_v6, 16  ;;  %v506_v13 = vshrl.u32 %v2044_v7, 16  ;;  %v508_v14 = vshll.u32 %v2044_v7, 16  ;;  %772 = vmatprep.subr.bf16.mxu1 %v1514_v15  ;;  %v1517_v23 = vld [vmem:[#allocation7] ss:$8 sps:$4 sm:$0xff]  }
  0xbd   : > { %667 = vrot.lane.b32.xlu1 %v2042_v6, %s1748_s0  ;;  %v485_v16 = vshrl.u32 %v2046_v9, 16  ;;  %v487_v17 = vshll.u32 %v2046_v9, 16  ;;  %v492_v18 = vshrl.u32 %v2040_v5, 16  ;;  %v494_v19 = vshll.u32 %v2040_v5, 16  ;;  %604 = vmatpush1.bf16.msra.mxu0 %v1516_v20  ;;  %v1518_v27 = vld [vmem:[#allocation6 + $0x14] ss:$8 sps:$4 sm:$0xff]  }
  0xbe   : > { %v503_v21 = vrot.slane %v501_v12, 1  ;;  %v510_v22 = vrot.slane %v508_v14, 1  ;;  %773 = vmatpush1.bf16.msra.mxu1 %v1517_v23  ;;  %v1520_v30 = vld [vmem:[#allocation7 + $0x14] ss:$8 sps:$4 sm:$0xff]   ;;  %v1522_v31 = vld [vmem:[#allocation6 + $0x10] ss:$8 sps:$4 sm:$0xff]   ;;  %605 = vmatprep.subr.bf16.mxu0 %v1518_v27 }
  0xbf   : > { %v489_v25 = vrot.slane %v487_v17, 1  ;;  %v496_v26 = vrot.slane %v494_v19, 1  ;;  %v1523_v34 = vld [vmem:[#allocation7 + $0x10] ss:$8 sps:$4 sm:$0xff]   ;;  %774 = vmatprep.subr.bf16.mxu1 %v1520_v30  ;;  %v1524_v36 = vld [vmem:[#allocation7 + $0x24] ss:$8 sps:$4 sm:$0xff]  }
  0xc0   : > { %669 = vrot.lane.b32.xlu0 %v2044_v7, %s1748_s0  ;;  %v504_v28 = vor.u32 %v503_v21, %v499_v11  ;;  %v511_v29 = vor.u32 %v510_v22, %v506_v13  ;;  %v1526_v39 = vld [vmem:[#allocation7 + $0x20] ss:$8 sps:$4 sm:$0xff]   ;;  %v1527_v41 = vld [vmem:[#allocation7 + $0x34] ss:$8 sps:$4 sm:$0xff]   ;;  %v1529_v43 = vld [vmem:[#allocation7 + $0x30] ss:$8 sps:$4 sm:$0xff]  }
  0xc1   : > { %v490_v32 = vor.u32 %v489_v25, %v485_v16  ;;  %v497_v33 = vor.u32 %v496_v26, %v492_v18  ;;  %606 = vmatpush1.bf16.msra.mxu0 %v1522_v31  ;;  %s1751_s8 = smov 48   ;;  %v531_v44 = vsel %vm2062_vm2, %v517_v42, 0  ;;  %v1752_v48 = vmov 1983009808   ;;  %v532_v22 = vld [vmem:[#allocation9] sm:$0x3] }
  0xc2   : > { %v529_v35 = vsel %vm2062_vm2, %v504_v28, 0  ;;  %v530_v38 = vsel %vm2062_vm2, %v511_v29, 0  ;;  %775 = vmatpush1.bf16.msra.mxu1 %v1523_v34  ;;  %v565_v49 = vunpack.c.l.s4 %v1752_v48  ;;  %v2079_v54 = vshrl.u32 %v567_v50, 7  ;;  %p442_p12 = scmp.lt.s32.totalorder %s1728_s27, 1  ;;  %s2177_s17 = sld [smem:[#allocation18_spill]] }
  0xc3   : > { %541 = vrot.lane.b32.xlu1 %v529_v35, %s1750_s3  ;;  %v527_v37 = vsel %vm2062_vm2, %v490_v32, 0  ;;  %v528_v40 = vsel %vm2062_vm2, %v497_v33, 0  ;;  %776 = vmatprep.subr.bf16.mxu1 %v1524_v36  ;;  %vm545_vm3 = vcmask 130048   ;;  %vm599_vm4 = vcmask 261120  }
  0xc4   : > { %537 = vrot.lane.b32.xlu0 %v527_v37, %s1750_s3  ;;  %v566_v53 = vunpack.c.0.s8 %v565_v49  ;;  %vm690_vm5 = vcmask 392192   ;;  %vm768_vm6 = vcmask 523264   ;;  %v649_v21 = vsub.s32 0, %v2079_v54  ;;  %s2186_s27 = smov (!%p442_p12, %s1728_s27), 1 }
  0xc5   : > { %v653_v23 = vsub.s32 1, %v2079_v54  ;;  %s1404_s9 = sshll.u32 %s2186_s27, 5  ;;  %s1359_s20 = sshll.u32 %s2186_s27, 1  ;;  %vm877_vm7 = vcmp.lt.s32.totalorder %v567_v50, 256 }
  0xc6   : > { %777 = vmatpush1.bf16.msra.mxu1 %v1526_v39  ;;  %v569_v56 = vsub.s32 %v566_v53, %v2079_v54  ;;  %v650_v24 = vrot.slane %v532_v22, %v649_v21  ;;  %s2105_s30 = scalar_lea.vmem %s2147_s5, %s1404_s9  ;;  %s459_s2 = scalar_lea.vmem %s2148_s6, %s1359_s20 }
  0xc7   : > { %543 = vrot.lane.b32.xlu1 %v530_v38, %s1750_s3  ;;  %778 = vmatprep.subr.bf16.mxu1 %v1527_v41  ;;  %v654_v25 = vrot.slane %v532_v22, %v653_v23 }
  0xc8   : > { %539 = vrot.lane.b32.xlu0 %v528_v40, %s1750_s3  ;;  %s467_s4 = scalar_lea.vmem %s2177_s17, %s1359_s20 }
  0xca   : > { %779 = vmatpush1.bf16.msra.mxu1 %v1529_v43 }
  0xcb   : > { %676 = vrot.lane.b32.xlu1 %v529_v35, %s1751_s8 }
  0xcc   : > { %674 = vrot.lane.b32.xlu0 %v528_v40, %s1751_s8 }
  0xcf   : > { %680 = vrot.lane.b32.xlu1 %v531_v44, %s1751_s8 }
  0xd0   : > { %678 = vrot.lane.b32.xlu0 %v530_v38, %s1751_s8 }
 0x12b   : > { %v672_v45 = vpop.permute.xlu1 %671 }
 0x12e   : > { %v666_v46 = vpop.permute.xlu0 %665 }
 0x12f   : > { %v668_v47 = vpop.permute.xlu1 %667 }
 0x132   : > { %v670_v51 = vpop.permute.xlu0 %669 }
 0x135   : > { %v542_v52 = vpop.permute.xlu1 %541 }
 0x136   : > { %v538_v55 = vpop.permute.xlu0 %537  ;;  %v551_v58 = vsel %vm545_vm3, %v2042_v6, %v542_v52 }
 0x137   : > { %v547_v61 = vsel %vm545_vm3, %v2046_v9, %v538_v55  ;;  %v687_v14 = vsel %vm599_vm4, %v551_v58, %v670_v51 }
 0x138   : > { %v683_v8 = vsel %vm599_vm4, %v547_v61, %v666_v46 }
 0x139   : > { %v544_v57 = vpop.permute.xlu1 %543 }
 0x13a   : > { %v553_v59 = vsel %vm545_vm3, %v2044_v7, %v544_v57  ;;  %v540_v60 = vpop.permute.xlu0 %539 }
 0x13b   : > { %v563_v62 = vcombine.low %v551_v58, %v553_v59  ;;  %v549_v63 = vsel %vm545_vm3, %v2040_v5, %v540_v60  ;;  %v689_v9 = vsel %vm599_vm4, %v553_v59, %v672_v45 }
 0x13c   : > { %v562_v0 = vcombine.low %v547_v61, %v549_v63  ;;  %v685_v1 = vsel %vm599_vm4, %v549_v63, %v668_v47 }
 0x13d   : > { %v577_v2 = vrot.slane %v563_v62, %v569_v56  ;;  %v677_v3 = vpop.permute.xlu1 %676 }
 0x13e   : > { %v570_v4 = vrot.slane %v562_v0, %v569_v56  ;;  %v675_v10 = vpop.permute.xlu0 %674  ;;  %v694_v6 = vsel %vm690_vm5, %v685_v1, %v677_v3 }
 0x13f   : > { %v692_v7 = vsel %vm690_vm5, %v683_v8, %v675_v10 }
 0x140   : > { %v578_v11 = vcombine.low %v570_v4, %v577_v2  ;;  %v711_v5 = vcombine.low %v692_v7, %v694_v6 }
 0x141   : > { %v681_v12 = vpop.permute.xlu1 %680 }
 0x142   : > { %v698_v13 = vsel %vm690_vm5, %v689_v9, %v681_v12  ;;  %1365 = vmatmul.mubr.msk.bf16.vlgmr.msra.gmra.mrb[0].mxu0 %vm599_vm4, %v578_v11  ;;  %v679_v15 = vpop.permute.xlu0 %678  ;;  %v719_v18 = vrot.slane %v711_v5, %v569_v56 }
 0x143   : > { %v696_v16 = vsel %vm690_vm5, %v687_v14, %v679_v15 }
 0x144   : > { %v712_v17 = vcombine.low %v696_v16, %v698_v13 }
 0x146   : > { %v726_v19 = vrot.slane %v712_v17, %v569_v56 }
 0x148   : > { %v727_v20 = vcombine.low %v719_v18, %v726_v19 }
 0x14a   : > { %1374 = vmatmul.mubr.msk.bf16.vlgmr.msra.gmra.mrb[0].mxu1 %vm768_vm6, %v727_v20 }
 0x215   : > { %v637_v26 = vpop.f32.mrb[0].mxu0 }
 0x216   : > { %v657_v27 = vadd.f32 %v650_v24, %v637_v26  ;;  %v639_v28 = vpop.f32.mrb[1].mxu0 }
 0x217   : > { %v658_v29 = vadd.f32 %v654_v25, %v639_v28  ;;  %v641_v30 = vpop.f32.mrb[2].mxu0 }
 0x218   : > { %v819_v31 = vmax.f32 %v657_v27, 0.0  ;;  %v659_v32 = vadd.f32 %v650_v24, %v641_v30  ;;  %v643_v33 = vpop.f32.mrb[3].mxu0 }
 0x219   : > { %v820_v34 = vmax.f32 %v658_v29, 0.0  ;;  %v660_v35 = vadd.f32 %v654_v25, %v643_v33 }
 0x21a   : > { %v821_v36 = vmax.f32 %v659_v32, 0.0  ;;  %v880_v37 = vmul.f32 %v819_v31, %v819_v31 }
 0x21b   : > { %v941_v38 = vcombine.low %v819_v31, %v820_v34  ;;  %v942_v39 = vcombine.high %v819_v31, %v820_v34  ;;  %v1375_v40 = vcombine.low %v820_v34, %v820_v34  ;;  %v1376_v41 = vcombine.high %v820_v34, %v820_v34 }
 0x21c   : > { %v827_v42 = vadd.f32 %v821_v36, %v819_v31  ;;  %v882_v43 = vmul.f32 %v821_v36, %v821_v36  ;;  %v822_v44 = vmax.f32 %v660_v35, 0.0  ;;  %v881_v45 = vmul.f32 %v820_v34, %v820_v34 }
 0x21d   : > { %v1379_v46 = vpack.c.bf16 %v1375_v40, %v941_v38  ;;  %v806_v47 = vpop.f32.mrb[0].mxu1  ;;  %v1380_v48 = vpack.c.bf16 %v1376_v41, %v942_v39 }
 0x21e   : > { %v828_v49 = vrot.slane %v827_v42, 4  ;;  %v884_v51 = vadd.f32 %v882_v43, %v880_v37  ;;  %v834_v52 = vadd.f32 %v822_v44, %v820_v34  ;;  %v808_v53 = vpop.f32.mrb[1].mxu1  ;;  %v883_v55 = vmul.f32 %v822_v44, %v822_v44 }
 0x21f   : > { %1383 = vst.sshfl [vmem:[%s2105_s30] sm:$0x33 pattern:$0x76325410] %v1379_v46  ;;  %v943_v56 = vcombine.low %v821_v36, %v822_v44  ;;  %v944_v57 = vcombine.high %v821_v36, %v822_v44  ;;  %v1377_v58 = vcombine.low %v822_v44, %v822_v44  ;;  %v810_v59 = vpop.f32.mrb[2].mxu1  ;;  %v1378_v62 = vcombine.high %v822_v44, %v822_v44 }
 0x220   : > { %1384 = vst.sshfl [vmem:[%s2105_s30 + $0x8] sm:$0x33 pattern:$0x76325410] %v1380_v48  ;;  %v829_v60 = vadd.f32 %v828_v49, %v827_v42  ;;  %v885_v61 = vrot.slane %v884_v51, 4  ;;  %v812_v63 = vpop.f32.mrb[3].mxu1  ;;  %v891_v0 = vadd.f32 %v883_v55, %v881_v45  ;;  %v815_v2 = vadd.f32 %v806_v47, %v650_v24 }
 0x221   : > { %v1381_v1 = vpack.c.bf16 %v1377_v58, %v943_v56  ;;  %v816_v3 = vadd.f32 %v808_v53, %v654_v25  ;;  %v835_v4 = vrot.slane %v834_v52, 4  ;;  %v1382_v8 = vpack.c.bf16 %v1378_v62, %v944_v57 }
 0x222   : > { %v823_v10 = vmax.f32 %v815_v2, 0.0  ;;  %v817_v7 = vadd.f32 %v810_v59, %v650_v24  ;;  %v830_v11 = vrot.slane %v829_v60, 2  ;;  %v886_v9 = vadd.f32 %v885_v61, %v884_v51 }
 0x223   : > { %1385 = vst.sshfl [vmem:[%s2105_s30 + $0x10] sm:$0x33 pattern:$0x76325410] %v1381_v1  ;;  %v824_v6 = vmax.f32 %v816_v3, 0.0  ;;  %v818_v12 = vadd.f32 %v812_v63, %v654_v25  ;;  %v892_v5 = vrot.slane %v891_v0, 4  ;;  %v836_v14 = vadd.f32 %v835_v4, %v834_v52 }
 0x224   : > { %1386 = vst.sshfl [vmem:[%s2105_s30 + $0x18] sm:$0x33 pattern:$0x76325410] %v1382_v8  ;;  %v825_v18 = vmax.f32 %v817_v7, 0.0  ;;  %v831_v19 = vadd.f32 %v830_v11, %v829_v60  ;;  %v887_v20 = vrot.slane %v886_v9, 2  ;;  %v898_v28 = vmul.f32 %v823_v10, %v823_v10 }
 0x225   : > { %v1017_v13 = vcombine.low %v823_v10, %v824_v6  ;;  %v1018_v15 = vcombine.high %v823_v10, %v824_v6  ;;  %v1387_v16 = vcombine.low %v824_v6, %v824_v6  ;;  %v1388_v17 = vcombine.high %v824_v6, %v824_v6 }
 0x226   : > { %v826_v21 = vmax.f32 %v818_v12, 0.0  ;;  %v893_v22 = vadd.f32 %v892_v5, %v891_v0  ;;  %v841_v24 = vadd.f32 %v825_v18, %v823_v10  ;;  %v837_v27 = vrot.slane %v836_v14, 2 }
 0x227   : > { %v1391_v23 = vpack.c.bf16 %v1387_v16, %v1017_v13  ;;  %v1392_v26 = vpack.c.bf16 %v1388_v17, %v1018_v15  ;;  %v900_v29 = vmul.f32 %v825_v18, %v825_v18  ;;  %v899_v30 = vmul.f32 %v824_v6, %v824_v6 }
 0x228   : > { %v848_v25 = vadd.f32 %v826_v21, %v824_v6  ;;  %v842_v31 = vrot.slane %v841_v24, 4  ;;  %v901_v32 = vmul.f32 %v826_v21, %v826_v21  ;;  %v1019_v33 = vcombine.low %v825_v18, %v826_v21 }
 0x229   : > { %1405 = vst.sshfl [vmem:[%s2105_s30 + $0x4] sm:$0x33 pattern:$0x76325410] %v1391_v23  ;;  %v902_v34 = vadd.f32 %v900_v29, %v898_v28  ;;  %v1020_v36 = vcombine.high %v825_v18, %v826_v21  ;;  %v1389_v37 = vcombine.low %v826_v21, %v826_v21  ;;  %v894_v38 = vrot.slane %v893_v22, 2 }
 0x22a   : > { %1406 = vst.sshfl [vmem:[%s2105_s30 + $0xc] sm:$0x33 pattern:$0x76325410] %v1392_v26  ;;  %v849_v35 = vrot.slane %v848_v25, 4  ;;  %v843_v39 = vadd.f32 %v842_v31, %v841_v24  ;;  %v909_v40 = vadd.f32 %v901_v32, %v899_v30  ;;  %v1390_v41 = vcombine.high %v826_v21, %v826_v21 }
 0x22b   : > { %v838_v42 = vadd.f32 %v837_v27, %v836_v14  ;;  %v903_v43 = vrot.slane %v902_v34, 4  ;;  %v1393_v45 = vpack.c.bf16 %v1389_v37, %v1019_v33  ;;  %v1753_v49 = vmov 1966171168  }
 0x22c   : > { %v850_v44 = vadd.f32 %v849_v35, %v848_v25  ;;  %v844_v46 = vrot.slane %v843_v39, 2  ;;  %v910_v47 = vrot.slane %v909_v40, 4  ;;  %v1394_v48 = vpack.c.bf16 %v1390_v41, %v1020_v36 }
 0x22d   : > { %v861_v51 = vunpack.c.l.s4 %v1753_v49  ;;  %v888_v52 = vadd.f32 %v887_v20, %v886_v9  ;;  %v904_v53 = vadd.f32 %v903_v43, %v902_v34  ;;  %1407 = vst.sshfl [vmem:[%s2105_s30 + $0x14] sm:$0x33 pattern:$0x76325410] %v1393_v45  ;;  %v832_v56 = vrot.slane %v831_v19, 1 }
 0x22e   : > { %v851_v55 = vrot.slane %v850_v44, 2  ;;  %v895_v57 = vadd.f32 %v894_v38, %v893_v22  ;;  %v845_v58 = vadd.f32 %v844_v46, %v843_v39  ;;  %v911_v59 = vadd.f32 %v910_v47, %v909_v40  ;;  %1408 = vst.sshfl [vmem:[%s2105_s30 + $0x1c] sm:$0x33 pattern:$0x76325410] %v1394_v48 }
 0x22f   : > { %v839_v60 = vrot.slane %v838_v42, 1  ;;  %v905_v61 = vrot.slane %v904_v53, 2  ;;  %v862_v1 = vunpack.c.0.s8 %v861_v51  ;;  %v889_v2 = vrot.slane %v888_v52, 1 }
 0x230   : > { %v852_v62 = vadd.f32 %v851_v55, %v850_v44  ;;  %v846_v63 = vrot.slane %v845_v58, 1  ;;  %v912_v0 = vrot.slane %v911_v59, 2  ;;  %v833_v8 = vadd.f32 %v832_v56, %v831_v19 }
 0x231   : > { %v906_v3 = vadd.f32 %v905_v61, %v904_v53  ;;  %v896_v10 = vrot.slane %v895_v57, 1  ;;  %v840_v11 = vadd.f32 %v839_v60, %v838_v42  ;;  %v865_v14 = vsub.s32 %v862_v1, %v2079_v54 }
 0x232   : > { %v853_v4 = vrot.slane %v852_v62, 1  ;;  %v847_v6 = vadd.f32 %v846_v63, %v845_v58  ;;  %v913_v7 = vadd.f32 %v912_v0, %v911_v59  ;;  %v890_v15 = vadd.f32 %v889_v2, %v888_v52 }
 0x233   : > { %v907_v9 = vrot.slane %v906_v3, 1  ;;  %v897_v18 = vadd.f32 %v896_v10, %v895_v57 }
 0x234   : > { %v854_v12 = vadd.f32 %v853_v4, %v852_v62  ;;  %v855_v5 = vadd.f32 %v847_v6, %v833_v8  ;;  %v914_v13 = vrot.slane %v913_v7, 1 }
 0x235   : > { %v908_v16 = vadd.f32 %v907_v9, %v906_v3 }
 0x236   : > { %v856_v17 = vadd.f32 %v854_v12, %v840_v11  ;;  %v915_v20 = vadd.f32 %v914_v13, %v913_v7 }
 0x237   : > { %v916_v21 = vadd.f32 %v908_v16, %v890_v15 }
 0x238   : > { %v859_v22 = vcombine.low %v855_v5, %v856_v17  ;;  %v917_v23 = vadd.f32 %v915_v20, %v897_v18 }
 0x23a   : > { %v866_v19 = vrot.slane %v859_v22, %v865_v14  ;;  %v920_v26 = vcombine.low %v916_v21, %v917_v23 }
 0x23c   : > { %v873_v24 = vrot.slane %v866_v19, %v865_v14  ;;  %v927_v27 = vrot.slane %v920_v26, %v865_v14 }
 0x23e   : > { %879 = vst.msk [vmem:[%s459_s2] sm:$0x3] %vm877_vm7, %v873_v24  ;;  %v934_v54 = vrot.slane %v927_v27, %v865_v14 }
 0x240   : > { %936 = vst.msk [vmem:[%s467_s4] sm:$0x3] %vm877_vm7, %v934_v54 }
 0x241 PF: > { %s25_s29 = sadd.s32 1, %s1736_s29   ;;  %s2178_s24 = smov %s1720_s25 }
 0x242   : > { %p22_p13 = scmp.ge.s32.totalorder %s25_s29, 4   ;;  %s2179_s25 = smov %s1724_s26 }
 0x243   : > { %s2180_s26 = smov %s1943_s21  ;;  %s2181_s27 = smov %s1732_s28 }
 0x244   : > { %s2182_s28 = smov %s2184_s18  ;;  %24 = sbr.rel (!%p22_p13) target bundleno = 13 (0xd), region = 130 }
 0x24b   :  { %1166 = vsyncpa [#allocation3], 1 }
 0x24c   :  { %1168 = vsyncpa [#allocation3 + $0x1], 1 }
 0x24d   :  { %1169 = vsyncpa [#allocation5], 1 }
 0x24e   :  { %1171 = vsyncpa [#allocation5 + $0x1], 1 }
 0x24f   :  { %1172 = vsyncpa [#allocation8], 1 }

// kernel: up_forward.4
= control target key start
LH: loop header
LB: loop body
LE: loop exit
PB: predicated region body
PF: predicated region fallthrough
CT: control target
= control target key end

     0   :  { %17 = vsyncpa [#allocation3], 0  ;;  %s3240_s5 = smov 0   ;;  %s3242_s16 = smov 0   ;;  %s3789_s0 = inlined_call_operand.vmem [shape: bf16[2,8,8,128], index: 0, kind: input, shape index: {}, may-alias: {0,1}]   ;;  %s3790_s1 = inlined_call_operand.vmem [shape: bf16[2,8,8,128], index: 1, kind: input, shape index: {}, may-alias: {0,1}]   ;;  %s3791_s2 = inlined_call_operand.vmem [shape: f32[1,1,128], index: 2, kind: input, shape index: {}]   ;;  %s3792_s3 = inlined_call_operand.vmem [shape: f32[1,1,128], index: 3, kind: input, shape index: {}]   ;;  %s3793_s4 = inlined_call_operand.vmem [shape: f32[2,8,8,128], index: 4, kind: input, shape index: {}, may-alias: {4,5}]   ;;  %s3794_s5 = inlined_call_operand.vmem [shape: f32[2,8,8,128], index: 5, kind: input, shape index: {}, may-alias: {4,5}]   ;;  %s3795_s6 = inlined_call_operand.vmem [shape: bf16[512,128], index: 6, kind: input, shape index: {}]   ;;  %s3796_s7 = inlined_call_operand.hbm [shape: bf16[1024,128], index: 7, kind: input, shape index: {}]   ;;  %s3797_s8 = inlined_call_operand.vmem [shape: f32[1,128], index: 8, kind: input, shape index: {}]   ;;  %s3798_s9 = inlined_call_operand.vmem [shape: bf16[2,8,2,8,128], index: 9, kind: output, shape index: {0}]   ;;  %s3799_s10 = inlined_call_operand.vmem [shape: f32[2,1,1,128], index: 10, kind: output, shape index: {1}]   ;;  %s3800_s11 = inlined_call_operand.vmem [shape: f32[2,1,1,128], index: 11, kind: output, shape index: {2}]  }
   0x1   :  { %s3244_s17 = smov 0  }
   0x2 LB: > { %s2546_s18 = sadd.s32 4294967295, %s3173_s17   ;;  %s35_s19 = sadd.s32 1, %s3169_s16  ;;  %s3173_s17 = sphi %s3244_s17, %s23_s17   ;;  %s3169_s16 = sphi %s3242_s16, %s3812_s16   ;;  %s3165_s5 = sphi %s3240_s5, %s3811_s5  }
   0x3   : > { %p37_p0 = scmp.ge.s32.totalorder %s35_s19, 2  ;;  %p2548_p1 = scmp.ge.s32.totalorder %s3173_s17, 1 }
   0x4   : > { %p357_p2 = scmp.lt.s32.totalorder %s3173_s17, 3  ;;  %p3265_p4 = scmp.eq.s32.totalorder %s2546_s18, 0 }
   0x5   : > { %s3814_s19 = smov (%p37_p0, %s35_s19), 0  ;;  %s3175_s22 = smov [#allocation2]  }
   0x6   : > { %p3261_p3 = pnand %p2548_p1, %p357_p2  ;;  %s378_s23 = sshll.u32 %s3175_s22, 4  ;;  %s379_s23 = int_to_ptr.vmem [resolvable:$true] %s378_s23 }
   0x7   : > { %s3805_s21 = scalar_select %p3265_p4, 1, 0 }
   0x8   : > { %s3804_s20 = scalar_select %p3261_p3, 1, 0 }
   0x9   : > { %p2988_p5 = pneg %p3261_p3  ;;  %s3119_s27 = scalar_lea.hbm %s3796_s7, 8192 }
   0xa   : > { %p3120_p7 = scmp.ne.s32.totalorder %s3796_s7, %s3119_s27  ;;  %p3126_p11 = scmp.lt.u32.totalorder %s3119_s27, %s3796_s7 }
   0xb   : > { %p3273_p6 = pnand %p3265_p4, %p2988_p5 }
   0xd   : > { %p3121_p8 = pneg %p3273_p6 }
   0xf   : > { %p3122_p9 = pnand %p3121_p8, %p3120_p7 }
  0x11   : > { %p3123_p10 = pneg %p3122_p9 }
  0x13   : > { %p3128_p12 = pnand %p3126_p11, %p3123_p10 }
  0x15   : > { %3131 = shalt.err (!%p3128_p12)
}
  0x16   : > { %s3132_s12 = scalar_lea.vmem %s379_s23, 8192  ;;  %p3140_p2 = scmp.lt.s32.totalorder %s379_s23, %s379_s23 }
  0x17   : > { %p3133_p13 = scmp.ne.s32.totalorder %s379_s23, %s3132_s12  ;;  %p3141_p5 = scmp.lt.s32.totalorder %s3132_s12, %s3132_s12 }
  0x19   : > { %p3135_p0 = pnand %p3133_p13, %p3121_p8  ;;  %p3142_p4 = por %p3141_p5, %p3140_p2 }
  0x1b   : > { %p3136_p1 = pneg %p3135_p0 }
  0x1d   : > { %p3143_p3 = pnand %p3142_p4, %p3136_p1 }
  0x1f   : > { %3146 = shalt.err (!%p3143_p3)
}
  0x20   : > { %s3176_s13 = smov 64   ;;  %s3177_s14 = smov 4  }
  0x21   : > { %2991 = dma.hbm_to_vmem [thread:$0]  (!%p3273_p6), %s3796_s7, 8192, %s379_s23, [#allocation3], %s3176_s13, %s3176_s13, %s3177_s14  }
  0x22   : > { %p3807_p7 = scmp.ne.s32.totalorder %s3804_s20, 0 }
  0x23   : > { %p3808_p9 = scmp.ne.s32.totalorder (!%p3807_p7), %s3805_s21, 0 }
  0x24   : > { %461 = sbr.rel (%p3807_p7) target bundleno = 419 (0x1a3), region = 56 }
  0x2b   : > { %3160 = dma.done.wait (%p3808_p9), [#allocation3], 8192  }
  0x2c   : > { %3162 = vsyncadd (%p3808_p9), [#allocation3], 4294959104  ;;  %v3023_v0 = vld [vmem:[%s3795_s6 + $0x40] sm:$0xff]   ;;  %v3027_v4 = vld [vmem:[%s3795_s6 + $0x48] sm:$0xff]   ;;  %p556_p3 = scmp.lt.s32.totalorder %s3165_s5, 1  ;;  %vm767_vm1 = vcmask 1043456  }
  0x2d   : > { %v3024_v1 = vld [vmem:[%s3795_s6 + $0xc0] sm:$0xff]   ;;  %2744 = vmatprep.subr.bf16.mxu0 %v3023_v0  ;;  %v3028_v5 = vld [vmem:[%s3795_s6 + $0xc8] sm:$0xff]   ;;  %v3031_v8 = vld [vmem:[%s3795_s6 + $0x50] sm:$0xff]   ;;  %vm768_vm0 = vsmask.f32 3328 }
  0x2e   : > { %v3025_v2 = vld [vmem:[%s3795_s6] sm:$0xff]   ;;  %2784 = vmatprep.subr.bf16.mxu1 %v3024_v1  ;;  %v3029_v6 = vld [vmem:[%s3795_s6 + $0x8] sm:$0xff]   ;;  %v3032_v9 = vld [vmem:[%s3795_s6 + $0xd0] sm:$0xff]   ;;  %s3816_s5 = smov (!%p556_p3, %s3165_s5), 1 }
  0x2f   : > { %v3026_v3 = vld [vmem:[%s3795_s6 + $0x80] sm:$0xff]   ;;  %2745 = vmatpush3.bf16.msra.mxu0 %v3025_v2  ;;  %v3030_v7 = vld [vmem:[%s3795_s6 + $0x88] sm:$0xff]   ;;  %v3033_v10 = vld [vmem:[%s3795_s6 + $0x10] sm:$0xff]   ;;  %s2704_s27 = sshll.u32 %s3816_s5, 5  ;;  %s2707_s20 = sshll.u32 %s3816_s5, 6 }
  0x30   : > { %2785 = vmatpush3.bf16.msra.mxu1 %v3026_v3  ;;  %2746 = vmatprep.subr.bf16.mxu0 %v3027_v4  ;;  %v3034_v11 = vld [vmem:[%s3795_s6 + $0x90] sm:$0xff]   ;;  %v3035_v12 = vld [vmem:[%s3795_s6 + $0x58] sm:$0xff]   ;;  %v3039_v16 = vld [vmem:[%s3795_s6 + $0x60] sm:$0xff]   ;;  %s3398_s13 = scalar_lea.vmem %s3789_s0, %s2704_s27  ;;  %s3408_s25 = scalar_lea.vmem %s3793_s4, %s2707_s20 }
  0x31   : > { %2786 = vmatprep.subr.bf16.mxu1 %v3028_v5  ;;  %v3036_v13 = vld [vmem:[%s3795_s6 + $0xd8] sm:$0xff]   ;;  %v3040_v17 = vld [vmem:[%s3795_s6 + $0xe0] sm:$0xff]   ;;  %v3043_v20 = vld [vmem:[%s3795_s6 + $0x68] sm:$0xff]   ;;  %s623_s15 = scalar_lea.vmem %s3799_s10, %s3816_s5 }
  0x32   : > { %v3037_v14 = vld [vmem:[%s3795_s6 + $0x18] sm:$0xff]   ;;  %v3041_v18 = vld [vmem:[%s3795_s6 + $0x20] sm:$0xff]   ;;  %v3044_v21 = vld [vmem:[%s3795_s6 + $0xe8] sm:$0xff]  }
  0x33   : > { %2747 = vmatpush3.bf16.msra.mxu0 %v3029_v6  ;;  %v3038_v15 = vld [vmem:[%s3795_s6 + $0x98] sm:$0xff]   ;;  %v3042_v19 = vld [vmem:[%s3795_s6 + $0xa0] sm:$0xff]   ;;  %v3045_v22 = vld [vmem:[%s3795_s6 + $0x28] sm:$0xff]  }
  0x34   : > { %2787 = vmatpush3.bf16.msra.mxu1 %v3030_v7  ;;  %2748 = vmatprep.subr.bf16.mxu0 %v3031_v8  ;;  %v3046_v23 = vld [vmem:[%s3795_s6 + $0xa8] sm:$0xff]   ;;  %v3047_v24 = vld [vmem:[%s3795_s6 + $0x70] sm:$0xff]   ;;  %v3051_v28 = vld [vmem:[%s3795_s6 + $0x78] sm:$0xff]  }
  0x35   : > { %2788 = vmatprep.subr.bf16.mxu1 %v3032_v9  ;;  %v3048_v25 = vld [vmem:[%s3795_s6 + $0xf0] sm:$0xff]   ;;  %v3052_v29 = vld [vmem:[%s3795_s6 + $0xf8] sm:$0xff]   ;;  %v3416_v32 = vld [vmem:[%s3791_s2] ss:$0 sm:$0xff] }
  0x36   : > { %v3049_v26 = vld [vmem:[%s3795_s6 + $0x30] sm:$0xff]   ;;  %v3053_v30 = vld [vmem:[%s3795_s6 + $0x38] sm:$0xff]   ;;  %v3421_v33 = vld [vmem:[%s3792_s3] ss:$0 sm:$0xff] }
  0x37   : > { %2749 = vmatpush3.bf16.msra.mxu0 %v3033_v10  ;;  %v3050_v27 = vld [vmem:[%s3795_s6 + $0xb0] sm:$0xff]   ;;  %v3054_v31 = vld [vmem:[%s3795_s6 + $0xb8] sm:$0xff]   ;;  %v2726_v34 = vld [vmem:[%s3398_s13] sm:$0xff]  }
  0x38   : > { %2789 = vmatpush3.bf16.msra.mxu1 %v3034_v11  ;;  %2750 = vmatprep.subr.bf16.mxu0 %v3035_v12  ;;  %v2727_v35 = vunpack.c.l.bf16 %v2726_v34  ;;  %v2728_v36 = vunpack.c.h.bf16 %v2726_v34  ;;  %v2741_v37 = vld [vmem:[%s3398_s13 + $0x8] sm:$0xff]   ;;  %v779_v38 = vld [vmem:[%s3408_s25] sm:$0xff]  ;;  %v3430_v41 = vld [vmem:[%s3408_s25 + $0x10] sm:$0xff] }
  0x39   : > { %2790 = vmatprep.subr.bf16.mxu1 %v3036_v13  ;;  %v3427_v39 = vld [vmem:[%s3408_s25 + $0x8] sm:$0xff]  ;;  %v2731_v40 = vunpack.c.l.bf16 %v2741_v37  ;;  %v789_v42 = vpack.c.bf16 %v779_v38, %v779_v38  ;;  %v791_v46 = vpack.c.bf16 %v3430_v41, %v3430_v41  ;;  %v3055_v47 = vld [vmem:[#allocation2 + $0x40] sm:$0xff]   ;;  %v2732_v48 = vunpack.c.h.bf16 %v2741_v37  ;;  %vm3453_vm2 = vmand %vm767_vm1, %vm768_vm0 }
  0x3a   : > { %v790_v43 = vpack.c.bf16 %v3427_v39, %v3427_v39  ;;  %v658_v44 = vmul.f32 %v2727_v35, %v3416_v32  ;;  %v659_v45 = vmul.f32 %v2728_v36, %v3416_v32  ;;  %v3056_v52 = vld [vmem:[#allocation2 + $0xc0] sm:$0xff]  }
  0x3b   : > { %2751 = vmatpush3.bf16.msra.mxu0 %v3037_v14  ;;  %v660_v49 = vmul.f32 %v2731_v40, %v3416_v32  ;;  %v799_v50 = vshrl.u32 %v789_v42, 16  ;;  %v801_v51 = vshll.u32 %v789_v42, 16  ;;  %v815_v59 = vshll.u32 %v791_v46, 16  ;;  %v3059_v42 = vld [vmem:[#allocation2 + $0x48] sm:$0xff]   ;;  %v3103_v1 = vld [vmem:[#allocation2 + $0x160] sm:$0xff]  }
  0x3c   : > { %2791 = vmatpush3.bf16.msra.mxu1 %v3038_v15  ;;  %2752 = vmatprep.subr.bf16.mxu0 %v3039_v16  ;;  %v672_v53 = vadd.f32 %v3421_v33, %v658_v44  ;;  %v3441_v54 = vadd.f32 %v3421_v33, %v659_v45  ;;  %v806_v55 = vshrl.u32 %v790_v43, 16  ;;  %v808_v56 = vshll.u32 %v790_v43, 16  ;;  %v3062_v44 = vld [vmem:[#allocation2 + $0x88] sm:$0xff]  }
  0x3d   : > { %2792 = vmatprep.subr.bf16.mxu1 %v3040_v17  ;;  %v3444_v57 = vadd.f32 %v3421_v33, %v660_v49  ;;  %v803_v58 = vrot.slane %v801_v51, 1  ;;  %v661_v60 = vmul.f32 %v2732_v48, %v3416_v32  ;;  %v813_v3 = vshrl.u32 %v791_v46, 16  ;;  %v3465_v17 = vld [vmem:[%s3408_s25 + $0x18] sm:$0xff]  ;;  %v3064_v49 = vld [vmem:[#allocation2 + $0xd0] sm:$0xff]   ;;  %v3061_v51 = vld [vmem:[#allocation2 + $0x8] sm:$0xff]  }
  0x3e   : > { %v686_v61 = vpack.c.bf16 %v672_v53, %v672_v53  ;;  %v687_v62 = vpack.c.bf16 %v3441_v54, %v3441_v54  ;;  %v810_v63 = vrot.slane %v808_v56, 1  ;;  %v817_v12 = vrot.slane %v815_v59, 1 }
  0x3f   : > { %2753 = vmatpush3.bf16.msra.mxu0 %v3041_v18  ;;  %v688_v0 = vpack.c.bf16 %v3444_v57, %v3444_v57  ;;  %v804_v2 = vor.u32 %v803_v58, %v799_v50  ;;  %v3458_v4 = vadd.f32 %v3421_v33, %v661_v60  ;;  %v2720_v46 = vpack.c.bf16 %v3430_v41, %v3427_v39  ;;  %v3066_v60 = vld [vmem:[#allocation2 + $0x90] sm:$0xff]  }
  0x40   : > { %2793 = vmatpush3.bf16.msra.mxu1 %v3042_v19  ;;  %2754 = vmatprep.subr.bf16.mxu0 %v3043_v20  ;;  %v696_v5 = vshrl.u32 %v686_v61, 16  ;;  %v698_v6 = vshll.u32 %v686_v61, 16  ;;  %v703_v7 = vshrl.u32 %v687_v62, 16  ;;  %v705_v8 = vshll.u32 %v687_v62, 16  ;;  %v2742_v61 = vld [vmem:[%s3398_s13 + $0x10] sm:$0xff]  }
  0x41   : > { %2794 = vmatprep.subr.bf16.mxu1 %v3044_v21  ;;  %v710_v9 = vshrl.u32 %v688_v0, 16  ;;  %v712_v10 = vshll.u32 %v688_v0, 16  ;;  %v811_v11 = vor.u32 %v810_v63, %v806_v55  ;;  %v870_v15 = vsel %vm3453_vm2, %v804_v2, 0  ;;  %v3058_v21 = vld [vmem:[#allocation2 + $0x80] sm:$0xff]   ;;  %v3063_v55 = vld [vmem:[#allocation2 + $0x50] sm:$0xff]  }
  0x42   : > { %v700_v13 = vrot.slane %v698_v6, 1  ;;  %v707_v14 = vrot.slane %v705_v8, 1  ;;  %v689_v16 = vpack.c.bf16 %v3458_v4, %v3458_v4  ;;  %v3472_v20 = vpack.c.bf16 %v3427_v39, %v779_v38  ;;  %v3065_v63 = vld [vmem:[#allocation2 + $0x10] sm:$0xff]  }
  0x43   : > { %2755 = vmatpush3.bf16.msra.mxu0 %v3045_v22  ;;  %v714_v18 = vrot.slane %v712_v10, 1  ;;  %v3469_v19 = vsel %vm3453_vm2, %v811_v11, 0  ;;  %v792_v22 = vpack.c.bf16 %v3465_v17, %v3465_v17  ;;  %v3519_v59 = vpack.c.bf16 %v3465_v17, %v3430_v41  ;;  %v3067_v11 = vld [vmem:[#allocation2 + $0x58] sm:$0xff]  }
  0x44   : > { %2795 = vmatpush3.bf16.msra.mxu1 %v3046_v23  ;;  %2756 = vmatprep.subr.bf16.mxu0 %v3047_v24  ;;  %v701_v23 = vor.u32 %v700_v13, %v696_v5  ;;  %v708_v24 = vor.u32 %v707_v14, %v703_v7  ;;  %v719_v34 = vshll.u32 %v689_v16, 16  ;;  %v2735_v0 = vunpack.c.l.bf16 %v2742_v61  ;;  %v3530_v5 = vld [vmem:[%s3408_s25 + $0x28] sm:$0xff]  ;;  %v3068_v7 = vld [vmem:[#allocation2 + $0xd8] sm:$0xff]  }
  0x45   : > { %2796 = vmatprep.subr.bf16.mxu1 %v3048_v25  ;;  %v3477_v25 = vcombine.low %v870_v15, %v3469_v19  ;;  %v820_v37 = vshrl.u32 %v792_v22, 16  ;;  %v822_v38 = vshll.u32 %v792_v22, 16  ;;  %v2736_v2 = vunpack.c.h.bf16 %v2742_v61 }
  0x46   : > { %v770_v35 = vsel %vm3453_vm2, %v701_v23, 0  ;;  %v3486_v36 = vsel %vm3453_vm2, %v708_v24, 0  ;;  %v721_v43 = vrot.slane %v719_v34, 1  ;;  %v3535_v6 = vpack.c.bf16 %v3458_v4, %v3444_v57  ;;  %v3069_v24 = vld [vmem:[#allocation2 + $0x18] sm:$0xff]  }
  0x47   : > { %2757 = vmatpush3.bf16.msra.mxu0 %v3049_v26  ;;  %v3480_v26 = vpack.c.bf16 %v3441_v54, %v672_v53  ;;  %1329 = vmatprep.mubr.bf16.mxu1 %v3477_v25  ;;  %v3490_v40 = vcombine.low %v770_v35, %v3486_v36  ;;  %v824_v45 = vrot.slane %v822_v38, 1  ;;  %v663_v13 = vmul.f32 %v2736_v2, %v3416_v32  ;;  %v3576_v2 = vld [vmem:[%s3408_s25 + $0x30] sm:$0xff] }
  0x48   : > { %2797 = vmatpush3.bf16.msra.mxu1 %v3050_v27  ;;  %2758 = vmatprep.subr.bf16.mxu0 %v3051_v28  ;;  %v715_v27 = vor.u32 %v714_v18, %v710_v9  ;;  %v818_v28 = vor.u32 %v817_v12, %v813_v3  ;;  %v3527_v3 = vld [vmem:[%s3408_s25 + $0x20] sm:$0xff]  ;;  %v794_v9 = vpack.c.bf16 %v3530_v5, %v3530_v5 }
  0x49   : > { %2798 = vmatprep.subr.bf16.mxu1 %v3052_v29  ;;  %v3057_v29 = vld [vmem:[#allocation2] sm:$0xff]   ;;  %1264 = vmatprep.mubr.bf16.mxu0 %v3490_v40  ;;  %v793_v8 = vpack.c.bf16 %v3527_v3, %v3527_v3  ;;  %v2722_v10 = vpack.c.bf16 %v3527_v3, %v3465_v17  ;;  %v662_v12 = vmul.f32 %v2735_v0, %v3416_v32  ;;  %v2743_v0 = vld [vmem:[%s3398_s13 + $0x18] sm:$0xff]   ;;  %s3714_s13 = scalar_lea.vmem %s3798_s9, %s2707_s20 }
  0x4a   : > { %v3502_v50 = vsel %vm3453_vm2, %v818_v28, 0  ;;  %v836_v18 = vshll.u32 %v794_v9, 16  ;;  %v3551_v23 = vadd.f32 %v3421_v33, %v663_v13 }
  0x4b   : > { %2759 = vmatpush3.bf16.msra.mxu0 %v3053_v30  ;;  %v3060_v30 = vld [vmem:[#allocation2 + $0xc8] sm:$0xff]   ;;  %v827_v14 = vshrl.u32 %v793_v8, 16  ;;  %v829_v15 = vshll.u32 %v793_v8, 16  ;;  %v3548_v22 = vadd.f32 %v3421_v33, %v662_v12  ;;  %v795_v12 = vpack.c.bf16 %v3576_v2, %v3576_v2 }
  0x4c   : > { %2799 = vmatpush3.bf16.msra.mxu1 %v3054_v31  ;;  %2824 = vmatprep.subr.bf16.mxu0 %v3055_v47  ;;  %v717_v31 = vshrl.u32 %v689_v16, 16  ;;  %v3497_v47 = vsel %vm3453_vm2, %v715_v27, 0  ;;  %v834_v16 = vshrl.u32 %v794_v9, 16  ;;  %v838_v28 = vrot.slane %v836_v18, 1  ;;  %v3075_v8 = vld [vmem:[#allocation2 + $0x68] sm:$0xff]  }
  0x4d   : > { %2864 = vmatprep.subr.bf16.mxu1 %v3056_v52  ;;  %v825_v52 = vor.u32 %v824_v45, %v820_v37  ;;  %v831_v27 = vrot.slane %v829_v15, 1  ;;  %v3071_v37 = vld [vmem:[#allocation2 + $0x60] sm:$0xff]   ;;  %v2739_v9 = vunpack.c.l.bf16 %v2743_v0  ;;  %v3078_v18 = vld [vmem:[#allocation2 + $0xa8] sm:$0xff]  }
  0x4e   : > { %v722_v48 = vor.u32 %v721_v43, %v717_v31  ;;  %1265 = vmatmul.mubr.bf16.vlgmr.msra.gmra.mrb[0].mxu0 %v3480_v26  ;;  %v691_v31 = vpack.c.bf16 %v3551_v23, %v3551_v23  ;;  %v839_v35 = vor.u32 %v838_v28, %v834_v16  ;;  %v3073_v45 = vld [vmem:[#allocation2 + $0x20] sm:$0xff]   ;;  %v3586_v16 = vpack.c.bf16 %v3551_v23, %v3548_v22 }
  0x4f   : > { %1330 = vmatmul.mubr.bf16.vlgmr.msra.gmra.mrb[0].mxu1 %v3472_v20  ;;  %2825 = vmatpush3.bf16.msra.mxu0 %v3057_v29  ;;  %v3515_v58 = vsel %vm3453_vm2, %v825_v52, 0  ;;  %v3072_v29 = vld [vmem:[#allocation2 + $0xe0] sm:$0xff]   ;;  %v832_v34 = vor.u32 %v831_v27, %v827_v14  ;;  %v841_v28 = vshrl.u32 %v795_v12, 16 }
  0x50   : > { %2865 = vmatpush3.bf16.msra.mxu1 %v3058_v21  ;;  %v3507_v53 = vsel %vm3453_vm2, %v722_v48, 0  ;;  %2826 = vmatprep.subr.bf16.mxu0 %v3059_v42  ;;  %v3524_v62 = vcombine.low %v3502_v50, %v3515_v58  ;;  %v3070_v21 = vld [vmem:[#allocation2 + $0x98] sm:$0xff]   ;;  %v731_v43 = vshrl.u32 %v691_v31, 16  ;;  %v3074_v48 = vld [vmem:[#allocation2 + $0xa0] sm:$0xff]   ;;  %v3564_v52 = vsel %vm3453_vm2, %v839_v35, 0 }
  0x51   : > { %2866 = vmatprep.subr.bf16.mxu1 %v3060_v30  ;;  %v3511_v56 = vcombine.low %v3497_v47, %v3507_v53  ;;  %v690_v30 = vpack.c.bf16 %v3548_v22, %v3548_v22 }
  0x52   : > { %1337 = vmatprep.mubr.bf16.mxu1 %v3524_v62 }
  0x53   : > { %1272 = vmatprep.mubr.bf16.mxu0 %v3511_v56  ;;  %2827 = vmatpush3.bf16.msra.mxu0 %v3061_v51  ;;  %v724_v38 = vshrl.u32 %v690_v30, 16  ;;  %v726_v42 = vshll.u32 %v690_v30, 16  ;;  %v3560_v51 = vsel %vm3453_vm2, %v832_v34, 0 }
  0x54   : > { %2867 = vmatpush3.bf16.msra.mxu1 %v3062_v44  ;;  %2828 = vmatprep.subr.bf16.mxu0 %v3063_v55  ;;  %v733_v44 = vshll.u32 %v691_v31, 16  ;;  %v3568_v55 = vpack.c.bf16 %v3530_v5, %v3527_v3 }
  0x55   : > { %2868 = vmatprep.subr.bf16.mxu1 %v3064_v49  ;;  %v3076_v49 = vld [vmem:[#allocation2 + $0xe8] sm:$0xff]  }
  0x56   : > { %1273 = vmatmul.mubr.bf16.gmra.mrb[4].mxu0 %v3535_v6  ;;  %v735_v61 = vrot.slane %v733_v44, 1 }
  0x57   : > { %1338 = vmatmul.mubr.bf16.gmra.mrb[4].mxu1 %v3519_v59  ;;  %2829 = vmatpush3.bf16.msra.mxu0 %v3065_v63  ;;  %v3572_v63 = vcombine.low %v3560_v51, %v3564_v52 }
  0x58   : > { %2869 = vmatpush3.bf16.msra.mxu1 %v3066_v60  ;;  %2830 = vmatprep.subr.bf16.mxu0 %v3067_v11  ;;  %v728_v60 = vrot.slane %v726_v42, 1  ;;  %v2740_v11 = vunpack.c.h.bf16 %v2743_v0  ;;  %v736_v15 = vor.u32 %v735_v61, %v731_v43 }
  0x59   : > { %2870 = vmatprep.subr.bf16.mxu1 %v3068_v7  ;;  %v786_v7 = vld [vmem:[%s3408_s25 + $0x38] sm:$0xff]  ;;  %1345 = vmatprep.mubr.bf16.mxu1 %v3572_v63  ;;  %s629_s25 = scalar_lea.vmem %s3800_s11, %s3816_s5 }
  0x5a   : > { %v3581_v13 = vpack.c.bf16 %v786_v7, %v786_v7  ;;  %v729_v14 = vor.u32 %v728_v60, %v724_v38  ;;  %v665_v27 = vmul.f32 %v2740_v11, %v3416_v32  ;;  %v3597_v31 = vsel %vm3453_vm2, %v736_v15, 0  ;;  %v3080_v38 = vld [vmem:[#allocation2 + $0xf0] sm:$0xff]  }
  0x5b   : > { %2831 = vmatpush3.bf16.msra.mxu0 %v3069_v24  ;;  %v664_v24 = vmul.f32 %v2739_v9, %v3416_v32  ;;  %v2724_v60 = vpack.c.bf16 %v3576_v2, %v3530_v5 }
  0x5c   : > { %2871 = vmatpush3.bf16.msra.mxu1 %v3070_v21  ;;  %2832 = vmatprep.subr.bf16.mxu0 %v3071_v37  ;;  %v3077_v21 = vld [vmem:[#allocation2 + $0x28] sm:$0xff]   ;;  %v3593_v30 = vsel %vm3453_vm2, %v729_v14, 0  ;;  %v848_v34 = vshrl.u32 %v3581_v13, 16  ;;  %v850_v35 = vshll.u32 %v3581_v13, 16  ;;  %v3079_v37 = vld [vmem:[#allocation2 + $0x70] sm:$0xff]   ;;  %v679_v43 = vadd.f32 %v3421_v33, %v665_v27 }
  0x5d   : > { %2872 = vmatprep.subr.bf16.mxu1 %v3072_v29  ;;  %v843_v29 = vshll.u32 %v795_v12, 16  ;;  %v3603_v32 = vcombine.low %v3593_v30, %v3597_v31  ;;  %v3606_v42 = vadd.f32 %v3421_v33, %v664_v24  ;;  %v3081_v33 = vld [vmem:[#allocation2 + $0x30] sm:$0xff]   ;;  %v3628_v27 = vpack.c.bf16 %v786_v7, %v3576_v2  ;;  %v3085_v7 = vld [vmem:[#allocation2 + $0x38] sm:$0xff]  }
  0x5e   : > { %v3614_v0 = vpack.c.bf16 %v679_v43, %v679_v43 }
  0x5f   : > { %1346 = vmatmul.mubr.bf16.gmra.mrb[8].mxu1 %v3568_v55  ;;  %2833 = vmatpush3.bf16.msra.mxu0 %v3073_v45  ;;  %v845_v44 = vrot.slane %v843_v29, 1  ;;  %v852_v45 = vrot.slane %v850_v35, 1  ;;  %v692_v61 = vpack.c.bf16 %v3606_v42, %v3606_v42  ;;  %v2615_v29 = vcombine.low %v3486_v36, %v3497_v47 }
  0x60   : > { %2873 = vmatpush3.bf16.msra.mxu1 %v3074_v48  ;;  %2834 = vmatprep.subr.bf16.mxu0 %v3075_v8  ;;  %v3082_v48 = vld [vmem:[#allocation2 + $0xb0] sm:$0xff]   ;;  %v745_v14 = vshrl.u32 %v3614_v0, 16  ;;  %v747_v15 = vshll.u32 %v3614_v0, 16 }
  0x61   : > { %2874 = vmatprep.subr.bf16.mxu1 %v3076_v49  ;;  %v3084_v49 = vld [vmem:[#allocation2 + $0xf8] sm:$0xff]   ;;  %1280 = vmatprep.mubr.bf16.mxu0 %v3603_v32  ;;  %v846_v8 = vor.u32 %v845_v44, %v841_v28  ;;  %v853_v9 = vor.u32 %v852_v45, %v848_v34  ;;  %v738_v11 = vshrl.u32 %v692_v61, 16  ;;  %v740_v12 = vshll.u32 %v692_v61, 16  ;;  %v3088_v44 = vld [vmem:[#allocation2 + $0x1c0] sm:$0xff]  }
  0x62   : > { %1281 = vmatmul.mubr.bf16.gmra.mrb[8].mxu0 %v3586_v16  ;;  %v3086_v28 = vld [vmem:[#allocation2 + $0xb8] sm:$0xff]   ;;  %v749_v35 = vrot.slane %v747_v15, 1  ;;  %v3096_v15 = vld [vmem:[#allocation2 + $0x1d0] sm:$0xff]  }
  0x63   : > { %2835 = vmatpush3.bf16.msra.mxu0 %v3077_v21  ;;  %v3625_v24 = vsel %vm3453_vm2, %v853_v9, 0  ;;  %v3083_v21 = vld [vmem:[#allocation2 + $0x78] sm:$0xff]   ;;  %v742_v34 = vrot.slane %v740_v12, 1  ;;  %v3090_v9 = vld [vmem:[#allocation2 + $0x180] sm:$0xff]   ;;  %v3094_v12 = vld [vmem:[#allocation2 + $0x188] sm:$0xff]  }
  0x64   : > { %2875 = vmatpush3.bf16.msra.mxu1 %v3078_v18  ;;  %v3621_v18 = vsel %vm3453_vm2, %v846_v8, 0  ;;  %2836 = vmatprep.subr.bf16.mxu0 %v3079_v37  ;;  %v750_v61 = vor.u32 %v749_v35, %v745_v14  ;;  %v3087_v37 = vld [vmem:[#allocation2 + $0x140] sm:$0xff]   ;;  %v2719_v8 = vpack.c.bf16 %v3444_v57, %v3441_v54  ;;  %v3091_v14 = vld [vmem:[#allocation2 + $0x148] sm:$0xff]   ;;  %v2721_v54 = vpack.c.bf16 %v3548_v22, %v3458_v4  ;;  %v3098_v57 = vld [vmem:[#allocation2 + $0x190] sm:$0xff]  }
  0x65   : > { %2876 = vmatprep.subr.bf16.mxu1 %v3080_v38  ;;  %v3634_v38 = vcombine.low %v3621_v18, %v3625_v24  ;;  %v743_v45 = vor.u32 %v742_v34, %v738_v11  ;;  %v3089_v11 = vld [vmem:[#allocation2 + $0x100] sm:$0xff]   ;;  %v3097_v34 = vld [vmem:[#allocation2 + $0x110] sm:$0xff]   ;;  %v3102_v35 = vld [vmem:[#allocation2 + $0x198] sm:$0xff]  }
  0x66   : > { %v3642_v47 = vsel %vm3453_vm2, %v750_v61, 0  ;;  %v3099_v4 = vld [vmem:[#allocation2 + $0x158] sm:$0xff]   ;;  %v3108_v61 = vld [vmem:[#allocation2 + $0x1e8] sm:$0xff]  }
  0x67   : > { %1353 = vmatprep.mubr.bf16.mxu1 %v3634_v38  ;;  %2837 = vmatpush3.bf16.msra.mxu0 %v3081_v33  ;;  %v776_v36 = vsel %vm3453_vm2, %v743_v45, 0  ;;  %v3092_v33 = vld [vmem:[#allocation2 + $0x1c8] sm:$0xff]   ;;  %v3101_v22 = vld [vmem:[#allocation2 + $0x118] sm:$0xff]  }
  0x68   : > { %2877 = vmatpush3.bf16.msra.mxu1 %v3082_v48  ;;  %2838 = vmatprep.subr.bf16.mxu0 %v3083_v21  ;;  %v3645_v48 = vpack.c.bf16 %v679_v43, %v3606_v42  ;;  %v2619_v43 = vcombine.low %v3507_v53, %v3593_v30  ;;  %v3093_v21 = vld [vmem:[#allocation2 + $0x108] sm:$0xff]   ;;  %v2623_v53 = vcombine.low %v3597_v31, %v776_v36  ;;  %v3178_v30 = vmov 0  }
  0x69   : > { %2878 = vmatprep.subr.bf16.mxu1 %v3084_v49  ;;  %1354 = vmatmul.mubr.bf16.gmra.mrb[12].mxu1 %v3628_v27  ;;  %v3648_v49 = vcombine.low %v776_v36, %v3642_v47  ;;  %v2723_v31 = vpack.c.bf16 %v3606_v42, %v3551_v23  ;;  %v3107_v23 = vld [vmem:[#allocation2 + $0x168] sm:$0xff]   ;;  %v3179_v42 = vmov 0.0|0.0  }
  0x6a   : > { %2025 = vmatprep.mubr.bf16.mxu1 %v2615_v29  ;;  %v3095_v29 = vld [vmem:[#allocation2 + $0x150] sm:$0xff]   ;;  %v2626_v36 = vcombine.low %v3614_v0, %v3179_v42  ;;  %v2628_v41 = vcombine.low %v3581_v13, %v3179_v42 }
  0x6b   : > { %2839 = vmatpush3.bf16.msra.mxu0 %v3085_v7  ;;  %1288 = vmatprep.mubr.bf16.mxu0 %v3648_v49  ;;  %v3105_v7 = vld [vmem:[#allocation2 + $0x120] sm:$0xff]   ;;  %v3113_v0 = vld [vmem:[#allocation2 + $0x130] sm:$0xff]  }
  0x6c   : > { %2879 = vmatpush3.bf16.msra.mxu1 %v3086_v28  ;;  %2904 = vmatprep.subr.bf16.mxu0 %v3087_v37  ;;  %v756_v28 = vrot.slane %v3178_v30, 1  ;;  %v3110_v37 = vld [vmem:[#allocation2 + $0x1a8] sm:$0xff]  }
  0x6d   : > { %2944 = vmatprep.subr.bf16.mxu1 %v3088_v44  ;;  %1289 = vmatmul.mubr.bf16.gmra.mrb[12].mxu0 %v3645_v48  ;;  %v3106_v44 = vld [vmem:[#allocation2 + $0x1a0] sm:$0xff]  }
  0x6e   : > { %1960 = vmatprep.mubr.bf16.mxu0 %v3490_v40  ;;  %v3100_v40 = vld [vmem:[#allocation2 + $0x1d8] sm:$0xff]  }
  0x71   : > { %2026 = vmatmul.mubr.bf16.vlgmr.msra.gmra.mrb[16].mxu1 %v2719_v8  ;;  %v3109_v8 = vld [vmem:[#allocation2 + $0x128] sm:$0xff]  }
  0x72   : > { %2945 = vmatpush3.bf16.msra.mxu1 %v3090_v9  ;;  %2033 = vmatprep.mubr.bf16.mxu1 %v2619_v43  ;;  %v3116_v9 = vld [vmem:[#allocation2 + $0x1f8] sm:$0xff]   ;;  %v3111_v43 = vld [vmem:[#allocation2 + $0x170] sm:$0xff]  }
  0x73   : > { %2946 = vmatprep.subr.bf16.mxu1 %v3092_v33  ;;  %v3118_v33 = vld [vmem:[#allocation2 + $0x1b8] sm:$0xff]  }
  0x75   : > { %1961 = vmatmul.mubr.bf16.vlgmr.msra.gmra.mrb[16].mxu0 %v3480_v26  ;;  %v3664_v26 = vsel %vm3453_vm2, %v756_v28, 0 }
  0x76   : > { %2947 = vmatpush3.bf16.msra.mxu1 %v3094_v12  ;;  %2905 = vmatpush3.bf16.msra.mxu0 %v3089_v11  ;;  %v2627_v45 = vcombine.low %v3642_v47, %v3664_v26  ;;  %v3114_v47 = vld [vmem:[#allocation2 + $0x1b0] sm:$0xff]   ;;  %v2629_v39 = vcombine.low %v3625_v24, %v3664_v26 }
  0x77   : > { %1968 = vmatprep.mubr.bf16.mxu0 %v3511_v56  ;;  %2906 = vmatprep.subr.bf16.mxu0 %v3091_v14  ;;  %v3104_v56 = vld [vmem:[#allocation2 + $0x1e0] sm:$0xff]  }
  0x78   : > { %2948 = vmatprep.subr.bf16.mxu1 %v3096_v15 }
  0x79   : > { %2034 = vmatmul.mubr.bf16.gmra.mrb[20].mxu1 %v2721_v54 }
  0x7a   : > { %2949 = vmatpush3.bf16.msra.mxu1 %v3098_v57  ;;  %2041 = vmatprep.mubr.bf16.mxu1 %v2623_v53 }
  0x7b   : > { %2907 = vmatpush3.bf16.msra.mxu0 %v3093_v21  ;;  %2950 = vmatprep.subr.bf16.mxu1 %v3100_v40 }
  0x7c   : > { %2908 = vmatprep.subr.bf16.mxu0 %v3095_v29 }
  0x7d   : > { %1969 = vmatmul.mubr.bf16.gmra.mrb[20].mxu0 %v3535_v6  ;;  %v3112_v6 = vld [vmem:[#allocation2 + $0x1f0] sm:$0xff]  }
  0x7e   : > { %2951 = vmatpush3.bf16.msra.mxu1 %v3102_v35  ;;  %1976 = vmatprep.mubr.bf16.mxu0 %v3603_v32  ;;  %v2617_v32 = vcombine.low %v3469_v19, %v3502_v50  ;;  %v3115_v19 = vld [vmem:[#allocation2 + $0x178] sm:$0xff]   ;;  %v2621_v50 = vcombine.low %v3515_v58, %v3560_v51  ;;  %v3705_v51 = vld [vmem:[%s3797_s8] ss:$0 sm:$0xff] }
  0x7f   : > { %2909 = vmatpush3.bf16.msra.mxu0 %v3097_v34  ;;  %2952 = vmatprep.subr.bf16.mxu1 %v3104_v56 }
  0x80   : > { %2910 = vmatprep.subr.bf16.mxu0 %v3099_v4 }
  0x81   : > { %2042 = vmatmul.mubr.bf16.gmra.mrb[24].mxu1 %v2723_v31 }
  0x82   : > { %2953 = vmatpush3.bf16.msra.mxu1 %v3106_v44  ;;  %2049 = vmatprep.mubr.bf16.mxu1 %v2627_v45 }
  0x83   : > { %2911 = vmatpush3.bf16.msra.mxu0 %v3101_v22  ;;  %2954 = vmatprep.subr.bf16.mxu1 %v3108_v61 }
  0x84   : > { %2912 = vmatprep.subr.bf16.mxu0 %v3103_v1 }
  0x85   : > { %1977 = vmatmul.mubr.bf16.gmra.mrb[24].mxu0 %v3586_v16  ;;  %v3117_v16 = vld [vmem:[#allocation2 + $0x138] sm:$0xff]  }
  0x86   : > { %2955 = vmatpush3.bf16.msra.mxu1 %v3110_v37  ;;  %1984 = vmatprep.mubr.bf16.mxu0 %v3648_v49 }
  0x87   : > { %2913 = vmatpush3.bf16.msra.mxu0 %v3105_v7  ;;  %2956 = vmatprep.subr.bf16.mxu1 %v3112_v6 }
  0x88   : > { %2914 = vmatprep.subr.bf16.mxu0 %v3107_v23 }
  0x89   : > { %2050 = vmatmul.mubr.bf16.gmra.mrb[28].mxu1 %v2626_v36 }
  0x8a   : > { %2957 = vmatpush3.bf16.msra.mxu1 %v3114_v47  ;;  %2155 = vmatprep.mubr.bf16.mxu1 %v2617_v32 }
  0x8b   : > { %2915 = vmatpush3.bf16.msra.mxu0 %v3109_v8  ;;  %2958 = vmatprep.subr.bf16.mxu1 %v3116_v9 }
  0x8c   : > { %2916 = vmatprep.subr.bf16.mxu0 %v3111_v43 }
  0x8d   : > { %1985 = vmatmul.mubr.bf16.gmra.mrb[28].mxu0 %v3645_v48  ;;  %v2625_v48 = vcombine.low %v3564_v52, %v3621_v18 }
  0x8e   : > { %2959 = vmatpush3.bf16.msra.mxu1 %v3118_v33  ;;  %2090 = vmatprep.mubr.bf16.mxu0 %v3477_v25 }
  0x8f   : > { %2917 = vmatpush3.bf16.msra.mxu0 %v3113_v0 }
  0x90   : > { %2918 = vmatprep.subr.bf16.mxu0 %v3115_v19 }
  0x91   : > { %2156 = vmatmul.mubr.bf16.vlgmr.msra.gmra.mrb[32].mxu1 %v2720_v46 }
  0x92   : > { %2163 = vmatprep.mubr.bf16.mxu1 %v2621_v50 }
  0x93   : > { %2919 = vmatpush3.bf16.msra.mxu0 %v3117_v16 }
  0x96   : > { %2091 = vmatmul.mubr.bf16.vlgmr.msra.gmra.mrb[32].mxu0 %v3472_v20 }
  0x97   : > { %2098 = vmatprep.mubr.bf16.mxu0 %v3524_v62 }
  0x99   : > { %2164 = vmatmul.mubr.bf16.gmra.mrb[36].mxu1 %v2722_v10 }
  0x9a   : > { %2171 = vmatprep.mubr.bf16.mxu1 %v2625_v48 }
  0x9e   : > { %2099 = vmatmul.mubr.bf16.gmra.mrb[36].mxu0 %v3519_v59 }
  0x9f   : > { %2106 = vmatprep.mubr.bf16.mxu0 %v3572_v63 }
  0xa1   : > { %2172 = vmatmul.mubr.bf16.gmra.mrb[40].mxu1 %v2724_v60 }
  0xa2   : > { %2179 = vmatprep.mubr.bf16.mxu1 %v2629_v39 }
  0xa6   : > { %2107 = vmatmul.mubr.bf16.gmra.mrb[40].mxu0 %v3568_v55 }
  0xa7   : > { %2114 = vmatprep.mubr.bf16.mxu0 %v3634_v38 }
  0xa9   : > { %2180 = vmatmul.mubr.bf16.gmra.mrb[44].mxu1 %v2628_v41 }
  0xae   : > { %2115 = vmatmul.mubr.bf16.gmra.mrb[44].mxu0 %v3628_v27 }
 0x121   : > { %v2760_v58 = vpop.f32.mrb[0].mxu0 }
 0x122   : > { %v2800_v17 = vpop.f32.mrb[0].mxu1  ;;  %v2761_v62 = vpop.f32.mrb[1].mxu0 }
 0x123   : > { %v2801_v20 = vpop.f32.mrb[1].mxu1  ;;  %v2762_v5 = vadd.f32 %v2761_v62, %v2760_v58  ;;  %v2763_v10 = vpop.f32.mrb[2].mxu0 }
 0x124   : > { %v2802_v25 = vadd.f32 %v2801_v20, %v2800_v17  ;;  %v2803_v46 = vpop.f32.mrb[2].mxu1  ;;  %v2764_v52 = vpop.f32.mrb[3].mxu0 }
 0x125   : > { %v2804_v59 = vpop.f32.mrb[3].mxu1  ;;  %v2765_v63 = vadd.f32 %v2764_v52, %v2763_v10 }
 0x126   : > { %v2805_v3 = vadd.f32 %v2804_v59, %v2803_v46  ;;  %v1332_v55 = vadd.f32 %v2802_v25, %v2762_v5 }
 0x128   : > { %v1368_v2 = vadd.f32 %v3705_v51, %v1332_v55  ;;  %v1335_v13 = vadd.f32 %v2805_v3, %v2765_v63 }
 0x129   : > { %v2766_v38 = vpop.f32.mrb[4].mxu0 }
 0x12a   : > { %v2806_v60 = vpop.f32.mrb[4].mxu1  ;;  %v2196_v24 = vmax.f32 %v1368_v2, 0.0  ;;  %v1369_v27 = vadd.f32 %v3705_v51, %v1335_v13  ;;  %v2767_v12 = vpop.f32.mrb[5].mxu0 }
 0x12b   : > { %v2807_v18 = vpop.f32.mrb[5].mxu1  ;;  %v2768_v54 = vadd.f32 %v2767_v12, %v2766_v38  ;;  %v2769_v57 = vpop.f32.mrb[6].mxu0 }
 0x12c   : > { %v2808_v49 = vadd.f32 %v2807_v18, %v2806_v60  ;;  %v2809_v11 = vpop.f32.mrb[6].mxu1  ;;  %v2284_v15 = vpack.c.bf16 %v2196_v24, %v2196_v24  ;;  %v2197_v21 = vmax.f32 %v1369_v27, 0.0  ;;  %v2240_v53 = vmul.f32 %v2196_v24, %v2196_v24  ;;  %v2770_v40 = vpop.f32.mrb[7].mxu0 }
 0x12d   : > { %v2810_v14 = vpop.f32.mrb[7].mxu1  ;;  %v2771_v4 = vadd.f32 %v2770_v40, %v2769_v57 }
 0x12e   : > { %v2811_v30 = vadd.f32 %v2810_v14, %v2809_v11  ;;  %2292 = vst [vmem:[%s3714_s13] sm:$0xf] %v2284_v15  ;;  %v2212_v28 = vadd.f32 %v2197_v21, %v2196_v24  ;;  %v2241_v29 = vmul.f32 %v2197_v21, %v2197_v21  ;;  %v2285_v34 = vpack.c.bf16 %v2197_v21, %v2197_v21 }
 0x12f   : > { %v1340_v35 = vadd.f32 %v2808_v49, %v2768_v54 }
 0x130   : > { %v2248_v26 = vadd.f32 %v2241_v29, %v2240_v53  ;;  %2293 = vst [vmem:[%s3714_s13 + $0x8] sm:$0xf] %v2285_v34  ;;  %v1343_v22 = vadd.f32 %v2811_v30, %v2771_v4 }
 0x131   : > { %v1370_v56 = vadd.f32 %v3705_v51, %v1340_v35 }
 0x132   : > { %v2812_v44 = vpop.f32.mrb[8].mxu1  ;;  %v1371_v45 = vadd.f32 %v3705_v51, %v1343_v22 }
 0x133   : > { %v2198_v31 = vmax.f32 %v1370_v56, 0.0  ;;  %v2813_v61 = vpop.f32.mrb[9].mxu1 }
 0x134   : > { %v2814_v23 = vadd.f32 %v2813_v61, %v2812_v44  ;;  %v2815_v6 = vpop.f32.mrb[10].mxu1  ;;  %v2199_v42 = vmax.f32 %v1371_v45, 0.0 }
 0x135   : > { %v2213_v1 = vadd.f32 %v2212_v28, %v2198_v31  ;;  %v2242_v7 = vmul.f32 %v2198_v31, %v2198_v31  ;;  %v2286_v37 = vpack.c.bf16 %v2198_v31, %v2198_v31  ;;  %v2816_v36 = vpop.f32.mrb[11].mxu1  ;;  %v2772_v33 = vpop.f32.mrb[8].mxu0 }
 0x136   : > { %v2817_v47 = vadd.f32 %v2816_v36, %v2815_v6  ;;  %v2243_v9 = vmul.f32 %v2199_v42, %v2199_v42  ;;  %v2287_v43 = vpack.c.bf16 %v2199_v42, %v2199_v42  ;;  %v2773_v0 = vpop.f32.mrb[9].mxu0 }
 0x137   : > { %v2249_v32 = vadd.f32 %v2248_v26, %v2242_v7  ;;  %2294 = vst [vmem:[%s3714_s13 + $0x10] sm:$0xf] %v2286_v37  ;;  %v2214_v8 = vadd.f32 %v2213_v1, %v2199_v42  ;;  %v2774_v50 = vadd.f32 %v2773_v0, %v2772_v33  ;;  %v2775_v16 = vpop.f32.mrb[10].mxu0 }
 0x138   : > { %2295 = vst [vmem:[%s3714_s13 + $0x18] sm:$0xf] %v2287_v43  ;;  %v2776_v48 = vpop.f32.mrb[11].mxu0 }
 0x139   : > { %v2250_v19 = vadd.f32 %v2249_v32, %v2243_v9  ;;  %v1348_v39 = vadd.f32 %v2814_v23, %v2774_v50  ;;  %v2777_v41 = vadd.f32 %v2776_v48, %v2775_v16 }
 0x13b   : > { %v1372_v17 = vadd.f32 %v3705_v51, %v1348_v39  ;;  %v1351_v20 = vadd.f32 %v2817_v47, %v2777_v41 }
 0x13c   : > { %v2818_v25 = vpop.f32.mrb[12].mxu1 }
 0x13d   : > { %v2819_v46 = vpop.f32.mrb[13].mxu1  ;;  %v2200_v58 = vmax.f32 %v1372_v17, 0.0  ;;  %v1373_v59 = vadd.f32 %v3705_v51, %v1351_v20 }
 0x13e   : > { %v2820_v62 = vadd.f32 %v2819_v46, %v2818_v25  ;;  %v2821_v3 = vpop.f32.mrb[14].mxu1 }
 0x13f   : > { %v2822_v5 = vpop.f32.mrb[15].mxu1  ;;  %v2215_v10 = vadd.f32 %v2214_v8, %v2200_v58  ;;  %v2244_v52 = vmul.f32 %v2200_v58, %v2200_v58  ;;  %v2288_v55 = vpack.c.bf16 %v2200_v58, %v2200_v58  ;;  %v2201_v63 = vmax.f32 %v1373_v59, 0.0 }
 0x140   : > { %v2778_v2 = vpop.f32.mrb[12].mxu0  ;;  %v2823_v13 = vadd.f32 %v2822_v5, %v2821_v3 }
 0x141   : > { %v2251_v60 = vadd.f32 %v2250_v19, %v2244_v52  ;;  %2296 = vst [vmem:[%s3714_s13 + $0x20] sm:$0xf] %v2288_v55  ;;  %v2216_v18 = vadd.f32 %v2215_v10, %v2201_v63  ;;  %v2245_v24 = vmul.f32 %v2201_v63, %v2201_v63  ;;  %v2289_v27 = vpack.c.bf16 %v2201_v63, %v2201_v63  ;;  %v2779_v38 = vpop.f32.mrb[13].mxu0 }
 0x142   : > { %v2780_v49 = vadd.f32 %v2779_v38, %v2778_v2  ;;  %v2781_v11 = vpop.f32.mrb[14].mxu0 }
 0x143   : > { %v2252_v12 = vadd.f32 %v2251_v60, %v2245_v24  ;;  %2297 = vst [vmem:[%s3714_s13 + $0x28] sm:$0xf] %v2289_v27  ;;  %v2782_v14 = vpop.f32.mrb[15].mxu0 }
 0x144   : > { %v2880_v15 = vpop.f32.mrb[16].mxu1  ;;  %v1356_v21 = vadd.f32 %v2820_v62, %v2780_v49  ;;  %v2783_v54 = vadd.f32 %v2782_v14, %v2781_v11 }
 0x145   : > { %v2881_v57 = vpop.f32.mrb[17].mxu1 }
 0x146   : > { %v2882_v53 = vadd.f32 %v2881_v57, %v2880_v15  ;;  %v2883_v40 = vpop.f32.mrb[18].mxu1  ;;  %v1374_v30 = vadd.f32 %v3705_v51, %v1356_v21  ;;  %v1359_v28 = vadd.f32 %v2823_v13, %v2783_v54 }
 0x147   : > { %v2884_v29 = vpop.f32.mrb[19].mxu1 }
 0x148   : > { %v2885_v34 = vadd.f32 %v2884_v29, %v2883_v40  ;;  %v2202_v35 = vmax.f32 %v1374_v30, 0.0  ;;  %v1375_v4 = vadd.f32 %v3705_v51, %v1359_v28  ;;  %v2840_v26 = vpop.f32.mrb[16].mxu0 }
 0x149   : > { %v2841_v56 = vpop.f32.mrb[17].mxu0 }
 0x14a   : > { %v2217_v22 = vadd.f32 %v2216_v18, %v2202_v35  ;;  %v2246_v31 = vmul.f32 %v2202_v35, %v2202_v35  ;;  %v2290_v44 = vpack.c.bf16 %v2202_v35, %v2202_v35  ;;  %v2203_v45 = vmax.f32 %v1375_v4, 0.0  ;;  %v2843_v61 = vpop.f32.mrb[18].mxu0 }
 0x14b   : > { %v2842_v1 = vadd.f32 %v2841_v56, %v2840_v26  ;;  %v2844_v7 = vpop.f32.mrb[19].mxu0 }
 0x14c   : > { %v2886_v37 = vpop.f32.mrb[20].mxu1  ;;  %v2253_v23 = vadd.f32 %v2252_v12, %v2246_v31  ;;  %2298 = vst [vmem:[%s3714_s13 + $0x30] sm:$0xf] %v2290_v44  ;;  %v3729_v6 = vadd.f32 %v2217_v22, %v2203_v45  ;;  %v2247_v42 = vmul.f32 %v2203_v45, %v2203_v45  ;;  %v2291_v36 = vpack.c.bf16 %v2203_v45, %v2203_v45 }
 0x14d   : > { %v2887_v32 = vpop.f32.mrb[21].mxu1  ;;  %v2028_v47 = vadd.f32 %v2882_v53, %v2842_v1  ;;  %v2845_v8 = vadd.f32 %v2844_v7, %v2843_v61 }
 0x14e   : > { %v2888_v9 = vadd.f32 %v2887_v32, %v2886_v37  ;;  %v2889_v43 = vpop.f32.mrb[22].mxu1  ;;  %v3731_v33 = vadd.f32 %v2253_v23, %v2247_v42  ;;  %2299 = vst [vmem:[%s3714_s13 + $0x38] sm:$0xf] %v2291_v36 }
 0x14f   : > { %v2890_v0 = vpop.f32.mrb[23].mxu1  ;;  %v2031_v19 = vadd.f32 %v2885_v34, %v2845_v8 }
 0x150   : > { %v2891_v50 = vadd.f32 %v2890_v0, %v2889_v43  ;;  %v2846_v16 = vpop.f32.mrb[20].mxu0 }
 0x151   : > { %v2847_v48 = vpop.f32.mrb[21].mxu0 }
 0x152   : > { %v2848_v39 = vadd.f32 %v2847_v48, %v2846_v16  ;;  %v2849_v41 = vpop.f32.mrb[22].mxu0 }
 0x153   : > { %v2850_v17 = vpop.f32.mrb[23].mxu0 }
 0x154   : > { %v2892_v20 = vpop.f32.mrb[24].mxu1  ;;  %v3734_v25 = vadd.f32 %v2888_v9, %v2848_v39  ;;  %v2851_v46 = vadd.f32 %v2850_v17, %v2849_v41 }
 0x155   : > { %v2893_v58 = vpop.f32.mrb[25].mxu1 }
 0x156   : > { %v2894_v59 = vadd.f32 %v2893_v58, %v2892_v20  ;;  %v2895_v62 = vpop.f32.mrb[26].mxu1  ;;  %v3736_v3 = vadd.f32 %v2891_v50, %v2851_v46 }
 0x157   : > { %v2896_v5 = vpop.f32.mrb[27].mxu1 }
 0x158   : > { %v2897_v10 = vadd.f32 %v2896_v5, %v2895_v62  ;;  %v2852_v52 = vpop.f32.mrb[24].mxu0 }
 0x159   : > { %v2853_v55 = vpop.f32.mrb[25].mxu0 }
 0x15a   : > { %v2854_v63 = vadd.f32 %v2853_v55, %v2852_v52  ;;  %v2855_v2 = vpop.f32.mrb[26].mxu0 }
 0x15b   : > { %v2856_v13 = vpop.f32.mrb[27].mxu0 }
 0x15c   : > { %v2898_v60 = vpop.f32.mrb[28].mxu1  ;;  %v3738_v18 = vadd.f32 %v2894_v59, %v2854_v63  ;;  %v2857_v24 = vadd.f32 %v2856_v13, %v2855_v2 }
 0x15d   : > { %v2899_v27 = vpop.f32.mrb[29].mxu1 }
 0x15e   : > { %v2900_v38 = vadd.f32 %v2899_v27, %v2898_v60  ;;  %v2901_v49 = vpop.f32.mrb[30].mxu1  ;;  %v3740_v11 = vadd.f32 %v2897_v10, %v2857_v24 }
 0x15f   : > { %v2902_v12 = vpop.f32.mrb[31].mxu1 }
 0x160   : > { %v2903_v14 = vadd.f32 %v2902_v12, %v2901_v49  ;;  %v2858_v15 = vpop.f32.mrb[28].mxu0 }
 0x161   : > { %v2859_v21 = vpop.f32.mrb[29].mxu0 }
 0x162   : > { %v2860_v54 = vadd.f32 %v2859_v21, %v2858_v15  ;;  %v2861_v57 = vpop.f32.mrb[30].mxu0 }
 0x163   : > { %v2862_v53 = vpop.f32.mrb[31].mxu0 }
 0x164   : > { %v2960_v40 = vpop.f32.mrb[32].mxu1  ;;  %v3742_v30 = vadd.f32 %v2900_v38, %v2860_v54  ;;  %v2863_v28 = vadd.f32 %v2862_v53, %v2861_v57 }
 0x165   : > { %v2961_v29 = vpop.f32.mrb[33].mxu1 }
 0x166   : > { %v2962_v34 = vadd.f32 %v2961_v29, %v2960_v40  ;;  %v2963_v35 = vpop.f32.mrb[34].mxu1  ;;  %v3744_v4 = vadd.f32 %v2903_v14, %v2863_v28 }
 0x167   : > { %v2964_v26 = vpop.f32.mrb[35].mxu1 }
 0x168   : > { %v2965_v56 = vadd.f32 %v2964_v26, %v2963_v35 }
 0x169   : > { %v2920_v22 = vpop.f32.mrb[32].mxu0 }
 0x16a   : > { %v2921_v31 = vpop.f32.mrb[33].mxu0 }
 0x16b   : > { %v2922_v44 = vadd.f32 %v2921_v31, %v2920_v22  ;;  %v2923_v45 = vpop.f32.mrb[34].mxu0 }
 0x16c   : > { %v2924_v61 = vpop.f32.mrb[35].mxu0  ;;  %v2966_v1 = vpop.f32.mrb[36].mxu1 }
 0x16d   : > { %v2093_v7 = vadd.f32 %v2922_v44, %v2028_v47  ;;  %v2925_v37 = vadd.f32 %v2924_v61, %v2923_v45  ;;  %v2967_v23 = vpop.f32.mrb[37].mxu1 }
 0x16e   : > { %v2968_v42 = vadd.f32 %v2967_v23, %v2966_v1  ;;  %v2969_v36 = vpop.f32.mrb[38].mxu1 }
 0x16f   : > { %v2158_v32 = vadd.f32 %v2962_v34, %v2093_v7  ;;  %v2096_v8 = vadd.f32 %v2925_v37, %v2031_v19  ;;  %v2970_v9 = vpop.f32.mrb[39].mxu1 }
 0x170   : > { %v2971_v43 = vadd.f32 %v2970_v9, %v2969_v36 }
 0x171   : > { %v2188_v0 = vadd.f32 %v3705_v51, %v2158_v32  ;;  %v2161_v50 = vadd.f32 %v2965_v56, %v2096_v8  ;;  %v2926_v16 = vpop.f32.mrb[36].mxu0 }
 0x172   : > { %v2927_v48 = vpop.f32.mrb[37].mxu0 }
 0x173   : > { %v2204_v39 = vmax.f32 %v2188_v0, 0.0  ;;  %v2189_v41 = vadd.f32 %v3705_v51, %v2161_v50  ;;  %v2928_v17 = vadd.f32 %v2927_v48, %v2926_v16  ;;  %v2929_v20 = vpop.f32.mrb[38].mxu0 }
 0x174   : > { %v2930_v47 = vpop.f32.mrb[39].mxu0  ;;  %v2972_v46 = vpop.f32.mrb[40].mxu1 }
 0x175   : > { %v2300_v58 = vpack.c.bf16 %v2204_v39, %v2204_v39  ;;  %v2205_v59 = vmax.f32 %v2189_v41, 0.0  ;;  %v2101_v19 = vadd.f32 %v2928_v17, %v3734_v25  ;;  %v2973_v62 = vpop.f32.mrb[41].mxu1  ;;  %v2261_v5 = vmul.f32 %v2204_v39, %v2204_v39 }
 0x176   : > { %v2931_v10 = vadd.f32 %v2930_v47, %v2929_v20  ;;  %v2974_v52 = vadd.f32 %v2973_v62, %v2972_v46  ;;  %v2975_v55 = vpop.f32.mrb[42].mxu1 }
 0x177   : > { %2694 = vst [vmem:[%s3714_s13 + $0x4] sm:$0xf] %v2300_v58  ;;  %v2225_v63 = vadd.f32 %v2205_v59, %v2204_v39  ;;  %v2262_v2 = vmul.f32 %v2205_v59, %v2205_v59  ;;  %v2301_v13 = vpack.c.bf16 %v2205_v59, %v2205_v59  ;;  %v2166_v60 = vadd.f32 %v2968_v42, %v2101_v19  ;;  %v2976_v24 = vpop.f32.mrb[43].mxu1 }
 0x178   : > { %v2104_v27 = vadd.f32 %v2931_v10, %v3736_v3  ;;  %v2977_v38 = vadd.f32 %v2976_v24, %v2975_v55  ;;  %v2219_v58 = vrot.slane %v3729_v6, 4 }
 0x179   : > { %v2269_v49 = vadd.f32 %v2262_v2, %v2261_v5  ;;  %2695 = vst [vmem:[%s3714_s13 + $0xc] sm:$0xf] %v2301_v13  ;;  %v2190_v12 = vadd.f32 %v3705_v51, %v2166_v60  ;;  %v2932_v14 = vpop.f32.mrb[40].mxu0 }
 0x17a   : > { %v2169_v25 = vadd.f32 %v2971_v43, %v2104_v27  ;;  %v2933_v15 = vpop.f32.mrb[41].mxu0  ;;  %v2220_v60 = vadd.f32 %v2219_v58, %v3729_v6 }
 0x17b   : > { %v2206_v21 = vmax.f32 %v2190_v12, 0.0  ;;  %v2934_v54 = vadd.f32 %v2933_v15, %v2932_v14  ;;  %v2935_v57 = vpop.f32.mrb[42].mxu0 }
 0x17c   : > { %v2191_v53 = vadd.f32 %v3705_v51, %v2169_v25  ;;  %v2936_v40 = vpop.f32.mrb[43].mxu0  ;;  %v2978_v28 = vpop.f32.mrb[44].mxu1  ;;  %v2221_v25 = vrot.slane %v2220_v60, 2 }
 0x17d   : > { %v2226_v29 = vadd.f32 %v2225_v63, %v2206_v21  ;;  %v2263_v34 = vmul.f32 %v2206_v21, %v2206_v21  ;;  %v2302_v35 = vpack.c.bf16 %v2206_v21, %v2206_v21  ;;  %v2109_v3 = vadd.f32 %v2934_v54, %v3738_v18  ;;  %v2979_v26 = vpop.f32.mrb[45].mxu1 }
 0x17e   : > { %v2207_v56 = vmax.f32 %v2191_v53, 0.0  ;;  %v2937_v22 = vadd.f32 %v2936_v40, %v2935_v57  ;;  %v2980_v31 = vadd.f32 %v2979_v26, %v2978_v28  ;;  %v2981_v44 = vpop.f32.mrb[46].mxu1  ;;  %v2255_v63 = vrot.slane %v3731_v33, 4 }
 0x17f   : > { %v2270_v45 = vadd.f32 %v2269_v49, %v2263_v34  ;;  %2696 = vst [vmem:[%s3714_s13 + $0x14] sm:$0xf] %v2302_v35  ;;  %v2174_v61 = vadd.f32 %v2974_v52, %v2109_v3  ;;  %v2982_v1 = vpop.f32.mrb[47].mxu1  ;;  %v2222_v6 = vadd.f32 %v2221_v25, %v2220_v60 }
 0x180   : > { %v2227_v7 = vadd.f32 %v2226_v29, %v2207_v56  ;;  %v2264_v37 = vmul.f32 %v2207_v56, %v2207_v56  ;;  %v2303_v23 = vpack.c.bf16 %v2207_v56, %v2207_v56  ;;  %v2112_v42 = vadd.f32 %v2937_v22, %v3740_v11 }
 0x181   : > { %v2192_v36 = vadd.f32 %v3705_v51, %v2174_v61  ;;  %v2938_v32 = vpop.f32.mrb[44].mxu0  ;;  %v2983_v8 = vadd.f32 %v2982_v1, %v2981_v44  ;;  %v2256_v12 = vadd.f32 %v2255_v63, %v3731_v33  ;;  %v2223_v33 = vrot.slane %v2222_v6, 1 }
 0x182   : > { %v2271_v18 = vadd.f32 %v2270_v45, %v2264_v37  ;;  %2697 = vst [vmem:[%s3714_s13 + $0x1c] sm:$0xf] %v2303_v23  ;;  %v2177_v9 = vadd.f32 %v2977_v38, %v2112_v42  ;;  %v2939_v43 = vpop.f32.mrb[45].mxu0 }
 0x183   : > { %v2208_v0 = vmax.f32 %v2192_v36, 0.0  ;;  %v2940_v50 = vadd.f32 %v2939_v43, %v2938_v32  ;;  %v2941_v16 = vpop.f32.mrb[46].mxu0  ;;  %v2257_v57 = vrot.slane %v2256_v12, 2  ;;  %v2224_v44 = vadd.f32 %v2223_v33, %v2222_v6 }
 0x184   : > { %v2193_v48 = vadd.f32 %v3705_v51, %v2177_v9  ;;  %v2942_v39 = vpop.f32.mrb[47].mxu0 }
 0x185   : > { %v2228_v41 = vadd.f32 %v2227_v7, %v2208_v0  ;;  %v2265_v17 = vmul.f32 %v2208_v0, %v2208_v0  ;;  %v2304_v20 = vpack.c.bf16 %v2208_v0, %v2208_v0  ;;  %v2117_v11 = vadd.f32 %v2940_v50, %v3742_v30 }
 0x186   : > { %v2209_v47 = vmax.f32 %v2193_v48, 0.0  ;;  %v2943_v46 = vadd.f32 %v2942_v39, %v2941_v16  ;;  %v2258_v29 = vadd.f32 %v2257_v57, %v2256_v12 }
 0x187   : > { %v2272_v59 = vadd.f32 %v2271_v18, %v2265_v17  ;;  %2698 = vst [vmem:[%s3714_s13 + $0x24] sm:$0xf] %v2304_v20  ;;  %v2182_v19 = vadd.f32 %v2980_v31, %v2117_v11 }
 0x188   : > { %v2229_v62 = vadd.f32 %v2228_v41, %v2209_v47  ;;  %v2266_v5 = vmul.f32 %v2209_v47, %v2209_v47  ;;  %v2305_v10 = vpack.c.bf16 %v2209_v47, %v2209_v47  ;;  %v2120_v52 = vadd.f32 %v2943_v46, %v3744_v4 }
 0x189   : > { %v2194_v55 = vadd.f32 %v3705_v51, %v2182_v19  ;;  %v2259_v56 = vrot.slane %v2258_v29, 1 }
 0x18a   : > { %v2273_v2 = vadd.f32 %v2272_v59, %v2266_v5  ;;  %2699 = vst [vmem:[%s3714_s13 + $0x2c] sm:$0xf] %v2305_v10  ;;  %v2185_v30 = vadd.f32 %v2983_v8, %v2120_v52 }
 0x18b   : > { %v2210_v13 = vmax.f32 %v2194_v55, 0.0  ;;  %v2260_v1 = vadd.f32 %v2259_v56, %v2258_v29 }
 0x18c   : > { %v2195_v24 = vadd.f32 %v3705_v51, %v2185_v30 }
 0x18d   : > { %v2230_v27 = vadd.f32 %v2229_v62, %v2210_v13  ;;  %v2267_v38 = vmul.f32 %v2210_v13, %v2210_v13  ;;  %v2306_v49 = vpack.c.bf16 %v2210_v13, %v2210_v13 }
 0x18e   : > { %v2211_v14 = vmax.f32 %v2195_v24, 0.0 }
 0x18f   : > { %v2274_v4 = vadd.f32 %v2273_v2, %v2267_v38  ;;  %2700 = vst [vmem:[%s3714_s13 + $0x34] sm:$0xf] %v2306_v49 }
 0x190   : > { %v2231_v15 = vadd.f32 %v2230_v27, %v2211_v14  ;;  %v2268_v21 = vmul.f32 %v2211_v14, %v2211_v14  ;;  %v2307_v54 = vpack.c.bf16 %v2211_v14, %v2211_v14 }
 0x192   : > { %v2232_v53 = vrot.slane %v2231_v15, 4  ;;  %v2275_v40 = vadd.f32 %v2274_v4, %v2268_v21  ;;  %2701 = vst [vmem:[%s3714_s13 + $0x3c] sm:$0xf] %v2307_v54 }
 0x194   : > { %v2233_v28 = vadd.f32 %v2232_v53, %v2231_v15  ;;  %v2276_v51 = vrot.slane %v2275_v40, 4 }
 0x196   : > { %v2234_v34 = vrot.slane %v2233_v28, 2  ;;  %v2277_v35 = vadd.f32 %v2276_v51, %v2275_v40 }
 0x198   : > { %v2235_v3 = vadd.f32 %v2234_v34, %v2233_v28  ;;  %v2278_v26 = vrot.slane %v2277_v35, 2 }
 0x19a   : > { %v2236_v22 = vrot.slane %v2235_v3, 1  ;;  %v2279_v31 = vadd.f32 %v2278_v26, %v2277_v35 }
 0x19c   : > { %v2237_v45 = vadd.f32 %v2236_v22, %v2235_v3  ;;  %v2280_v61 = vrot.slane %v2279_v31, 1 }
 0x19e   : > { %v2238_v7 = vadd.f32 %v2237_v45, %v2224_v44  ;;  %v2281_v37 = vadd.f32 %v2280_v61, %v2279_v31 }
 0x1a0   : > { %2239 = vst [vmem:[%s623_s15] sm:$0x1] %v2238_v7  ;;  %v2282_v23 = vadd.f32 %v2281_v37, %v2260_v1 }
 0x1a2   : > { %2283 = vst [vmem:[%s629_s25] sm:$0x1] %v2282_v23 }
 0x1a3 PF: > { %s23_s17 = sadd.s32 1, %s3173_s17   ;;  %s3811_s5 = smov %s3169_s16 }
 0x1a4   : > { %p20_p4 = scmp.ge.s32.totalorder %s23_s17, 4   ;;  %s3812_s16 = smov %s3814_s19 }
 0x1a6   :  { %22 = sbr.rel (!%p20_p4) target bundleno = 2 (0x2), region = 125 }
 0x1ad   :  { %2385 = vsyncpa [#allocation3], 1 }
 0x1ae   :  { %2387 = vsyncpa [#allocation3 + $0x1], 1 }

// kernel: up_forward.5
= control target key start
LH: loop header
LB: loop body
LE: loop exit
PB: predicated region body
PF: predicated region fallthrough
CT: control target
= control target key end

     0   :  { %s4159_s16 = smov 0   ;;  %s4161_s5 = smov 0   ;;  %s5120_s0 = inlined_call_operand.vmem [shape: bf16[2,16,16,64], index: 0, kind: input, shape index: {}, may-alias: {0,1}]   ;;  %s5121_s1 = inlined_call_operand.vmem [shape: bf16[2,16,16,64], index: 1, kind: input, shape index: {}, may-alias: {0,1}]   ;;  %s5122_s2 = inlined_call_operand.vmem [shape: f32[1,1,64], index: 2, kind: input, shape index: {}]   ;;  %s5123_s3 = inlined_call_operand.vmem [shape: f32[1,1,64], index: 3, kind: input, shape index: {}]   ;;  %s5124_s4 = inlined_call_operand.vmem [shape: f32[2,16,16,64], index: 4, kind: input, shape index: {}, may-alias: {4,5}]   ;;  %s5125_s5 = inlined_call_operand.vmem [shape: f32[2,16,16,64], index: 5, kind: input, shape index: {}, may-alias: {4,5}]   ;;  %s5126_s6 = inlined_call_operand.vmem [shape: bf16[256,128], index: 6, kind: input, shape index: {}]   ;;  %s5127_s7 = inlined_call_operand.vmem [shape: bf16[512,128], index: 7, kind: input, shape index: {}]   ;;  %s5128_s8 = inlined_call_operand.vmem [shape: f32[1,128], index: 8, kind: input, shape index: {}]   ;;  %s5129_s9 = inlined_call_operand.vmem [shape: bf16[2,16,2,16,128], index: 9, kind: output, shape index: {0}]   ;;  %s5130_s10 = inlined_call_operand.vmem [shape: f32[2,1,1,128], index: 10, kind: output, shape index: {1}]   ;;  %s5131_s11 = inlined_call_operand.vmem [shape: f32[2,1,1,128], index: 11, kind: output, shape index: {2}]  }
   0x1   :  { %s4163_s17 = smov 0  }
   0x2 LB: > { %s34_s18 = sadd.s32 1, %s4091_s5  ;;  %p3140_p0 = scmp.ge.s32.totalorder %s4095_s17, 1  ;;  %s4095_s17 = sphi %s4163_s17, %s22_s17   ;;  %s4091_s5 = sphi %s4161_s5, %s5135_s5   ;;  %s4087_s16 = sphi %s4159_s16, %s5134_s16  }
   0x3   : > { %p36_p1 = scmp.ge.s32.totalorder %s34_s18, 2  ;;  %p450_p2 = scmp.lt.s32.totalorder %s4095_s17, 3 }
   0x5   : > { %s5137_s18 = smov (%p36_p1, %s34_s18), 0  ;;  %p451_p3 = pnand %p3140_p0, %p450_p2 }
   0x6   : > { %p549_p4 = scmp.lt.s32.totalorder (!%p451_p3), %s4087_s16, 1  ;;  %v4024_v0 = vld [vmem:[%s5126_s6 + $0x40] sm:$0xff] (!%p451_p3)   ;;  %v4026_v2 = vld [vmem:[%s5126_s6 + $0x48] sm:$0xff] (!%p451_p3)   ;;  %vm937_vm0 = vcmask (!%p451_p3), 1047552   ;;  %vm938_vm1 = vsmask.f32 (!%p451_p3), 7424 }
   0x7   : > { %454 = sbr.rel (%p451_p3) target bundleno = 586 (0x24a), region = 56  ;;  %3641 = vmatprep.subr.bf16.mxu0 (!%p451_p3), %v4024_v0  ;;  %v4025_v1 = vld [vmem:[%s5126_s6] sm:$0xff] (!%p451_p3)   ;;  %3977 = vmatprep.subr.bf16.mxu1 (!%p451_p3), %v4024_v0  ;;  %v4027_v3 = vld [vmem:[%s5126_s6 + $0x8] sm:$0xff] (!%p451_p3)   ;;  %vm4240_vm2 = vmand (!%p451_p3), %vm937_vm0, %vm938_vm1  ;;  %s4097_s22 = smov (!%p451_p3), 64   ;;  %vm1260_vm3 = vcmask (!%p451_p3), 523264  }
   0x8   : > { %3642 = vmatpush3.bf16.msra.mxu0 (!%p451_p3), %v4025_v1  ;;  %3985 = vmatpush3.bf16.msra.mxu1 (!%p451_p3), %v4025_v1  ;;  %v4208_v4 = vld [vmem:[%s5122_s2] ss:$0 sm:$0xff] (!%p451_p3) }
   0x9   : > { %3643 = vmatprep.subr.bf16.mxu0 (!%p451_p3), %v4026_v2  ;;  %3978 = vmatprep.subr.bf16.mxu1 (!%p451_p3), %v4026_v2  ;;  %v4227_v19 = vld [vmem:[%s5123_s3] ss:$0 sm:$0xff] (!%p451_p3) }
   0xa   : > { %v4043_v31 = vld [vmem:[%s5127_s7 + $0x80] sm:$0xff] (!%p451_p3)  }
   0xc   : > { %3644 = vmatpush3.bf16.msra.mxu0 (!%p451_p3), %v4027_v3  ;;  %3986 = vmatpush3.bf16.msra.mxu1 (!%p451_p3), %v4027_v3 }
   0xe   : > { %s5139_s16 = smov (!%p549_p4, %s4087_s16), 1 }
   0xf   : > { %s3303_s23 = sshll.u32 %s5139_s16, 8  ;;  %s3300_s24 = sshll.u32 %s5139_s16, 7 }
  0x10   : > { %s4198_s30 = scalar_lea.vmem %s5124_s4, %s3303_s23  ;;  %s4203_s14 = scalar_lea.vmem %s5120_s0, %s3300_s24 }
  0x11   : > { %v957_v5 = vld [vmem:[%s4198_s30] sm:$0xff]  ;;  %v958_v6 = vld [vmem:[%s4198_s30 + $0x8] sm:$0xff]  ;;  %v959_v11 = vld [vmem:[%s4198_s30 + $0x10] sm:$0xff]  ;;  %s620_s27 = scalar_lea.vmem %s5130_s10, %s5139_s16  ;;  %s626_s29 = scalar_lea.vmem %s5131_s11, %s5139_s16 }
  0x12   : > { %v973_v7 = vld [vmem:[%s4198_s30 + $0x80] sm:$0xff]  ;;  %v4213_v8 = vpack.c.bf16 %v958_v6, %v957_v5  ;;  %v974_v9 = vld [vmem:[%s4198_s30 + $0x88] sm:$0xff]  ;;  %v960_v15 = vld [vmem:[%s4198_s30 + $0x18] sm:$0xff] }
  0x13   : > { %v3372_v10 = vld [vmem:[%s4203_s14] sm:$0xff]   ;;  %v4218_v12 = vpack.c.bf16 %v974_v9, %v973_v7  ;;  %v4229_v20 = vpack.c.bf16 %v960_v15, %v959_v11  ;;  %v3595_v26 = vld [vmem:[%s4203_s14 + $0x8] sm:$0xff]   ;;  %v975_v44 = vld [vmem:[%s4198_s30 + $0x90] sm:$0xff] }
  0x14   : > { %v3373_v13 = vunpack.c.l.bf16 %v3372_v10  ;;  %v3374_v14 = vunpack.c.h.bf16 %v3372_v10  ;;  %v3602_v16 = vld [vmem:[%s4203_s14 + $0x40] sm:$0xff]   ;;  %v1011_v17 = vshrl.u32 %v4213_v8, 16  ;;  %v1013_v18 = vshll.u32 %v4213_v8, 16  ;;  %v976_v45 = vld [vmem:[%s4198_s30 + $0x98] sm:$0xff]  ;;  %v962_v51 = vld [vmem:[%s4198_s30 + $0x28] sm:$0xff] }
  0x15   : > { %v3405_v21 = vunpack.c.l.bf16 %v3602_v16  ;;  %v1067_v22 = vshrl.u32 %v4218_v12, 16  ;;  %v1069_v23 = vshll.u32 %v4218_v12, 16  ;;  %v1018_v28 = vshrl.u32 %v4229_v20, 16  ;;  %v961_v50 = vld [vmem:[%s4198_s30 + $0x20] sm:$0xff]  ;;  %v3603_v52 = vld [vmem:[%s4203_s14 + $0x48] sm:$0xff]  }
  0x16   : > { %v705_v24 = vmul.f32 %v3373_v13, %v4208_v4  ;;  %v706_v25 = vmul.f32 %v3374_v14, %v4208_v4  ;;  %v1015_v27 = vrot.slane %v1013_v18, 1  ;;  %v1020_v29 = vshll.u32 %v4229_v20, 16  ;;  %v978_v18 = vld [vmem:[%s4198_s30 + $0xa8] sm:$0xff] }
  0x17   : > { %v3406_v30 = vunpack.c.h.bf16 %v3602_v16  ;;  %v1071_v32 = vrot.slane %v1069_v23, 1  ;;  %v721_v35 = vmul.f32 %v3405_v21, %v4208_v4  ;;  %v3377_v39 = vunpack.c.l.bf16 %v3595_v26  ;;  %v3596_v16 = vld [vmem:[%s4203_s14 + $0x10] sm:$0xff]  }
  0x18   : > { %v743_v33 = vadd.f32 %v4227_v19, %v705_v24  ;;  %v744_v34 = vadd.f32 %v4227_v19, %v706_v25  ;;  %v1016_v36 = vor.u32 %v1015_v27, %v1011_v17  ;;  %v1022_v37 = vrot.slane %v1020_v29, 1  ;;  %v977_v17 = vld [vmem:[%s4198_s30 + $0xa0] sm:$0xff]  ;;  %v963_v25 = vld [vmem:[%s4198_s30 + $0x30] sm:$0xff] }
  0x19   : > { %v722_v38 = vmul.f32 %v3406_v30, %v4208_v4  ;;  %v1072_v40 = vor.u32 %v1071_v32, %v1067_v22  ;;  %v759_v42 = vadd.f32 %v4227_v19, %v721_v35  ;;  %v3378_v43 = vunpack.c.h.bf16 %v3595_v26  ;;  %v964_v26 = vld [vmem:[%s4198_s30 + $0x38] sm:$0xff]  ;;  %v4028_v27 = vld [vmem:[%s5126_s6 + $0x50] sm:$0xff]  }
  0x1a   : > { %v4248_v41 = vpack.c.bf16 %v744_v34, %v743_v33  ;;  %v1146_v46 = vsel %vm4240_vm2, %v1016_v36, 0  ;;  %v1023_v47 = vor.u32 %v1022_v37, %v1018_v28  ;;  %v707_v49 = vmul.f32 %v3377_v39, %v4208_v4  ;;  %v3604_v33 = vld [vmem:[%s4203_s14 + $0x50] sm:$0xff]   ;;  %3645 = vmatprep.subr.bf16.mxu0 %v4028_v27  ;;  %3979 = vmatprep.subr.bf16.mxu1 %v4028_v27 }
  0x1b   : > { %v760_v48 = vadd.f32 %v4227_v19, %v722_v38  ;;  %1228 = vrot.lane.b32.xlu0 %v1146_v46, %s4097_s22  ;;  %v1154_v53 = vsel %vm4240_vm2, %v1072_v40, 0  ;;  %v708_v56 = vmul.f32 %v3378_v43, %v4208_v4  ;;  %v4271_v60 = vpack.c.bf16 %v976_v45, %v975_v44  ;;  %v4029_v38 = vld [vmem:[%s5126_s6 + $0x10] sm:$0xff]   ;;  %v4030_v44 = vld [vmem:[%s5126_s6 + $0x58] sm:$0xff]  }
  0x1c   : > { %v802_v54 = vshrl.u32 %v4248_v41, 16  ;;  %v804_v55 = vshll.u32 %v4248_v41, 16  ;;  %v1147_v57 = vsel %vm4240_vm2, %v1023_v47, 0  ;;  %v745_v59 = vadd.f32 %v4227_v19, %v707_v49  ;;  %v4031_v45 = vld [vmem:[%s5126_s6 + $0x18] sm:$0xff]   ;;  %3646 = vmatpush3.bf16.msra.mxu0 %v4029_v38  ;;  %3987 = vmatpush3.bf16.msra.mxu1 %v4029_v38 }
  0x1d   : > { %v4268_v58 = vpack.c.bf16 %v760_v48, %v759_v42  ;;  %v746_v62 = vadd.f32 %v4227_v19, %v708_v56  ;;  %v4274_v63 = vpack.c.bf16 %v962_v51, %v961_v50  ;;  %v3409_v0 = vunpack.c.l.bf16 %v3603_v52  ;;  %v4032_v50 = vld [vmem:[%s5126_s6 + $0x60] sm:$0xff]   ;;  %3647 = vmatprep.subr.bf16.mxu0 %v4030_v44  ;;  %3980 = vmatprep.subr.bf16.mxu1 %v4030_v44  ;;  %v4036_v44 = vld [vmem:[%s5126_s6 + $0x70] sm:$0xff]  }
  0x1e   : > { %v806_v61 = vrot.slane %v804_v55, 1  ;;  %v1074_v3 = vshrl.u32 %v4271_v60, 16  ;;  %v1076_v5 = vshll.u32 %v4271_v60, 16  ;;  %v3410_v14 = vunpack.c.h.bf16 %v3603_v52 }
  0x1f   : > { %v858_v1 = vshrl.u32 %v4268_v58, 16  ;;  %v860_v2 = vshll.u32 %v4268_v58, 16  ;;  %1244 = vrot.lane.b32.xlu0 %v1154_v53, %s4097_s22  ;;  %v4281_v7 = vpack.c.bf16 %v746_v62, %v745_v59  ;;  %v1025_v9 = vshrl.u32 %v4274_v63, 16 }
  0x20   : > { %v807_v6 = vor.u32 %v806_v61, %v802_v54  ;;  %v1027_v10 = vshll.u32 %v4274_v63, 16  ;;  %v1078_v13 = vrot.slane %v1076_v5, 1  ;;  %v723_v15 = vmul.f32 %v3409_v0, %v4208_v4  ;;  %v3597_v61 = vld [vmem:[%s4203_s14 + $0x18] sm:$0xff]   ;;  %3648 = vmatpush3.bf16.msra.mxu0 %v4031_v45  ;;  %3988 = vmatpush3.bf16.msra.mxu1 %v4031_v45 }
  0x21   : > { %v862_v11 = vrot.slane %v860_v2, 1  ;;  %v809_v22 = vshrl.u32 %v4281_v7, 16  ;;  %v811_v23 = vshll.u32 %v4281_v7, 16  ;;  %v724_v30 = vmul.f32 %v3410_v14, %v4208_v4  ;;  %v4033_v14 = vld [vmem:[%s5126_s6 + $0x20] sm:$0xff]   ;;  %3649 = vmatprep.subr.bf16.mxu0 %v4032_v50  ;;  %3981 = vmatprep.subr.bf16.mxu1 %v4032_v50 }
  0x22   : > { %v940_v21 = vsel %vm4240_vm2, %v807_v6, 0  ;;  %v1029_v24 = vrot.slane %v1027_v10, 1  ;;  %v1079_v29 = vor.u32 %v1078_v13, %v1074_v3  ;;  %v761_v32 = vadd.f32 %v4227_v19, %v723_v15  ;;  %v979_v10 = vld [vmem:[%s4198_s30 + $0xb0] sm:$0xff]  ;;  %v965_v13 = vld [vmem:[%s4198_s30 + $0x40] sm:$0xff] }
  0x23   : > { %1180 = vrot.lane.b32.xlu1 %v940_v21, %s4097_s22  ;;  %v863_v28 = vor.u32 %v862_v11, %v858_v1  ;;  %1230 = vrot.lane.b32.xlu0 %v1147_v57, %s4097_s22  ;;  %v813_v34 = vrot.slane %v811_v23, 1  ;;  %v3381_v36 = vunpack.c.l.bf16 %v3596_v16  ;;  %v3382_v37 = vunpack.c.h.bf16 %v3596_v16  ;;  %v980_v11 = vld [vmem:[%s4198_s30 + $0xb8] sm:$0xff]  ;;  %v4034_v21 = vld [vmem:[%s5126_s6 + $0x68] sm:$0xff]  }
  0x24   : > { %v1030_v35 = vor.u32 %v1029_v24, %v1025_v9  ;;  %v1155_v40 = vsel %vm4240_vm2, %v1079_v29, 0  ;;  %v762_v42 = vadd.f32 %v4227_v19, %v724_v30  ;;  %v4311_v43 = vpack.c.bf16 %v978_v18, %v977_v17  ;;  %3650 = vmatpush3.bf16.msra.mxu0 %v4033_v14  ;;  %3989 = vmatpush3.bf16.msra.mxu1 %v4033_v14  ;;  %v981_v14 = vld [vmem:[%s4198_s30 + $0xc0] sm:$0xff] }
  0x25   : > { %v948_v39 = vsel %vm4240_vm2, %v863_v28, 0  ;;  %v814_v46 = vor.u32 %v813_v34, %v809_v22  ;;  %v709_v48 = vmul.f32 %v3381_v36, %v4208_v4  ;;  %v710_v49 = vmul.f32 %v3382_v37, %v4208_v4  ;;  %v3605_v36 = vld [vmem:[%s4203_s14 + $0x58] sm:$0xff]   ;;  %v4035_v37 = vld [vmem:[%s5126_s6 + $0x28] sm:$0xff]   ;;  %3651 = vmatprep.subr.bf16.mxu0 %v4034_v21  ;;  %3982 = vmatprep.subr.bf16.mxu1 %v4034_v21 }
  0x26   : > { %v1148_v47 = vsel %vm4240_vm2, %v1030_v35, 0  ;;  %v4327_v51 = vpack.c.bf16 %v762_v42, %v761_v32  ;;  %v1081_v52 = vshrl.u32 %v4311_v43, 16  ;;  %v1083_v53 = vshll.u32 %v4311_v43, 16  ;;  %v4039_v21 = vld [vmem:[%s5126_s6 + $0x38] sm:$0xff]  }
  0x27   : > { %1196 = vrot.lane.b32.xlu1 %v948_v39, %s4097_s22  ;;  %v4331_v54 = vpack.c.bf16 %v964_v26, %v963_v25  ;;  %v941_v55 = vsel %vm4240_vm2, %v814_v46, 0  ;;  %v747_v56 = vadd.f32 %v4227_v19, %v709_v48  ;;  %v748_v57 = vadd.f32 %v4227_v19, %v710_v49  ;;  %v966_v26 = vld [vmem:[%s4198_s30 + $0x48] sm:$0xff]  ;;  %v3598_v49 = vld [vmem:[%s4203_s14 + $0x20] sm:$0xff]  }
  0x28   : > { %v3413_v59 = vunpack.c.l.bf16 %v3604_v33  ;;  %1182 = vrot.lane.b32.xlu0 %v941_v55, %s4097_s22  ;;  %v865_v62 = vshrl.u32 %v4327_v51, 16  ;;  %v867_v0 = vshll.u32 %v4327_v51, 16  ;;  %v1085_v1 = vrot.slane %v1083_v53, 1  ;;  %3652 = vmatpush3.bf16.msra.mxu0 %v4035_v37 }
  0x29   : > { %v1032_v2 = vshrl.u32 %v4331_v54, 16  ;;  %v4342_v3 = vpack.c.bf16 %v748_v57, %v747_v56  ;;  %v1034_v5 = vshll.u32 %v4331_v54, 16  ;;  %v3414_v6 = vunpack.c.h.bf16 %v3604_v33  ;;  %3990 = vmatpush3.bf16.msra.mxu1 %v4035_v37  ;;  %3653 = vmatprep.subr.bf16.mxu0 %v4036_v44 }
  0x2a   : > { %v725_v9 = vmul.f32 %v3413_v59, %v4208_v4  ;;  %v869_v15 = vrot.slane %v867_v0, 1  ;;  %v1086_v16 = vor.u32 %v1085_v1, %v1081_v52  ;;  %v3385_v17 = vunpack.c.l.bf16 %v3597_v61  ;;  %3983 = vmatprep.subr.bf16.mxu1 %v4036_v44 }
  0x2b   : > { %1246 = vrot.lane.b32.xlu1 %v1155_v40, %s4097_s22  ;;  %v3386_v18 = vunpack.c.h.bf16 %v3597_v61  ;;  %v816_v22 = vshrl.u32 %v4342_v3, 16  ;;  %v818_v23 = vshll.u32 %v4342_v3, 16  ;;  %v1036_v24 = vrot.slane %v1034_v5, 1 }
  0x2c   : > { %v726_v25 = vmul.f32 %v3414_v6, %v4208_v4  ;;  %1232 = vrot.lane.b32.xlu0 %v1148_v47, %s4097_s22  ;;  %v870_v27 = vor.u32 %v869_v15, %v865_v62  ;;  %v1156_v28 = vsel %vm4240_vm2, %v1086_v16, 0  ;;  %v763_v29 = vadd.f32 %v4227_v19, %v725_v9  ;;  %v4037_v62 = vld [vmem:[%s5126_s6 + $0x30] sm:$0xff]   ;;  %v4038_v6 = vld [vmem:[%s5126_s6 + $0x78] sm:$0xff]   ;;  %v982_v15 = vld [vmem:[%s4198_s30 + $0xc8] sm:$0xff] }
  0x2d   : > { %v711_v30 = vmul.f32 %v3385_v17, %v4208_v4  ;;  %v820_v32 = vrot.slane %v818_v23, 1  ;;  %v1037_v33 = vor.u32 %v1036_v24, %v1032_v2  ;;  %v712_v35 = vmul.f32 %v3386_v18, %v4208_v4  ;;  %v967_v16 = vld [vmem:[%s4198_s30 + $0x50] sm:$0xff]  ;;  %v968_v17 = vld [vmem:[%s4198_s30 + $0x58] sm:$0xff]  ;;  %v3606_v18 = vld [vmem:[%s4203_s14 + $0x60] sm:$0xff]   ;;  %3654 = vmatpush3.bf16.msra.mxu0 %v4037_v62  ;;  %3991 = vmatpush3.bf16.msra.mxu1 %v4037_v62 }
  0x2e   : > { %v764_v34 = vadd.f32 %v4227_v19, %v726_v25  ;;  %v949_v38 = vsel %vm4240_vm2, %v870_v27, 0  ;;  %v4374_v40 = vpack.c.bf16 %v980_v11, %v979_v10  ;;  %v4376_v42 = vpack.c.bf16 %v966_v26, %v965_v13  ;;  %v3599_v26 = vld [vmem:[%s4203_s14 + $0x28] sm:$0xff]   ;;  %3655 = vmatprep.subr.bf16.mxu0 %v4038_v6  ;;  %3984 = vmatprep.subr.bf16.mxu1 %v4038_v6 }
  0x2f   : > { %v749_v39 = vadd.f32 %v4227_v19, %v711_v30  ;;  %1198 = vrot.lane.b32.xlu1 %v949_v38, %s4097_s22  ;;  %v821_v45 = vor.u32 %v820_v32, %v816_v22  ;;  %v1149_v46 = vsel %vm4240_vm2, %v1037_v33, 0  ;;  %v750_v48 = vadd.f32 %v4227_v19, %v712_v35  ;;  %v4040_v32 = vld [vmem:[%s5127_s7 + $0x40] sm:$0xff]  }
  0x30   : > { %v4384_v47 = vpack.c.bf16 %v764_v34, %v763_v29  ;;  %v1088_v50 = vshrl.u32 %v4374_v40, 16  ;;  %v1090_v52 = vshll.u32 %v4374_v40, 16  ;;  %v1039_v53 = vshrl.u32 %v4376_v42, 16 }
  0x31   : > { %v1041_v55 = vshll.u32 %v4376_v42, 16  ;;  %v942_v56 = vsel %vm4240_vm2, %v821_v45, 0  ;;  %v4396_v61 = vpack.c.bf16 %v750_v48, %v749_v39  ;;  %v3417_v2 = vunpack.c.l.bf16 %v3605_v36  ;;  %v4041_v45 = vld [vmem:[%s5127_s7 + $0xc0] sm:$0xff]   ;;  %3656 = vmatpush3.bf16.msra.mxu0 %v4039_v21  ;;  %3992 = vmatpush3.bf16.msra.mxu1 %v4039_v21 }
  0x32   : > { %v872_v57 = vshrl.u32 %v4384_v47, 16  ;;  %v874_v59 = vshll.u32 %v4384_v47, 16  ;;  %1184 = vrot.lane.b32.xlu0 %v942_v56, %s4097_s22  ;;  %v1092_v0 = vrot.slane %v1090_v52, 1  ;;  %v3418_v5 = vunpack.c.h.bf16 %v3605_v36  ;;  %3753 = vmatprep.subr.bf16.mxu1 %v4040_v32  ;;  %v970_v32 = vld [vmem:[%s4198_s30 + $0x68] sm:$0xff] }
  0x33   : > { %v1043_v1 = vrot.slane %v1041_v55, 1  ;;  %1248 = vrot.lane.b32.xlu1 %v1156_v28, %s4097_s22  ;;  %v823_v10 = vshrl.u32 %v4396_v61, 16  ;;  %v825_v11 = vshll.u32 %v4396_v61, 16  ;;  %v3389_v13 = vunpack.c.l.bf16 %v3598_v49  ;;  %3865 = vmatprep.subr.bf16.mxu0 %v4041_v45 }
  0x34   : > { %v876_v9 = vrot.slane %v874_v59, 1  ;;  %v1093_v22 = vor.u32 %v1092_v0, %v1088_v50  ;;  %v727_v24 = vmul.f32 %v3417_v2, %v4208_v4  ;;  %v728_v25 = vmul.f32 %v3418_v5, %v4208_v4  ;;  %v984_v2 = vld [vmem:[%s4198_s30 + $0xd8] sm:$0xff] }
  0x35   : > { %v1044_v23 = vor.u32 %v1043_v1, %v1039_v53  ;;  %v827_v28 = vrot.slane %v825_v11, 1  ;;  %v3390_v29 = vunpack.c.h.bf16 %v3598_v49  ;;  %v713_v30 = vmul.f32 %v3389_v13, %v4208_v4  ;;  %v983_v1 = vld [vmem:[%s4198_s30 + $0xd0] sm:$0xff] }
  0x36   : > { %v877_v27 = vor.u32 %v876_v9, %v872_v57  ;;  %1234 = vrot.lane.b32.xlu0 %v1149_v46, %s4097_s22  ;;  %v1157_v33 = vsel %vm4240_vm2, %v1093_v22, 0  ;;  %v765_v35 = vadd.f32 %v4227_v19, %v727_v24  ;;  %v766_v36 = vadd.f32 %v4227_v19, %v728_v25 }
  0x37   : > { %v1150_v34 = vsel %vm4240_vm2, %v1044_v23, 0  ;;  %v828_v38 = vor.u32 %v827_v28, %v823_v10  ;;  %v714_v39 = vmul.f32 %v3390_v29, %v4208_v4  ;;  %v751_v44 = vadd.f32 %v4227_v19, %v713_v30 }
  0x38   : > { %v950_v37 = vsel %vm4240_vm2, %v877_v27, 0  ;;  %v4438_v46 = vpack.c.bf16 %v766_v36, %v765_v35  ;;  %v4440_v48 = vpack.c.bf16 %v982_v15, %v981_v14  ;;  %v4442_v49 = vpack.c.bf16 %v968_v17, %v967_v16  ;;  %v969_v27 = vld [vmem:[%s4198_s30 + $0x60] sm:$0xff] }
  0x39   : > { %1200 = vrot.lane.b32.xlu1 %v950_v37, %s4097_s22  ;;  %v3421_v50 = vunpack.c.l.bf16 %v3606_v18  ;;  %v943_v52 = vsel %vm4240_vm2, %v828_v38, 0  ;;  %v752_v53 = vadd.f32 %v4227_v19, %v714_v39  ;;  %v3422_v55 = vunpack.c.h.bf16 %v3606_v18  ;;  %v3607_v37 = vld [vmem:[%s4203_s14 + $0x68] sm:$0xff]  }
  0x3a   : > { %v3393_v56 = vunpack.c.l.bf16 %v3599_v26  ;;  %1186 = vrot.lane.b32.xlu0 %v943_v52, %s4097_s22  ;;  %v879_v57 = vshrl.u32 %v4438_v46, 16  ;;  %v881_v59 = vshll.u32 %v4438_v46, 16  ;;  %v1095_v62 = vshrl.u32 %v4440_v48, 16 }
  0x3b   : > { %v1097_v0 = vshll.u32 %v4440_v48, 16  ;;  %v4454_v5 = vpack.c.bf16 %v752_v53, %v751_v44  ;;  %v1046_v6 = vshrl.u32 %v4442_v49, 16  ;;  %v1048_v9 = vshll.u32 %v4442_v49, 16 }
  0x3c   : > { %v729_v10 = vmul.f32 %v3421_v50, %v4208_v4  ;;  %v883_v11 = vrot.slane %v881_v59, 1  ;;  %v730_v14 = vmul.f32 %v3422_v55, %v4208_v4  ;;  %v3394_v15 = vunpack.c.h.bf16 %v3599_v26 }
  0x3d   : > { %1250 = vrot.lane.b32.xlu1 %v1157_v33, %s4097_s22  ;;  %v1099_v13 = vrot.slane %v1097_v0, 1  ;;  %v830_v16 = vshrl.u32 %v4454_v5, 16  ;;  %v832_v17 = vshll.u32 %v4454_v5, 16  ;;  %v1050_v18 = vrot.slane %v1048_v9, 1  ;;  %v3600_v0 = vld [vmem:[%s4203_s14 + $0x30] sm:$0xff]  }
  0x3e   : > { %v767_v21 = vadd.f32 %v4227_v19, %v729_v10  ;;  %1236 = vrot.lane.b32.xlu0 %v1150_v34, %s4097_s22  ;;  %v884_v22 = vor.u32 %v883_v11, %v879_v57  ;;  %v768_v24 = vadd.f32 %v4227_v19, %v730_v14  ;;  %v715_v25 = vmul.f32 %v3393_v56, %v4208_v4  ;;  %v985_v10 = vld [vmem:[%s4198_s30 + $0xe0] sm:$0xff]  ;;  %v986_v11 = vld [vmem:[%s4198_s30 + $0xe8] sm:$0xff] }
  0x3f   : > { %v1100_v23 = vor.u32 %v1099_v13, %v1095_v62  ;;  %v834_v28 = vrot.slane %v832_v17, 1  ;;  %v1051_v29 = vor.u32 %v1050_v18, %v1046_v6  ;;  %v716_v26 = vmul.f32 %v3394_v15, %v4208_v4  ;;  %v971_v17 = vld [vmem:[%s4198_s30 + $0x70] sm:$0xff] }
  0x40   : > { %v4469_v30 = vpack.c.bf16 %v984_v2, %v983_v1  ;;  %v951_v33 = vsel %vm4240_vm2, %v884_v22, 0  ;;  %v4476_v35 = vpack.c.bf16 %v768_v24, %v767_v21  ;;  %v753_v36 = vadd.f32 %v4227_v19, %v715_v25  ;;  %v972_v24 = vld [vmem:[%s4198_s30 + $0x78] sm:$0xff] }
  0x41   : > { %v1158_v34 = vsel %vm4240_vm2, %v1100_v23, 0  ;;  %1202 = vrot.lane.b32.xlu1 %v951_v33, %s4097_s22  ;;  %v835_v38 = vor.u32 %v834_v28, %v830_v16  ;;  %v1151_v39 = vsel %vm4240_vm2, %v1051_v29, 0  ;;  %v754_v44 = vadd.f32 %v4227_v19, %v716_v26  ;;  %v3608_v26 = vld [vmem:[%s4203_s14 + $0x70] sm:$0xff]  }
  0x42   : > { %v1102_v45 = vshrl.u32 %v4469_v30, 16  ;;  %v886_v50 = vshrl.u32 %v4476_v35, 16  ;;  %v888_v52 = vshll.u32 %v4476_v35, 16  ;;  %v1104_v53 = vshll.u32 %v4469_v30, 16 }
  0x43   : > { %v4488_v55 = vpack.c.bf16 %v970_v32, %v969_v27  ;;  %v944_v56 = vsel %vm4240_vm2, %v835_v38, 0  ;;  %v4492_v57 = vpack.c.bf16 %v754_v44, %v753_v36  ;;  %v3425_v59 = vunpack.c.l.bf16 %v3607_v37 }
  0x44   : > { %v3426_v62 = vunpack.c.h.bf16 %v3607_v37  ;;  %1188 = vrot.lane.b32.xlu0 %v944_v56, %s4097_s22  ;;  %v890_v1 = vrot.slane %v888_v52, 1  ;;  %v1106_v2 = vrot.slane %v1104_v53, 1  ;;  %v3397_v23 = vunpack.c.l.bf16 %v3600_v0 }
  0x45   : > { %v1053_v6 = vshrl.u32 %v4488_v55, 16  ;;  %v1055_v9 = vshll.u32 %v4488_v55, 16  ;;  %1252 = vrot.lane.b32.xlu1 %v1158_v34, %s4097_s22  ;;  %v837_v13 = vshrl.u32 %v4492_v57, 16  ;;  %v839_v14 = vshll.u32 %v4492_v57, 16 }
  0x46   : > { %v731_v15 = vmul.f32 %v3425_v59, %v4208_v4  ;;  %v732_v16 = vmul.f32 %v3426_v62, %v4208_v4  ;;  %v891_v18 = vor.u32 %v890_v1, %v886_v50  ;;  %v1107_v21 = vor.u32 %v1106_v2, %v1102_v45  ;;  %v3601_v1 = vld [vmem:[%s4203_s14 + $0x38] sm:$0xff]  }
  0x47   : > { %v1057_v22 = vrot.slane %v1055_v9, 1  ;;  %v841_v25 = vrot.slane %v839_v14, 1  ;;  %v3398_v29 = vunpack.c.h.bf16 %v3600_v0  ;;  %v717_v36 = vmul.f32 %v3397_v23, %v4208_v4  ;;  %v988_v23 = vld [vmem:[%s4198_s30 + $0xf8] sm:$0xff] }
  0x48   : > { %v769_v27 = vadd.f32 %v4227_v19, %v731_v15  ;;  %v770_v28 = vadd.f32 %v4227_v19, %v732_v16  ;;  %1238 = vrot.lane.b32.xlu0 %v1151_v39, %s4097_s22  ;;  %v952_v32 = vsel %vm4240_vm2, %v891_v18, 0  ;;  %v1159_v33 = vsel %vm4240_vm2, %v1107_v21, 0 }
  0x49   : > { %v1058_v34 = vor.u32 %v1057_v22, %v1053_v6  ;;  %1204 = vrot.lane.b32.xlu1 %v952_v32, %s4097_s22  ;;  %v842_v37 = vor.u32 %v841_v25, %v837_v13  ;;  %v718_v44 = vmul.f32 %v3398_v29, %v4208_v4  ;;  %v4520_v45 = vpack.c.bf16 %v986_v11, %v985_v10  ;;  %v987_v22 = vld [vmem:[%s4198_s30 + $0xf0] sm:$0xff]  ;;  %s4898_s30 = scalar_lea.vmem %s5129_s9, %s3303_s23 }
  0x4a   : > { %v4517_v38 = vpack.c.bf16 %v770_v28, %v769_v27  ;;  %v755_v50 = vadd.f32 %v4227_v19, %v717_v36  ;;  %v4525_v52 = vpack.c.bf16 %v972_v24, %v971_v17  ;;  %v3429_v53 = vunpack.c.l.bf16 %v3608_v26 }
  0x4b   : > { %v1152_v39 = vsel %vm4240_vm2, %v1058_v34, 0  ;;  %v945_v56 = vsel %vm4240_vm2, %v842_v37, 0  ;;  %v756_v0 = vadd.f32 %v4227_v19, %v718_v44  ;;  %v1109_v2 = vshrl.u32 %v4520_v45, 16 }
  0x4c   : > { %v893_v59 = vshrl.u32 %v4517_v38, 16  ;;  %v895_v62 = vshll.u32 %v4517_v38, 16  ;;  %1190 = vrot.lane.b32.xlu0 %v945_v56, %s4097_s22  ;;  %v1111_v6 = vshll.u32 %v4520_v45, 16  ;;  %v1060_v9 = vshrl.u32 %v4525_v52, 16 }
  0x4d   : > { %v1062_v10 = vshll.u32 %v4525_v52, 16  ;;  %1254 = vrot.lane.b32.xlu1 %v1159_v33, %s4097_s22  ;;  %v4539_v13 = vpack.c.bf16 %v756_v0, %v755_v50  ;;  %v3430_v14 = vunpack.c.h.bf16 %v3608_v26  ;;  %v733_v15 = vmul.f32 %v3429_v53, %v4208_v4  ;;  %v3609_v33 = vld [vmem:[%s4203_s14 + $0x78] sm:$0xff]  }
  0x4e   : > { %v897_v11 = vrot.slane %v895_v62, 1  ;;  %v1113_v16 = vrot.slane %v1111_v6, 1  ;;  %v3401_v18 = vunpack.c.l.bf16 %v3601_v1  ;;  %v3402_v21 = vunpack.c.h.bf16 %v3601_v1 }
  0x4f   : > { %v1064_v17 = vrot.slane %v1062_v10, 1  ;;  %v844_v25 = vshrl.u32 %v4539_v13, 16  ;;  %v846_v27 = vshll.u32 %v4539_v13, 16  ;;  %v734_v28 = vmul.f32 %v3430_v14, %v4208_v4 }
  0x50   : > { %v898_v24 = vor.u32 %v897_v11, %v893_v59  ;;  %1240 = vrot.lane.b32.xlu0 %v1152_v39, %s4097_s22  ;;  %v1114_v29 = vor.u32 %v1113_v16, %v1109_v2  ;;  %v771_v26 = vadd.f32 %v4227_v19, %v733_v15  ;;  %v719_v32 = vmul.f32 %v3401_v18, %v4208_v4 }
  0x51   : > { %v848_v36 = vrot.slane %v846_v27, 1  ;;  %v772_v37 = vadd.f32 %v4227_v19, %v734_v28  ;;  %v720_v44 = vmul.f32 %v3402_v21, %v4208_v4  ;;  %v1065_v39 = vor.u32 %v1064_v17, %v1060_v9 }
  0x52   : > { %v953_v34 = vsel %vm4240_vm2, %v898_v24, 0  ;;  %v1160_v50 = vsel %vm4240_vm2, %v1114_v29, 0  ;;  %v757_v53 = vadd.f32 %v4227_v19, %v719_v32  ;;  %v4559_v56 = vpack.c.bf16 %v988_v23, %v987_v22 }
  0x53   : > { %1206 = vrot.lane.b32.xlu1 %v953_v34, %s4097_s22  ;;  %v849_v59 = vor.u32 %v848_v36, %v844_v25  ;;  %v4561_v62 = vpack.c.bf16 %v772_v37, %v771_v26  ;;  %v758_v0 = vadd.f32 %v4227_v19, %v720_v44  ;;  %v3433_v1 = vunpack.c.l.bf16 %v3609_v33 }
  0x54   : > { %v1116_v2 = vshrl.u32 %v4559_v56, 16  ;;  %v1118_v6 = vshll.u32 %v4559_v56, 16  ;;  %v3434_v10 = vunpack.c.h.bf16 %v3609_v33  ;;  %v1153_v16 = vsel %vm4240_vm2, %v1065_v39, 0 }
  0x55   : > { %v946_v11 = vsel %vm4240_vm2, %v849_v59, 0  ;;  %v900_v9 = vshrl.u32 %v4561_v62, 16  ;;  %v902_v14 = vshll.u32 %v4561_v62, 16  ;;  %v4570_v15 = vpack.c.bf16 %v758_v0, %v757_v53 }
  0x56   : > { %1192 = vrot.lane.b32.xlu0 %v946_v11, %s4097_s22  ;;  %v1120_v17 = vrot.slane %v1118_v6, 1  ;;  %v735_v18 = vmul.f32 %v3433_v1, %v4208_v4  ;;  %v736_v21 = vmul.f32 %v3434_v10, %v4208_v4  ;;  %v4098_v28 = vmov 0  }
  0x57   : > { %1256 = vrot.lane.b32.xlu1 %v1160_v50, %s4097_s22  ;;  %v904_v22 = vrot.slane %v902_v14, 1  ;;  %v851_v23 = vshrl.u32 %v4570_v15, 16  ;;  %v853_v24 = vshll.u32 %v4570_v15, 16  ;;  %v918_v29 = vrot.slane %v4098_v28, 1  ;;  %v4045_v14 = vld [vmem:[%s5127_s7 + $0xc8] sm:$0xff]  }
  0x58   : > { %v773_v25 = vadd.f32 %v4227_v19, %v735_v18  ;;  %v774_v27 = vadd.f32 %v4227_v19, %v736_v21  ;;  %v1121_v33 = vor.u32 %v1120_v17, %v1116_v2  ;;  %v4042_v17 = vld [vmem:[%s5127_s7] sm:$0xff]   ;;  %v4047_v18 = vld [vmem:[%s5127_s7 + $0x88] sm:$0xff]  }
  0x59   : > { %v905_v26 = vor.u32 %v904_v22, %v900_v9  ;;  %v855_v32 = vrot.slane %v853_v24, 1  ;;  %v956_v37 = vsel %vm4240_vm2, %v918_v29, 0  ;;  %v4044_v21 = vld [vmem:[%s5127_s7 + $0x48] sm:$0xff]   ;;  %v4053_v29 = vld [vmem:[%s5127_s7 + $0xd8] sm:$0xff]  }
  0x5a   : > { %1242 = vrot.lane.b32.xlu0 %v1153_v16, %s4097_s22  ;;  %v4583_v34 = vpack.c.bf16 %v774_v27, %v773_v25  ;;  %v1161_v39 = vsel %vm4240_vm2, %v1121_v33, 0  ;;  %v4019_v59 = vpack.i.bf16 %v956_v37, %v956_v37  ;;  %v4046_v25 = vld [vmem:[%s5127_s7 + $0x8] sm:$0xff]   ;;  %v4051_v27 = vld [vmem:[%s5127_s7 + $0x90] sm:$0xff]  }
  0x5b   : > { %v954_v4 = vsel %vm4240_vm2, %v905_v26, 0  ;;  %v856_v36 = vor.u32 %v855_v32, %v851_v23  ;;  %v4050_v33 = vld [vmem:[%s5127_s7 + $0x10] sm:$0xff]  }
  0x5c   : > { %1208 = vrot.lane.b32.xlu1 %v954_v4, %s4097_s22  ;;  %v907_v19 = vshrl.u32 %v4583_v34, 16  ;;  %v909_v44 = vshll.u32 %v4583_v34, 16  ;;  %v4057_v4 = vld [vmem:[%s5127_s7 + $0xe0] sm:$0xff]  }
  0x5d   : > { %v947_v50 = vsel %vm4240_vm2, %v856_v36, 0 }
  0x5e   : > { %1194 = vrot.lane.b32.xlu0 %v947_v50, %s4097_s22  ;;  %v911_v53 = vrot.slane %v909_v44, 1  ;;  %v4054_v50 = vld [vmem:[%s5127_s7 + $0x18] sm:$0xff]  }
  0x60   : > { %1258 = vrot.lane.b32.xlu1 %v1161_v39, %s4097_s22  ;;  %v912_v0 = vor.u32 %v911_v53, %v907_v19  ;;  %v4059_v19 = vld [vmem:[%s5127_s7 + $0xa0] sm:$0xff]   ;;  %v4061_v39 = vld [vmem:[%s5127_s7 + $0xe8] sm:$0xff]  }
  0x62   : > { %v955_v1 = vsel %vm4240_vm2, %v912_v0, 0  ;;  %4020 = vrot.lane.b32.xlu0 %v4019_v59, %s4097_s22  ;;  %v4056_v59 = vld [vmem:[%s5127_s7 + $0x60] sm:$0xff]  }
  0x64   : > { %1210 = vrot.lane.b32.xlu1 %v955_v1, %s4097_s22  ;;  %v4063_v1 = vld [vmem:[%s5127_s7 + $0xa8] sm:$0xff]  }
  0x8d   : > { %v1229_v2 = vpop.permute.xlu0 %1228 }
  0x8e   : > { %v4604_v6 = vsel %vm1260_vm3, %v4213_v8, %v1229_v2  ;;  %v4065_v2 = vld [vmem:[%s5127_s7 + $0xf0] sm:$0xff]  }
  0x8f   : > { %1517 = vmatprep.mubr.bf16.mxu0 %v4604_v6 }
  0x91   : > { %v1245_v10 = vpop.permute.xlu0 %1244 }
  0x92   : > { %v4609_v11 = vsel %vm1260_vm3, %v4218_v12, %v1245_v10 }
  0x93   : > { %1581 = vmatprep.mubr.bf16.mxu1 %v4609_v11 }
  0x95   : > { %v1181_v9 = vpop.permute.xlu1 %1180  ;;  %v1231_v16 = vpop.permute.xlu0 %1230 }
  0x96   : > { %v4620_v8 = vsel %vm1260_vm3, %v4248_v41, %v1181_v9  ;;  %v4625_v12 = vsel %vm1260_vm3, %v4229_v20, %v1231_v16  ;;  %v4049_v20 = vld [vmem:[%s5127_s7 + $0xd0] sm:$0xff]   ;;  %v4060_v9 = vld [vmem:[%s5127_s7 + $0x68] sm:$0xff]  }
  0x97   : > { %1518 = vmatmul.mubr.bf16.vlgmr.msra.gmra.mrb[0].mxu0 %v4620_v8 }
  0x98   : > { %3866 = vmatpush3.bf16.msra.mxu0 %v4043_v31  ;;  %1525 = vmatprep.mubr.bf16.mxu0 %v4625_v12 }
  0x99   : > { %v1197_v41 = vpop.permute.xlu1 %1196  ;;  %3867 = vmatprep.subr.bf16.mxu0 %v4045_v14 }
  0x9a   : > { %v4642_v22 = vsel %vm1260_vm3, %v4268_v58, %v1197_v41  ;;  %v1183_v23 = vpop.permute.xlu0 %1182  ;;  %v4048_v58 = vld [vmem:[%s5127_s7 + $0x50] sm:$0xff]  }
  0x9b   : > { %1582 = vmatmul.mubr.bf16.vlgmr.msra.gmra.mrb[0].mxu1 %v4642_v22  ;;  %v4647_v24 = vsel %vm1260_vm3, %v4281_v7, %v1183_v23 }
  0x9c   : > { %3754 = vmatpush3.bf16.msra.mxu1 %v4042_v17  ;;  %3868 = vmatpush3.bf16.msra.mxu0 %v4047_v18  ;;  %v4069_v17 = vld [vmem:[%s5127_s7 + $0xf8] sm:$0xff]  }
  0x9d   : > { %v1247_v28 = vpop.permute.xlu1 %1246  ;;  %3755 = vmatprep.subr.bf16.mxu1 %v4044_v21  ;;  %3869 = vmatprep.subr.bf16.mxu0 %v4049_v20  ;;  %v4064_v21 = vld [vmem:[%s5127_s7 + $0x70] sm:$0xff]  }
  0x9e   : > { %v4660_v7 = vsel %vm1260_vm3, %v4271_v60, %v1247_v28  ;;  %v1233_v26 = vpop.permute.xlu0 %1232  ;;  %v4055_v60 = vld [vmem:[%s5127_s7 + $0x98] sm:$0xff]  }
  0x9f   : > { %1526 = vmatmul.mubr.bf16.gmra.mrb[4].mxu0 %v4647_v24  ;;  %1589 = vmatprep.mubr.bf16.mxu1 %v4660_v7  ;;  %v4669_v32 = vsel %vm1260_vm3, %v4274_v63, %v1233_v26  ;;  %v4052_v63 = vld [vmem:[%s5127_s7 + $0x58] sm:$0xff]  }
  0xa0   : > { %3756 = vmatpush3.bf16.msra.mxu1 %v4046_v25  ;;  %3870 = vmatpush3.bf16.msra.mxu0 %v4051_v27  ;;  %v4068_v28 = vld [vmem:[%s5127_s7 + $0x78] sm:$0xff]  }
  0xa1   : > { %1533 = vmatprep.mubr.bf16.mxu0 %v4669_v32  ;;  %3757 = vmatprep.subr.bf16.mxu1 %v4048_v58  ;;  %v1199_v36 = vpop.permute.xlu1 %1198 }
  0xa2   : > { %3871 = vmatprep.subr.bf16.mxu0 %v4053_v29  ;;  %v4686_v37 = vsel %vm1260_vm3, %v4327_v51, %v1199_v36  ;;  %v4070_v29 = vld [vmem:[%s5127_s7 + $0x38] sm:$0xff]  }
  0xa3   : > { %1590 = vmatmul.mubr.bf16.gmra.mrb[4].mxu1 %v4686_v37 }
  0xa4   : > { %3872 = vmatpush3.bf16.msra.mxu0 %v4055_v60  ;;  %v1185_v44 = vpop.permute.xlu0 %1184  ;;  %3758 = vmatpush3.bf16.msra.mxu1 %v4050_v33 }
  0xa5   : > { %3873 = vmatprep.subr.bf16.mxu0 %v4057_v4  ;;  %v1249_v51 = vpop.permute.xlu1 %1248  ;;  %v4700_v53 = vsel %vm1260_vm3, %v4342_v3, %v1185_v44  ;;  %3759 = vmatprep.subr.bf16.mxu1 %v4052_v63 }
  0xa6   : > { %v4708_v0 = vsel %vm1260_vm3, %v4311_v43, %v1249_v51  ;;  %v4058_v43 = vld [vmem:[%s5127_s7 + $0x20] sm:$0xff]  }
  0xa7   : > { %1534 = vmatmul.mubr.bf16.gmra.mrb[8].mxu0 %v4700_v53  ;;  %1597 = vmatprep.mubr.bf16.mxu1 %v4708_v0 }
  0xa8   : > { %3874 = vmatpush3.bf16.msra.mxu0 %v4059_v19  ;;  %v1235_v3 = vpop.permute.xlu0 %1234  ;;  %3760 = vmatpush3.bf16.msra.mxu1 %v4054_v50 }
  0xa9   : > { %3875 = vmatprep.subr.bf16.mxu0 %v4061_v39  ;;  %v4719_v10 = vsel %vm1260_vm3, %v4331_v54, %v1235_v3  ;;  %3761 = vmatprep.subr.bf16.mxu1 %v4056_v59  ;;  %v4067_v54 = vld [vmem:[%s5127_s7 + $0xb0] sm:$0xff]  }
  0xaa   : > { %1541 = vmatprep.mubr.bf16.mxu0 %v4719_v10 }
  0xab   : > { %v1201_v31 = vpop.permute.xlu1 %1200 }
  0xac   : > { %v4730_v14 = vsel %vm1260_vm3, %v4384_v47, %v1201_v31  ;;  %3876 = vmatpush3.bf16.msra.mxu0 %v4063_v1  ;;  %v1187_v16 = vpop.permute.xlu0 %1186  ;;  %3762 = vmatpush3.bf16.msra.mxu1 %v4058_v43  ;;  %v4062_v47 = vld [vmem:[%s5127_s7 + $0x28] sm:$0xff]  }
  0xad   : > { %1598 = vmatmul.mubr.bf16.gmra.mrb[8].mxu1 %v4730_v14  ;;  %3877 = vmatprep.subr.bf16.mxu0 %v4065_v2  ;;  %v4741_v18 = vsel %vm1260_vm3, %v4396_v61, %v1187_v16  ;;  %v4071_v61 = vld [vmem:[%s5127_s7 + $0xb8] sm:$0xff]  }
  0xae   : > { %3763 = vmatprep.subr.bf16.mxu1 %v4060_v9 }
  0xaf   : > { %v1251_v41 = vpop.permute.xlu1 %1250  ;;  %1542 = vmatmul.mubr.bf16.gmra.mrb[12].mxu0 %v4741_v18 }
  0xb0   : > { %v4752_v20 = vsel %vm1260_vm3, %v4374_v40, %v1251_v41  ;;  %3878 = vmatpush3.bf16.msra.mxu0 %v4067_v54  ;;  %v1237_v23 = vpop.permute.xlu0 %1236  ;;  %3764 = vmatpush3.bf16.msra.mxu1 %v4062_v47  ;;  %v4066_v40 = vld [vmem:[%s5127_s7 + $0x30] sm:$0xff]  }
  0xb1   : > { %1605 = vmatprep.mubr.bf16.mxu1 %v4752_v20  ;;  %3879 = vmatprep.subr.bf16.mxu0 %v4069_v17  ;;  %v4760_v25 = vsel %vm1260_vm3, %v4376_v42, %v1237_v23 }
  0xb2   : > { %1549 = vmatprep.mubr.bf16.mxu0 %v4760_v25  ;;  %3765 = vmatprep.subr.bf16.mxu1 %v4064_v21 }
  0xb3   : > { %v1203_v27 = vpop.permute.xlu1 %1202 }
  0xb4   : > { %3880 = vmatpush3.bf16.msra.mxu0 %v4071_v61  ;;  %v4771_v58 = vsel %vm1260_vm3, %v4438_v46, %v1203_v27  ;;  %3766 = vmatpush3.bf16.msra.mxu1 %v4066_v40 }
  0xb5   : > { %1606 = vmatmul.mubr.bf16.gmra.mrb[12].mxu1 %v4771_v58  ;;  %3767 = vmatprep.subr.bf16.mxu1 %v4068_v28 }
  0xb6   : > { %v1189_v42 = vpop.permute.xlu0 %1188 }
  0xb7   : > { %v1253_v26 = vpop.permute.xlu1 %1252  ;;  %v4779_v60 = vsel %vm1260_vm3, %v4454_v5, %v1189_v42 }
  0xb8   : > { %1550 = vmatmul.mubr.bf16.gmra.mrb[16].mxu0 %v4779_v60  ;;  %v4784_v46 = vsel %vm1260_vm3, %v4440_v48, %v1253_v26  ;;  %3768 = vmatpush3.bf16.msra.mxu1 %v4070_v29 }
  0xb9   : > { %1613 = vmatprep.mubr.bf16.mxu1 %v4784_v46 }
  0xba   : > { %v1239_v33 = vpop.permute.xlu0 %1238 }
  0xbb   : > { %v1205_v4 = vpop.permute.xlu1 %1204  ;;  %v1325_v36 = vsel %vm1260_vm3, %v4442_v49, %v1239_v33 }
  0xbc   : > { %v4791_v63 = vsel %vm1260_vm3, %v4476_v35, %v1205_v4  ;;  %1557 = vmatprep.mubr.bf16.mxu0 %v1325_v36 }
  0xbd   : > { %1614 = vmatmul.mubr.bf16.gmra.mrb[16].mxu1 %v4791_v63 }
  0xbe   : > { %v1191_v5 = vpop.permute.xlu0 %1190 }
  0xbf   : > { %v1255_v19 = vpop.permute.xlu1 %1254  ;;  %v1277_v48 = vsel %vm1260_vm3, %v4492_v57, %v1191_v5 }
  0xc0   : > { %1558 = vmatmul.mubr.bf16.gmra.mrb[20].mxu0 %v1277_v48  ;;  %v4798_v44 = vsel %vm1260_vm3, %v4469_v30, %v1255_v19 }
  0xc1   : > { %1621 = vmatprep.mubr.bf16.mxu1 %v4798_v44 }
  0xc2   : > { %v1241_v49 = vpop.permute.xlu0 %1240 }
  0xc3   : > { %v1328_v35 = vsel %vm1260_vm3, %v4488_v55, %v1241_v49 }
  0xc4   : > { %1565 = vmatprep.mubr.bf16.mxu0 %v1328_v35 }
  0xc5   : > { %v1207_v50 = vpop.permute.xlu1 %1206 }
  0xc6   : > { %v4805_v39 = vsel %vm1260_vm3, %v4517_v38, %v1207_v50 }
  0xc7   : > { %1622 = vmatmul.mubr.bf16.gmra.mrb[20].mxu1 %v4805_v39 }
  0xc8   : > { %v1193_v57 = vpop.permute.xlu0 %1192 }
  0xc9   : > { %v1257_v51 = vpop.permute.xlu1 %1256  ;;  %v1280_v30 = vsel %vm1260_vm3, %v4539_v13, %v1193_v57 }
  0xca   : > { %v4812_v59 = vsel %vm1260_vm3, %v4520_v45, %v1257_v51  ;;  %1566 = vmatmul.mubr.bf16.gmra.mrb[24].mxu0 %v1280_v30 }
  0xcb   : > { %1629 = vmatprep.mubr.bf16.mxu1 %v4812_v59 }
  0xcc   : > { %v1243_v55 = vpop.permute.xlu0 %1242 }
  0xcd   : > { %v1331_v1 = vsel %vm1260_vm3, %v4525_v52, %v1243_v55 }
  0xce   : > { %v1209_v38 = vpop.permute.xlu1 %1208  ;;  %1573 = vmatprep.mubr.bf16.mxu0 %v1331_v1 }
  0xcf   : > { %v4819_v3 = vsel %vm1260_vm3, %v4561_v62, %v1209_v38 }
  0xd0   : > { %1630 = vmatmul.mubr.bf16.gmra.mrb[24].mxu1 %v4819_v3  ;;  %v1195_v13 = vpop.permute.xlu0 %1194 }
  0xd1   : > { %v1283_v45 = vsel %vm1260_vm3, %v4570_v15, %v1195_v13 }
  0xd2   : > { %v1259_v2 = vpop.permute.xlu1 %1258  ;;  %1574 = vmatmul.mubr.bf16.gmra.mrb[28].mxu0 %v1283_v45 }
  0xd3   : > { %v4826_v43 = vsel %vm1260_vm3, %v4559_v56, %v1259_v2  ;;  %2145 = vmatprep.mubr.bf16.mxu0 %v4625_v12 }
  0xd4   : > { %1637 = vmatprep.mubr.bf16.mxu1 %v4826_v43  ;;  %v4021_v56 = vpop.permute.xlu0 %4020 }
  0xd5   : > { %v4023_v15 = vunpack.i.h.bf16 %v4021_v56 }
  0xd6   : > { %v1211_v52 = vpop.permute.xlu1 %1210 }
  0xd7   : > { %v4832_v62 = vsel %vm1260_vm3, %v4583_v34, %v1211_v52  ;;  %v1694_v34 = vsel %vm1260_vm3, 0.0|0.0, %v4023_v15 }
  0xd8   : > { %1638 = vmatmul.mubr.bf16.gmra.mrb[28].mxu1 %v4832_v62 }
  0xd9   : > { %1984 = vmatprep.mubr.bf16.mxu1 %v4647_v24 }
  0xda   : > { %2146 = vmatmul.mubr.bf16.vlgmr.msra.gmra.mrb[32].mxu0 %v4604_v6  ;;  %v4022_v6 = vunpack.i.l.bf16 %v4021_v56 }
  0xdb   : > { %2153 = vmatprep.mubr.bf16.mxu0 %v4669_v32 }
  0xe0   : > { %1985 = vmatmul.mubr.bf16.vlgmr.msra.gmra.mrb[32].mxu1 %v4620_v8 }
  0xe1   : > { %1992 = vmatprep.mubr.bf16.mxu1 %v4700_v53 }
  0xe2   : > { %2154 = vmatmul.mubr.bf16.gmra.mrb[36].mxu0 %v4625_v12  ;;  %v4889_v12 = vld [vmem:[%s5128_s8] ss:$0 sm:$0xff] }
  0xe3   : > { %2161 = vmatprep.mubr.bf16.mxu0 %v4719_v10 }
  0xe8   : > { %1993 = vmatmul.mubr.bf16.gmra.mrb[36].mxu1 %v4647_v24 }
  0xe9   : > { %2000 = vmatprep.mubr.bf16.mxu1 %v4741_v18 }
  0xea   : > { %2162 = vmatmul.mubr.bf16.gmra.mrb[40].mxu0 %v4669_v32 }
  0xeb   : > { %2169 = vmatprep.mubr.bf16.mxu0 %v4760_v25 }
  0xf0   : > { %2001 = vmatmul.mubr.bf16.gmra.mrb[40].mxu1 %v4700_v53 }
  0xf1   : > { %2008 = vmatprep.mubr.bf16.mxu1 %v4779_v60 }
  0xf2   : > { %2170 = vmatmul.mubr.bf16.gmra.mrb[44].mxu0 %v4719_v10 }
  0xf3   : > { %2177 = vmatprep.mubr.bf16.mxu0 %v1325_v36 }
  0xf8   : > { %2009 = vmatmul.mubr.bf16.gmra.mrb[44].mxu1 %v4741_v18 }
  0xf9   : > { %2016 = vmatprep.mubr.bf16.mxu1 %v1277_v48 }
  0xfa   : > { %2178 = vmatmul.mubr.bf16.gmra.mrb[48].mxu0 %v4760_v25 }
  0xfb   : > { %2185 = vmatprep.mubr.bf16.mxu0 %v1328_v35 }
 0x100   : > { %2017 = vmatmul.mubr.bf16.gmra.mrb[48].mxu1 %v4779_v60 }
 0x101   : > { %2024 = vmatprep.mubr.bf16.mxu1 %v1280_v30 }
 0x102   : > { %2186 = vmatmul.mubr.bf16.gmra.mrb[52].mxu0 %v1325_v36 }
 0x103   : > { %2193 = vmatprep.mubr.bf16.mxu0 %v1331_v1 }
 0x108   : > { %2025 = vmatmul.mubr.bf16.gmra.mrb[52].mxu1 %v1277_v48 }
 0x109   : > { %2032 = vmatprep.mubr.bf16.mxu1 %v1283_v45 }
 0x10a   : > { %2194 = vmatmul.mubr.bf16.gmra.mrb[56].mxu0 %v1328_v35 }
 0x10b   : > { %2201 = vmatprep.mubr.bf16.mxu0 %v4609_v11 }
 0x110   : > { %2033 = vmatmul.mubr.bf16.gmra.mrb[56].mxu1 %v1280_v30 }
 0x111   : > { %2040 = vmatprep.mubr.bf16.mxu1 %v4642_v22 }
 0x112   : > { %2202 = vmatmul.mubr.bf16.gmra.mrb[60].mxu0 %v1331_v1 }
 0x113   : > { %2209 = vmatprep.mubr.bf16.mxu0 %v4660_v7 }
 0x118   : > { %2041 = vmatmul.mubr.bf16.gmra.mrb[60].mxu1 %v1283_v45 }
 0x119   : > { %2048 = vmatprep.mubr.bf16.mxu1 %v4686_v37 }
 0x11a   : > { %2210 = vmatmul.mubr.bf16.gmra.mrb[64].mxu0 %v4609_v11  ;;  %v1691_v11 = vsel %vm1260_vm3, 0.0|0.0, %v4022_v6 }
 0x11b   : > { %2217 = vmatprep.mubr.bf16.mxu0 %v4708_v0 }
 0x120   : > { %2049 = vmatmul.mubr.bf16.gmra.mrb[64].mxu1 %v4642_v22 }
 0x121   : > { %2056 = vmatprep.mubr.bf16.mxu1 %v4730_v14 }
 0x122   : > { %2218 = vmatmul.mubr.bf16.gmra.mrb[68].mxu0 %v4660_v7 }
 0x123   : > { %2225 = vmatprep.mubr.bf16.mxu0 %v4752_v20 }
 0x128   : > { %2057 = vmatmul.mubr.bf16.gmra.mrb[68].mxu1 %v4686_v37 }
 0x129   : > { %2064 = vmatprep.mubr.bf16.mxu1 %v4771_v58 }
 0x12a   : > { %2226 = vmatmul.mubr.bf16.gmra.mrb[72].mxu0 %v4708_v0 }
 0x12b   : > { %2233 = vmatprep.mubr.bf16.mxu0 %v4784_v46 }
 0x130   : > { %2065 = vmatmul.mubr.bf16.gmra.mrb[72].mxu1 %v4730_v14 }
 0x131   : > { %2072 = vmatprep.mubr.bf16.mxu1 %v4791_v63 }
 0x132   : > { %2234 = vmatmul.mubr.bf16.gmra.mrb[76].mxu0 %v4752_v20 }
 0x133   : > { %2241 = vmatprep.mubr.bf16.mxu0 %v4798_v44 }
 0x138   : > { %2073 = vmatmul.mubr.bf16.gmra.mrb[76].mxu1 %v4771_v58 }
 0x139   : > { %2080 = vmatprep.mubr.bf16.mxu1 %v4805_v39 }
 0x13a   : > { %2242 = vmatmul.mubr.bf16.gmra.mrb[80].mxu0 %v4784_v46 }
 0x13b   : > { %2249 = vmatprep.mubr.bf16.mxu0 %v4812_v59 }
 0x140   : > { %2081 = vmatmul.mubr.bf16.gmra.mrb[80].mxu1 %v4791_v63 }
 0x141   : > { %2088 = vmatprep.mubr.bf16.mxu1 %v4819_v3 }
 0x142   : > { %2250 = vmatmul.mubr.bf16.gmra.mrb[84].mxu0 %v4798_v44 }
 0x143   : > { %2257 = vmatprep.mubr.bf16.mxu0 %v4826_v43 }
 0x148   : > { %2089 = vmatmul.mubr.bf16.gmra.mrb[84].mxu1 %v4805_v39 }
 0x149   : > { %2096 = vmatprep.mubr.bf16.mxu1 %v4832_v62 }
 0x14a   : > { %2258 = vmatmul.mubr.bf16.gmra.mrb[88].mxu0 %v4812_v59 }
 0x14b   : > { %2265 = vmatprep.mubr.bf16.mxu0 %v1694_v34 }
 0x150   : > { %2097 = vmatmul.mubr.bf16.gmra.mrb[88].mxu1 %v4819_v3 }
 0x151   : > { %2104 = vmatprep.mubr.bf16.mxu1 %v1691_v11 }
 0x152   : > { %2266 = vmatmul.mubr.bf16.gmra.mrb[92].mxu0 %v4826_v43 }
 0x158   : > { %2105 = vmatmul.mubr.bf16.gmra.mrb[92].mxu1 %v4832_v62 }
 0x16a   : > { %v3657_v8 = vpop.f32.mrb[0].mxu0 }
 0x16b   : > { %v3658_v22 = vpop.f32.mrb[1].mxu0 }
 0x16c   : > { %v3659_v24 = vadd.f32 %v3658_v22, %v3657_v8  ;;  %v3660_v7 = vpop.f32.mrb[2].mxu0 }
 0x16d   : > { %v3661_v32 = vpop.f32.mrb[3].mxu0 }
 0x16e   : > { %v1652_v37 = vadd.f32 %v3659_v24, %v4889_v12  ;;  %v3662_v53 = vadd.f32 %v3661_v32, %v3660_v7  ;;  %v3705_v0 = vpop.f32.mrb[0].mxu1 }
 0x16f   : > { %v3706_v10 = vpop.f32.mrb[1].mxu1 }
 0x170   : > { %v2306_v31 = vmax.f32 %v1652_v37, 0.0  ;;  %v1653_v9 = vadd.f32 %v3662_v53, %v4889_v12  ;;  %v3707_v14 = vadd.f32 %v3706_v10, %v3705_v0  ;;  %v3708_v54 = vpop.f32.mrb[2].mxu1 }
 0x171   : > { %v3709_v16 = vpop.f32.mrb[3].mxu1 }
 0x172   : > { %v2307_v17 = vmax.f32 %v1653_v9, 0.0  ;;  %v3710_v18 = vadd.f32 %v3709_v16, %v3708_v54  ;;  %v3663_v47 = vpop.f32.mrb[4].mxu0  ;;  %v1668_v41 = vadd.f32 %v3707_v14, %v4889_v12  ;;  %v2446_v20 = vmul.f32 %v2306_v31, %v2306_v31 }
 0x173   : > { %v3664_v21 = vpop.f32.mrb[5].mxu0 }
 0x174   : > { %v2370_v61 = vadd.f32 %v2307_v17, %v2306_v31  ;;  %v2447_v23 = vmul.f32 %v2307_v17, %v2307_v17  ;;  %v3438_v25 = vpack.c.bf16 %v2307_v17, %v2306_v31  ;;  %v3666_v40 = vpop.f32.mrb[6].mxu0  ;;  %v1669_v27 = vadd.f32 %v3710_v18, %v4889_v12 }
 0x175   : > { %v3665_v28 = vadd.f32 %v3664_v21, %v3663_v47  ;;  %v3667_v58 = vpop.f32.mrb[7].mxu0  ;;  %v4903_v26 = vmax.f32 %v1668_v41, 0.0 }
 0x176   : > { %v2478_v42 = vadd.f32 %v2447_v23, %v2446_v20  ;;  %3439 = vst [vmem:[%s4898_s30] sm:$0xff] %v3438_v25   ;;  %v3668_v29 = vadd.f32 %v3667_v58, %v3666_v40  ;;  %v4905_v60 = vmax.f32 %v1669_v27, 0.0  ;;  %v3711_v33 = vpop.f32.mrb[4].mxu1 }
 0x177   : > { %v1654_v46 = vadd.f32 %v3665_v28, %v4889_v12  ;;  %v3712_v36 = vpop.f32.mrb[5].mxu1 }
 0x178   : > { %v1655_v4 = vadd.f32 %v3668_v29, %v4889_v12  ;;  %v3478_v63 = vpack.c.bf16 %v4905_v60, %v4903_v26  ;;  %v3713_v19 = vadd.f32 %v3712_v36, %v3711_v33  ;;  %v3714_v48 = vpop.f32.mrb[6].mxu1 }
 0x179   : > { %v2308_v5 = vmax.f32 %v1654_v46, 0.0  ;;  %v3715_v49 = vpop.f32.mrb[7].mxu1 }
 0x17a   : > { %v2309_v44 = vmax.f32 %v1655_v4, 0.0  ;;  %v3669_v35 = vpop.f32.mrb[8].mxu0  ;;  %3617 = vst [vmem:[%s4898_s30 + $0x80] sm:$0xff] %v3478_v63   ;;  %v1670_v57 = vadd.f32 %v3713_v19, %v4889_v12  ;;  %v3716_v51 = vadd.f32 %v3715_v49, %v3714_v48 }
 0x17b   : > { %v2371_v50 = vadd.f32 %v2370_v61, %v2308_v5  ;;  %v2448_v39 = vmul.f32 %v2308_v5, %v2308_v5  ;;  %v3670_v30 = vpop.f32.mrb[9].mxu0 }
 0x17c   : > { %v2449_v59 = vmul.f32 %v2309_v44, %v2309_v44  ;;  %v3443_v55 = vpack.c.bf16 %v2309_v44, %v2308_v5  ;;  %v3671_v1 = vadd.f32 %v3670_v30, %v3669_v35  ;;  %v3672_v38 = vpop.f32.mrb[10].mxu0  ;;  %v1671_v45 = vadd.f32 %v3716_v51, %v4889_v12 }
 0x17d   : > { %v2479_v3 = vadd.f32 %v2478_v42, %v2448_v39  ;;  %v2372_v13 = vadd.f32 %v2371_v50, %v2309_v44  ;;  %v3673_v2 = vpop.f32.mrb[11].mxu0  ;;  %v4916_v56 = vmax.f32 %v1670_v57, 0.0 }
 0x17e   : > { %3610 = vst [vmem:[%s4898_s30 + $0x10] sm:$0xff] %v3443_v55   ;;  %v1656_v43 = vadd.f32 %v3671_v1, %v4889_v12  ;;  %v3674_v52 = vadd.f32 %v3673_v2, %v3672_v38  ;;  %v4918_v15 = vmax.f32 %v1671_v45, 0.0 }
 0x17f   : > { %v2480_v62 = vadd.f32 %v2479_v3, %v2449_v59 }
 0x180   : > { %v2310_v34 = vmax.f32 %v1656_v43, 0.0  ;;  %v1657_v6 = vadd.f32 %v3674_v52, %v4889_v12  ;;  %v3717_v11 = vpop.f32.mrb[8].mxu1  ;;  %v3483_v8 = vpack.c.bf16 %v4918_v15, %v4916_v56 }
 0x181   : > { %v3718_v22 = vpop.f32.mrb[9].mxu1 }
 0x182   : > { %v2373_v24 = vadd.f32 %v2372_v13, %v2310_v34  ;;  %v2450_v7 = vmul.f32 %v2310_v34, %v2310_v34  ;;  %v2311_v32 = vmax.f32 %v1657_v6, 0.0  ;;  %v3719_v37 = vadd.f32 %v3718_v22, %v3717_v11  ;;  %v3720_v53 = vpop.f32.mrb[10].mxu1  ;;  %v3675_v0 = vpop.f32.mrb[12].mxu0  ;;  %3618 = vst [vmem:[%s4898_s30 + $0x90] sm:$0xff] %v3483_v8  }
 0x183   : > { %v3721_v10 = vpop.f32.mrb[11].mxu1  ;;  %v3676_v31 = vpop.f32.mrb[13].mxu0 }
 0x184   : > { %v2481_v9 = vadd.f32 %v2480_v62, %v2450_v7  ;;  %v2374_v14 = vadd.f32 %v2373_v24, %v2311_v32  ;;  %v2451_v54 = vmul.f32 %v2311_v32, %v2311_v32  ;;  %v3448_v16 = vpack.c.bf16 %v2311_v32, %v2310_v34  ;;  %v3678_v17 = vpop.f32.mrb[14].mxu0 }
 0x185   : > { %v1672_v18 = vadd.f32 %v3719_v37, %v4889_v12  ;;  %v3722_v47 = vadd.f32 %v3721_v10, %v3720_v53  ;;  %v3677_v41 = vadd.f32 %v3676_v31, %v3675_v0  ;;  %v3679_v21 = vpop.f32.mrb[15].mxu0 }
 0x186   : > { %v2482_v20 = vadd.f32 %v2481_v9, %v2451_v54  ;;  %3611 = vst [vmem:[%s4898_s30 + $0x20] sm:$0xff] %v3448_v16   ;;  %v3680_v61 = vadd.f32 %v3679_v21, %v3678_v17 }
 0x187   : > { %v1673_v23 = vadd.f32 %v3722_v47, %v4889_v12  ;;  %v1658_v25 = vadd.f32 %v3677_v41, %v4889_v12  ;;  %v4929_v27 = vmax.f32 %v1672_v18, 0.0 }
 0x188   : > { %v1659_v40 = vadd.f32 %v3680_v61, %v4889_v12  ;;  %v3723_v42 = vpop.f32.mrb[12].mxu1 }
 0x189   : > { %v4931_v28 = vmax.f32 %v1673_v23, 0.0  ;;  %v2312_v58 = vmax.f32 %v1658_v25, 0.0  ;;  %v3724_v46 = vpop.f32.mrb[13].mxu1 }
 0x18a   : > { %v2313_v29 = vmax.f32 %v1659_v40, 0.0  ;;  %v3726_v63 = vpop.f32.mrb[14].mxu1  ;;  %v3725_v48 = vadd.f32 %v3724_v46, %v3723_v42 }
 0x18b   : > { %v3488_v33 = vpack.c.bf16 %v4931_v28, %v4929_v27  ;;  %v2375_v4 = vadd.f32 %v2374_v14, %v2312_v58  ;;  %v2452_v36 = vmul.f32 %v2312_v58, %v2312_v58  ;;  %v3727_v44 = vpop.f32.mrb[15].mxu1  ;;  %v3681_v49 = vpop.f32.mrb[16].mxu0 }
 0x18c   : > { %v2453_v5 = vmul.f32 %v2313_v29, %v2313_v29  ;;  %v3453_v19 = vpack.c.bf16 %v2313_v29, %v2312_v58  ;;  %v3728_v39 = vadd.f32 %v3727_v44, %v3726_v63  ;;  %v3682_v57 = vpop.f32.mrb[17].mxu0  ;;  %v1674_v51 = vadd.f32 %v3725_v48, %v4889_v12 }
 0x18d   : > { %3619 = vst [vmem:[%s4898_s30 + $0xa0] sm:$0xff] %v3488_v33   ;;  %v2483_v35 = vadd.f32 %v2482_v20, %v2452_v36  ;;  %v2376_v50 = vadd.f32 %v2375_v4, %v2313_v29  ;;  %v3683_v30 = vadd.f32 %v3682_v57, %v3681_v49  ;;  %v3684_v59 = vpop.f32.mrb[18].mxu0 }
 0x18e   : > { %3612 = vst [vmem:[%s4898_s30 + $0x30] sm:$0xff] %v3453_v19   ;;  %v1675_v1 = vadd.f32 %v3728_v39, %v4889_v12  ;;  %v3685_v38 = vpop.f32.mrb[19].mxu0  ;;  %v4940_v45 = vmax.f32 %v1674_v51, 0.0 }
 0x18f   : > { %v2484_v55 = vadd.f32 %v2483_v35, %v2453_v5  ;;  %v1660_v3 = vadd.f32 %v3683_v30, %v4889_v12  ;;  %v3686_v13 = vadd.f32 %v3685_v38, %v3684_v59 }
 0x190   : > { %v4942_v2 = vmax.f32 %v1675_v1, 0.0  ;;  %v3729_v43 = vpop.f32.mrb[16].mxu1 }
 0x191   : > { %v2314_v52 = vmax.f32 %v1660_v3, 0.0  ;;  %v1661_v62 = vadd.f32 %v3686_v13, %v4889_v12  ;;  %v3730_v34 = vpop.f32.mrb[17].mxu1 }
 0x192   : > { %v3493_v6 = vpack.c.bf16 %v4942_v2, %v4940_v45  ;;  %v3731_v11 = vadd.f32 %v3730_v34, %v3729_v43  ;;  %v3732_v8 = vpop.f32.mrb[18].mxu1 }
 0x193   : > { %v2377_v22 = vadd.f32 %v2376_v50, %v2314_v52  ;;  %v2454_v24 = vmul.f32 %v2314_v52, %v2314_v52  ;;  %v2315_v7 = vmax.f32 %v1661_v62, 0.0  ;;  %v3733_v32 = vpop.f32.mrb[19].mxu1  ;;  %v3687_v37 = vpop.f32.mrb[20].mxu0 }
 0x194   : > { %3620 = vst [vmem:[%s4898_s30 + $0xb0] sm:$0xff] %v3493_v6   ;;  %v1676_v53 = vadd.f32 %v3731_v11, %v4889_v12  ;;  %v3734_v0 = vadd.f32 %v3733_v32, %v3732_v8  ;;  %v3688_v10 = vpop.f32.mrb[21].mxu0 }
 0x195   : > { %v2485_v31 = vadd.f32 %v2484_v55, %v2454_v24  ;;  %v2378_v9 = vadd.f32 %v2377_v22, %v2315_v7  ;;  %v2455_v14 = vmul.f32 %v2315_v7, %v2315_v7  ;;  %v3458_v54 = vpack.c.bf16 %v2315_v7, %v2314_v52  ;;  %v3690_v16 = vpop.f32.mrb[22].mxu0 }
 0x196   : > { %v1677_v17 = vadd.f32 %v3734_v0, %v4889_v12  ;;  %v3689_v18 = vadd.f32 %v3688_v10, %v3687_v37  ;;  %v3691_v47 = vpop.f32.mrb[23].mxu0  ;;  %v4951_v20 = vmax.f32 %v1676_v53, 0.0 }
 0x197   : > { %v2486_v41 = vadd.f32 %v2485_v31, %v2455_v14  ;;  %3613 = vst [vmem:[%s4898_s30 + $0x40] sm:$0xff] %v3458_v54   ;;  %v3692_v21 = vadd.f32 %v3691_v47, %v3690_v16 }
 0x198   : > { %v4953_v61 = vmax.f32 %v1677_v17, 0.0  ;;  %v1662_v23 = vadd.f32 %v3689_v18, %v4889_v12 }
 0x199   : > { %v1663_v25 = vadd.f32 %v3692_v21, %v4889_v12 }
 0x19a   : > { %v3735_v40 = vpop.f32.mrb[20].mxu1  ;;  %v3498_v58 = vpack.c.bf16 %v4953_v61, %v4951_v20  ;;  %v2316_v42 = vmax.f32 %v1662_v23, 0.0 }
 0x19b   : > { %v3736_v29 = vpop.f32.mrb[21].mxu1  ;;  %v2317_v46 = vmax.f32 %v1663_v25, 0.0 }
 0x19c   : > { %v3737_v33 = vadd.f32 %v3736_v29, %v3735_v40  ;;  %v3738_v4 = vpop.f32.mrb[22].mxu1  ;;  %3621 = vst [vmem:[%s4898_s30 + $0xc0] sm:$0xff] %v3498_v58   ;;  %v2379_v36 = vadd.f32 %v2378_v9, %v2316_v42  ;;  %v2456_v63 = vmul.f32 %v2316_v42, %v2316_v42 }
 0x19d   : > { %v3739_v5 = vpop.f32.mrb[23].mxu1  ;;  %v2457_v19 = vmul.f32 %v2317_v46, %v2317_v46  ;;  %v3463_v48 = vpack.c.bf16 %v2317_v46, %v2316_v42  ;;  %v3693_v35 = vpop.f32.mrb[24].mxu0 }
 0x19e   : > { %v1678_v44 = vadd.f32 %v3737_v33, %v4889_v12  ;;  %v3740_v49 = vadd.f32 %v3739_v5, %v3738_v4  ;;  %v2487_v50 = vadd.f32 %v2486_v41, %v2456_v63  ;;  %v2380_v39 = vadd.f32 %v2379_v36, %v2317_v46  ;;  %v3694_v57 = vpop.f32.mrb[25].mxu0 }
 0x19f   : > { %3614 = vst [vmem:[%s4898_s30 + $0x50] sm:$0xff] %v3463_v48   ;;  %v3695_v30 = vadd.f32 %v3694_v57, %v3693_v35  ;;  %v3696_v59 = vpop.f32.mrb[26].mxu0 }
 0x1a0   : > { %v1679_v51 = vadd.f32 %v3740_v49, %v4889_v12  ;;  %v2488_v55 = vadd.f32 %v2487_v50, %v2457_v19  ;;  %v3697_v1 = vpop.f32.mrb[27].mxu0  ;;  %v4963_v38 = vmax.f32 %v1678_v44, 0.0 }
 0x1a1   : > { %v1664_v13 = vadd.f32 %v3695_v30, %v4889_v12  ;;  %v3698_v43 = vadd.f32 %v3697_v1, %v3696_v59 }
 0x1a2   : > { %v4965_v3 = vmax.f32 %v1679_v51, 0.0 }
 0x1a3   : > { %v2318_v62 = vmax.f32 %v1664_v13, 0.0  ;;  %v1665_v34 = vadd.f32 %v3698_v43, %v4889_v12  ;;  %v3741_v6 = vpop.f32.mrb[24].mxu1 }
 0x1a4   : > { %v3503_v52 = vpack.c.bf16 %v4965_v3, %v4963_v38  ;;  %v3742_v11 = vpop.f32.mrb[25].mxu1 }
 0x1a5   : > { %v2381_v8 = vadd.f32 %v2380_v39, %v2318_v62  ;;  %v2458_v22 = vmul.f32 %v2318_v62, %v2318_v62  ;;  %v2319_v24 = vmax.f32 %v1665_v34, 0.0  ;;  %v3743_v7 = vadd.f32 %v3742_v11, %v3741_v6  ;;  %v3744_v32 = vpop.f32.mrb[26].mxu1  ;;  %v3699_v37 = vpop.f32.mrb[28].mxu0 }
 0x1a6   : > { %3622 = vst [vmem:[%s4898_s30 + $0xd0] sm:$0xff] %v3503_v52   ;;  %v3745_v53 = vpop.f32.mrb[27].mxu1  ;;  %v3700_v0 = vpop.f32.mrb[29].mxu0 }
 0x1a7   : > { %v2489_v10 = vadd.f32 %v2488_v55, %v2458_v22  ;;  %v2382_v31 = vadd.f32 %v2381_v8, %v2319_v24  ;;  %v2459_v9 = vmul.f32 %v2319_v24, %v2319_v24  ;;  %v3468_v14 = vpack.c.bf16 %v2319_v24, %v2318_v62  ;;  %v3702_v54 = vpop.f32.mrb[30].mxu0 }
 0x1a8   : > { %v1680_v16 = vadd.f32 %v3743_v7, %v4889_v12  ;;  %v3746_v17 = vadd.f32 %v3745_v53, %v3744_v32  ;;  %v3701_v18 = vadd.f32 %v3700_v0, %v3699_v37  ;;  %v3703_v47 = vpop.f32.mrb[31].mxu0  ;;  %v2462_v62 = vmul.f32 %v4903_v26, %v4903_v26 }
 0x1a9   : > { %v2490_v41 = vadd.f32 %v2489_v10, %v2459_v9  ;;  %3615 = vst [vmem:[%s4898_s30 + $0x60] sm:$0xff] %v3468_v14   ;;  %v3704_v21 = vadd.f32 %v3703_v47, %v3702_v54  ;;  %v2463_v24 = vmul.f32 %v4905_v60, %v4905_v60 }
 0x1aa   : > { %v1681_v23 = vadd.f32 %v3746_v17, %v4889_v12  ;;  %v1666_v25 = vadd.f32 %v3701_v18, %v4889_v12  ;;  %v4977_v42 = vmax.f32 %v1680_v16, 0.0 }
 0x1ab   : > { %v1667_v40 = vadd.f32 %v3704_v21, %v4889_v12  ;;  %v3747_v58 = vpop.f32.mrb[28].mxu1 }
 0x1ac   : > { %v4979_v29 = vmax.f32 %v1681_v23, 0.0  ;;  %v2320_v46 = vmax.f32 %v1666_v25, 0.0  ;;  %v3748_v33 = vpop.f32.mrb[29].mxu1 }
 0x1ad   : > { %v2321_v4 = vmax.f32 %v1667_v40, 0.0  ;;  %v3749_v36 = vadd.f32 %v3748_v33, %v3747_v58  ;;  %v3750_v63 = vpop.f32.mrb[30].mxu1  ;;  %v3881_v5 = vpop.f32.mrb[32].mxu0 }
 0x1ae   : > { %v3508_v19 = vpack.c.bf16 %v4979_v29, %v4977_v42  ;;  %v2383_v48 = vadd.f32 %v2382_v31, %v2320_v46  ;;  %v2460_v44 = vmul.f32 %v2320_v46, %v2320_v46  ;;  %v3751_v49 = vpop.f32.mrb[31].mxu1  ;;  %v3882_v35 = vpop.f32.mrb[33].mxu0  ;;  %v2464_v31 = vmul.f32 %v4916_v56, %v4916_v56 }
 0x1af   : > { %v2461_v50 = vmul.f32 %v2321_v4, %v2321_v4  ;;  %v3473_v39 = vpack.c.bf16 %v2321_v4, %v2320_v46  ;;  %v1682_v57 = vadd.f32 %v3749_v36, %v4889_v12  ;;  %v3752_v51 = vadd.f32 %v3751_v49, %v3750_v63  ;;  %v3884_v30 = vpop.f32.mrb[34].mxu0 }
 0x1b0   : > { %3623 = vst [vmem:[%s4898_s30 + $0xe0] sm:$0xff] %v3508_v19   ;;  %v2491_v59 = vadd.f32 %v2490_v41, %v2460_v44  ;;  %v2384_v55 = vadd.f32 %v2383_v48, %v2321_v4  ;;  %v3883_v1 = vadd.f32 %v3882_v35, %v3881_v5  ;;  %v3885_v13 = vpop.f32.mrb[35].mxu0  ;;  %v2465_v41 = vmul.f32 %v4918_v15, %v4918_v15 }
 0x1b1   : > { %3616 = vst [vmem:[%s4898_s30 + $0x70] sm:$0xff] %v3473_v39   ;;  %v1683_v43 = vadd.f32 %v3752_v51, %v4889_v12  ;;  %v3886_v52 = vadd.f32 %v3885_v13, %v3884_v30  ;;  %v4990_v11 = vmax.f32 %v1682_v57, 0.0  ;;  %v2467_v19 = vmul.f32 %v4931_v28, %v4931_v28 }
 0x1b2   : > { %v2385_v34 = vadd.f32 %v2384_v55, %v4903_v26  ;;  %v2492_v6 = vadd.f32 %v2491_v59, %v2461_v50  ;;  %v2468_v49 = vmul.f32 %v4940_v45, %v4940_v45 }
 0x1b3   : > { %v4992_v8 = vmax.f32 %v1683_v43, 0.0  ;;  %v3769_v22 = vpop.f32.mrb[32].mxu1 }
 0x1b4   : > { %v2386_v7 = vadd.f32 %v2385_v34, %v4905_v60  ;;  %v2493_v32 = vadd.f32 %v2492_v6, %v2462_v62  ;;  %v3770_v37 = vpop.f32.mrb[33].mxu1 }
 0x1b5   : > { %v3513_v53 = vpack.c.bf16 %v4992_v8, %v4990_v11  ;;  %v3771_v0 = vadd.f32 %v3770_v37, %v3769_v22  ;;  %v3772_v10 = vpop.f32.mrb[34].mxu1  ;;  %v3887_v26 = vpop.f32.mrb[36].mxu0 }
 0x1b6   : > { %v2387_v9 = vadd.f32 %v2386_v7, %v4916_v56  ;;  %v2494_v14 = vadd.f32 %v2493_v32, %v2463_v24  ;;  %v3773_v54 = vpop.f32.mrb[35].mxu1  ;;  %v3888_v16 = vpop.f32.mrb[37].mxu0  ;;  %v2466_v56 = vmul.f32 %v4929_v27, %v4929_v27 }
 0x1b7   : > { %3624 = vst [vmem:[%s4898_s30 + $0xf0] sm:$0xff] %v3513_v53   ;;  %v2148_v17 = vadd.f32 %v3883_v1, %v3771_v0  ;;  %v3774_v18 = vadd.f32 %v3773_v54, %v3772_v10  ;;  %v3889_v60 = vadd.f32 %v3888_v16, %v3887_v26  ;;  %v3890_v47 = vpop.f32.mrb[38].mxu0  ;;  %v2470_v53 = vmul.f32 %v4951_v20, %v4951_v20 }
 0x1b8   : > { %v2388_v21 = vadd.f32 %v2387_v9, %v4918_v15  ;;  %v2495_v23 = vadd.f32 %v2494_v14, %v2464_v31  ;;  %v3891_v25 = vpop.f32.mrb[39].mxu0 }
 0x1b9   : > { %v2274_v40 = vadd.f32 %v4889_v12, %v2148_v17  ;;  %v2151_v58 = vadd.f32 %v3886_v52, %v3774_v18  ;;  %v3892_v46 = vadd.f32 %v3891_v25, %v3890_v47  ;;  %v2472_v18 = vmul.f32 %v4963_v38, %v4963_v38 }
 0x1ba   : > { %v2389_v33 = vadd.f32 %v2388_v21, %v4929_v27  ;;  %v2496_v4 = vadd.f32 %v2495_v23, %v2465_v41  ;;  %v2469_v27 = vmul.f32 %v4942_v2, %v4942_v2  ;;  %v2473_v23 = vmul.f32 %v4965_v3, %v4965_v3 }
 0x1bb   : > { %v2338_v36 = vmax.f32 %v2274_v40, 0.0  ;;  %v2275_v63 = vadd.f32 %v4889_v12, %v2151_v58  ;;  %v3775_v5 = vpop.f32.mrb[36].mxu1 }
 0x1bc   : > { %v2390_v15 = vadd.f32 %v2389_v33, %v4931_v28  ;;  %v2497_v48 = vadd.f32 %v2496_v4, %v2466_v56  ;;  %v3776_v44 = vpop.f32.mrb[37].mxu1 }
 0x1bd   : > { %v2339_v35 = vmax.f32 %v2275_v63, 0.0  ;;  %v3777_v50 = vadd.f32 %v3776_v44, %v3775_v5  ;;  %v3778_v39 = vpop.f32.mrb[38].mxu1  ;;  %v3893_v57 = vpop.f32.mrb[40].mxu0  ;;  %v2515_v59 = vmul.f32 %v2338_v36, %v2338_v36 }
 0x1be   : > { %v2391_v51 = vadd.f32 %v2390_v15, %v4940_v45  ;;  %v2498_v30 = vadd.f32 %v2497_v48, %v2467_v19  ;;  %v3779_v55 = vpop.f32.mrb[39].mxu1  ;;  %v3894_v1 = vpop.f32.mrb[41].mxu0 }
 0x1bf   : > { %v2407_v28 = vadd.f32 %v2339_v35, %v2338_v36  ;;  %v2516_v13 = vmul.f32 %v2339_v35, %v2339_v35  ;;  %v3518_v43 = vpack.c.bf16 %v2339_v35, %v2338_v36  ;;  %v2156_v52 = vadd.f32 %v3889_v60, %v3777_v50  ;;  %v3896_v62 = vpop.f32.mrb[42].mxu0 }
 0x1c0   : > { %v2499_v34 = vadd.f32 %v2498_v30, %v2468_v49  ;;  %v2392_v6 = vadd.f32 %v2391_v51, %v4942_v2  ;;  %v3780_v22 = vadd.f32 %v3779_v55, %v3778_v39  ;;  %v3895_v24 = vadd.f32 %v3894_v1, %v3893_v57  ;;  %v3897_v7 = vpop.f32.mrb[43].mxu0 }
 0x1c1   : > { %v2547_v32 = vadd.f32 %v2516_v13, %v2515_v59  ;;  %3625 = vst [vmem:[%s4898_s30 + $0x8] sm:$0xff] %v3518_v43   ;;  %v2276_v45 = vadd.f32 %v4889_v12, %v2156_v52  ;;  %v3898_v37 = vadd.f32 %v3897_v7, %v3896_v62  ;;  %v2471_v2 = vmul.f32 %v4953_v61, %v4953_v61 }
 0x1c2   : > { %v2393_v0 = vadd.f32 %v2392_v6, %v4951_v20  ;;  %v2500_v10 = vadd.f32 %v2499_v34, %v2469_v27  ;;  %v2159_v26 = vadd.f32 %v3892_v46, %v3780_v22  ;;  %v2474_v39 = vmul.f32 %v4977_v42, %v4977_v42 }
 0x1c3   : > { %v2340_v31 = vmax.f32 %v2276_v45, 0.0  ;;  %v3781_v9 = vpop.f32.mrb[40].mxu1  ;;  %v2475_v55 = vmul.f32 %v4979_v29, %v4979_v29 }
 0x1c4   : > { %v2394_v14 = vadd.f32 %v2393_v0, %v4953_v61  ;;  %v2501_v54 = vadd.f32 %v2500_v10, %v2470_v53  ;;  %v2277_v16 = vadd.f32 %v4889_v12, %v2159_v26  ;;  %v3782_v17 = vpop.f32.mrb[41].mxu1 }
 0x1c5   : > { %v2408_v60 = vadd.f32 %v2407_v28, %v2340_v31  ;;  %v2517_v47 = vmul.f32 %v2340_v31, %v2340_v31  ;;  %v3783_v41 = vadd.f32 %v3782_v17, %v3781_v9  ;;  %v3784_v20 = vpop.f32.mrb[42].mxu1  ;;  %v3899_v21 = vpop.f32.mrb[44].mxu0 }
 0x1c6   : > { %v2395_v25 = vadd.f32 %v2394_v14, %v4963_v38  ;;  %v2502_v40 = vadd.f32 %v2501_v54, %v2471_v2  ;;  %v2341_v58 = vmax.f32 %v2277_v16, 0.0  ;;  %v3785_v61 = vpop.f32.mrb[43].mxu1  ;;  %v3900_v46 = vpop.f32.mrb[45].mxu0 }
 0x1c7   : > { %v2548_v56 = vadd.f32 %v2547_v32, %v2517_v47  ;;  %v2164_v33 = vadd.f32 %v3895_v24, %v3783_v41  ;;  %v3786_v4 = vadd.f32 %v3785_v61, %v3784_v20  ;;  %v3901_v36 = vadd.f32 %v3900_v46, %v3899_v21  ;;  %v3902_v63 = vpop.f32.mrb[46].mxu0 }
 0x1c8   : > { %v2396_v5 = vadd.f32 %v2395_v25, %v4965_v3  ;;  %v2503_v19 = vadd.f32 %v2502_v40, %v2472_v18  ;;  %v2409_v15 = vadd.f32 %v2408_v60, %v2341_v58  ;;  %v2518_v48 = vmul.f32 %v2341_v58, %v2341_v58  ;;  %v3903_v44 = vpop.f32.mrb[47].mxu0 }
 0x1c9   : > { %v3523_v49 = vpack.c.bf16 %v2341_v58, %v2340_v31  ;;  %v2278_v35 = vadd.f32 %v4889_v12, %v2164_v33  ;;  %v2167_v38 = vadd.f32 %v3898_v37, %v3786_v4  ;;  %v3904_v50 = vadd.f32 %v3903_v44, %v3902_v63 }
 0x1ca   : > { %v2397_v57 = vadd.f32 %v2396_v5, %v4977_v42  ;;  %v2504_v27 = vadd.f32 %v2503_v19, %v2473_v23  ;;  %v2549_v51 = vadd.f32 %v2548_v56, %v2518_v48  ;;  %v2476_v24 = vmul.f32 %v4990_v11, %v4990_v11 }
 0x1cb   : > { %3626 = vst [vmem:[%s4898_s30 + $0x18] sm:$0xff] %v3523_v49   ;;  %v2342_v30 = vmax.f32 %v2278_v35, 0.0  ;;  %v2279_v3 = vadd.f32 %v4889_v12, %v2167_v38  ;;  %v3787_v59 = vpop.f32.mrb[44].mxu1  ;;  %v2477_v32 = vmul.f32 %v4992_v8, %v4992_v8 }
 0x1cc   : > { %v2398_v1 = vadd.f32 %v2397_v57, %v4979_v29  ;;  %v2505_v28 = vadd.f32 %v2504_v27, %v2474_v39  ;;  %v3788_v13 = vpop.f32.mrb[45].mxu1 }
 0x1cd   : > { %v2410_v43 = vadd.f32 %v2409_v15, %v2342_v30  ;;  %v2519_v52 = vmul.f32 %v2342_v30, %v2342_v30  ;;  %v2343_v62 = vmax.f32 %v2279_v3, 0.0  ;;  %v3789_v34 = vadd.f32 %v3788_v13, %v3787_v59  ;;  %v3790_v6 = vpop.f32.mrb[46].mxu1  ;;  %v3905_v42 = vpop.f32.mrb[48].mxu0 }
 0x1ce   : > { %v2399_v22 = vadd.f32 %v2398_v1, %v4990_v11  ;;  %v2506_v7 = vadd.f32 %v2505_v28, %v2475_v55  ;;  %v3791_v45 = vpop.f32.mrb[47].mxu1  ;;  %v3906_v29 = vpop.f32.mrb[49].mxu0 }
 0x1cf   : > { %v2550_v37 = vadd.f32 %v2549_v51, %v2519_v52  ;;  %v2411_v53 = vadd.f32 %v2410_v43, %v2343_v62  ;;  %v2520_v0 = vmul.f32 %v2343_v62, %v2343_v62  ;;  %v3528_v10 = vpack.c.bf16 %v2343_v62, %v2342_v30  ;;  %v3908_v26 = vpop.f32.mrb[50].mxu0 }
 0x1d0   : > { %v2507_v31 = vadd.f32 %v2506_v7, %v2476_v24  ;;  %v5050_v9 = vadd.f32 %v2399_v22, %v4992_v8  ;;  %v2172_v2 = vadd.f32 %v3901_v36, %v3789_v34  ;;  %v3792_v14 = vadd.f32 %v3791_v45, %v3790_v6  ;;  %v3909_v54 = vpop.f32.mrb[51].mxu0 }
 0x1d1   : > { %v2551_v11 = vadd.f32 %v2550_v37, %v2520_v0  ;;  %3627 = vst [vmem:[%s4898_s30 + $0x28] sm:$0xff] %v3528_v10   ;;  %v3907_v16 = vadd.f32 %v3906_v29, %v3905_v42  ;;  %v3910_v17 = vadd.f32 %v3909_v54, %v3908_v26 }
 0x1d2   : > { %v5053_v18 = vadd.f32 %v2507_v31, %v2477_v32  ;;  %v2280_v60 = vadd.f32 %v4889_v12, %v2172_v2  ;;  %v2175_v47 = vadd.f32 %v3904_v50, %v3792_v14 }
 0x1d3   : > { %v3793_v41 = vpop.f32.mrb[48].mxu1 }
 0x1d4   : > { %v2344_v20 = vmax.f32 %v2280_v60, 0.0  ;;  %v2281_v21 = vadd.f32 %v4889_v12, %v2175_v47  ;;  %v3794_v23 = vpop.f32.mrb[49].mxu1 }
 0x1d5   : > { %v3795_v25 = vadd.f32 %v3794_v23, %v3793_v41  ;;  %v3796_v8 = vpop.f32.mrb[50].mxu1  ;;  %v3911_v40 = vpop.f32.mrb[52].mxu0 }
 0x1d6   : > { %v2412_v58 = vadd.f32 %v2411_v53, %v2344_v20  ;;  %v2521_v61 = vmul.f32 %v2344_v20, %v2344_v20  ;;  %v3797_v46 = vpop.f32.mrb[51].mxu1  ;;  %v3912_v56 = vpop.f32.mrb[53].mxu0  ;;  %v2345_v33 = vmax.f32 %v2281_v21, 0.0 }
 0x1d7   : > { %v2180_v4 = vadd.f32 %v3907_v16, %v3795_v25  ;;  %v3798_v36 = vadd.f32 %v3797_v46, %v3796_v8  ;;  %v3913_v63 = vadd.f32 %v3912_v56, %v3911_v40  ;;  %v3914_v5 = vpop.f32.mrb[54].mxu0 }
 0x1d8   : > { %v2552_v19 = vadd.f32 %v2551_v11, %v2521_v61  ;;  %v3915_v15 = vpop.f32.mrb[55].mxu0  ;;  %v2413_v48 = vadd.f32 %v2412_v58, %v2345_v33  ;;  %v2522_v44 = vmul.f32 %v2345_v33, %v2345_v33  ;;  %v3533_v49 = vpack.c.bf16 %v2345_v33, %v2344_v20 }
 0x1d9   : > { %v2282_v35 = vadd.f32 %v4889_v12, %v2180_v4  ;;  %v2183_v38 = vadd.f32 %v3910_v17, %v3798_v36  ;;  %v3916_v50 = vadd.f32 %v3915_v15, %v3914_v5 }
 0x1da   : > { %v2553_v39 = vadd.f32 %v2552_v19, %v2522_v44  ;;  %3628 = vst [vmem:[%s4898_s30 + $0x38] sm:$0xff] %v3533_v49  }
 0x1db   : > { %v2346_v57 = vmax.f32 %v2282_v35, 0.0  ;;  %v3799_v27 = vpop.f32.mrb[52].mxu1  ;;  %v2283_v51 = vadd.f32 %v4889_v12, %v2183_v38 }
 0x1dc   : > { %v3800_v30 = vpop.f32.mrb[53].mxu1 }
 0x1dd   : > { %v2414_v3 = vadd.f32 %v2413_v48, %v2346_v57  ;;  %v2523_v59 = vmul.f32 %v2346_v57, %v2346_v57  ;;  %v3801_v55 = vadd.f32 %v3800_v30, %v3799_v27  ;;  %v3802_v1 = vpop.f32.mrb[54].mxu1  ;;  %v3917_v28 = vpop.f32.mrb[56].mxu0  ;;  %v2347_v13 = vmax.f32 %v2283_v51, 0.0 }
 0x1de   : > { %v3803_v43 = vpop.f32.mrb[55].mxu1  ;;  %v3918_v52 = vpop.f32.mrb[57].mxu0 }
 0x1df   : > { %v2554_v62 = vadd.f32 %v2553_v39, %v2523_v59  ;;  %v2188_v34 = vadd.f32 %v3913_v63, %v3801_v55  ;;  %v3804_v6 = vadd.f32 %v3803_v43, %v3802_v1  ;;  %v3919_v42 = vadd.f32 %v3918_v52, %v3917_v28  ;;  %v3920_v22 = vpop.f32.mrb[58].mxu0 }
 0x1e0   : > { %v2415_v24 = vadd.f32 %v2414_v3, %v2347_v13  ;;  %v2524_v7 = vmul.f32 %v2347_v13, %v2347_v13  ;;  %v3538_v32 = vpack.c.bf16 %v2347_v13, %v2346_v57  ;;  %v3921_v45 = vpop.f32.mrb[59].mxu0 }
 0x1e1   : > { %v2284_v29 = vadd.f32 %v4889_v12, %v2188_v34  ;;  %v2191_v37 = vadd.f32 %v3916_v50, %v3804_v6  ;;  %v3922_v53 = vadd.f32 %v3921_v45, %v3920_v22 }
 0x1e2   : > { %v2555_v0 = vadd.f32 %v2554_v62, %v2524_v7  ;;  %3629 = vst [vmem:[%s4898_s30 + $0x48] sm:$0xff] %v3538_v32  }
 0x1e3   : > { %v2348_v10 = vmax.f32 %v2284_v29, 0.0  ;;  %v2285_v26 = vadd.f32 %v4889_v12, %v2191_v37  ;;  %v3805_v31 = vpop.f32.mrb[56].mxu1 }
 0x1e4   : > { %v3806_v2 = vpop.f32.mrb[57].mxu1 }
 0x1e5   : > { %v2416_v14 = vadd.f32 %v2415_v24, %v2348_v10  ;;  %v2525_v54 = vmul.f32 %v2348_v10, %v2348_v10  ;;  %v2349_v11 = vmax.f32 %v2285_v26, 0.0  ;;  %v3807_v16 = vadd.f32 %v3806_v2, %v3805_v31  ;;  %v3808_v17 = vpop.f32.mrb[58].mxu1  ;;  %v3923_v60 = vpop.f32.mrb[60].mxu0 }
 0x1e6   : > { %v3809_v47 = vpop.f32.mrb[59].mxu1  ;;  %v3924_v41 = vpop.f32.mrb[61].mxu0 }
 0x1e7   : > { %v2556_v20 = vadd.f32 %v2555_v0, %v2525_v54  ;;  %v2417_v21 = vadd.f32 %v2416_v14, %v2349_v11  ;;  %v2526_v23 = vmul.f32 %v2349_v11, %v2349_v11  ;;  %v3543_v25 = vpack.c.bf16 %v2349_v11, %v2348_v10  ;;  %v3926_v8 = vpop.f32.mrb[62].mxu0 }
 0x1e8   : > { %v2196_v40 = vadd.f32 %v3919_v42, %v3807_v16  ;;  %v3810_v58 = vadd.f32 %v3809_v47, %v3808_v17  ;;  %v3925_v61 = vadd.f32 %v3924_v41, %v3923_v60  ;;  %v3927_v46 = vpop.f32.mrb[63].mxu0  ;;  %v5073_v41 = vld [vmem:[%s5128_s8] ss:$0 sm:$0xff] }
 0x1e9   : > { %v2557_v56 = vadd.f32 %v2556_v20, %v2526_v23  ;;  %3630 = vst [vmem:[%s4898_s30 + $0x58] sm:$0xff] %v3543_v25   ;;  %v3928_v33 = vadd.f32 %v3927_v46, %v3926_v8 }
 0x1ea   : > { %v2286_v4 = vadd.f32 %v4889_v12, %v2196_v40  ;;  %v2199_v36 = vadd.f32 %v3922_v53, %v3810_v58 }
 0x1eb   : > { %v3811_v63 = vpop.f32.mrb[60].mxu1 }
 0x1ec   : > { %v2350_v5 = vmax.f32 %v2286_v4, 0.0  ;;  %v2287_v19 = vadd.f32 %v4889_v12, %v2199_v36  ;;  %v3812_v15 = vpop.f32.mrb[61].mxu1 }
 0x1ed   : > { %v3813_v48 = vadd.f32 %v3812_v15, %v3811_v63  ;;  %v3814_v44 = vpop.f32.mrb[62].mxu1  ;;  %v3929_v49 = vpop.f32.mrb[64].mxu0 }
 0x1ee   : > { %v2418_v35 = vadd.f32 %v2417_v21, %v2350_v5  ;;  %v2527_v38 = vmul.f32 %v2350_v5, %v2350_v5  ;;  %v2351_v50 = vmax.f32 %v2287_v19, 0.0  ;;  %v3815_v39 = vpop.f32.mrb[63].mxu1  ;;  %v3930_v57 = vpop.f32.mrb[65].mxu0 }
 0x1ef   : > { %v2204_v27 = vadd.f32 %v3925_v61, %v3813_v48  ;;  %v3816_v51 = vadd.f32 %v3815_v39, %v3814_v44  ;;  %v3931_v30 = vadd.f32 %v3930_v57, %v3929_v49  ;;  %v3932_v3 = vpop.f32.mrb[66].mxu0 }
 0x1f0   : > { %v2558_v59 = vadd.f32 %v2557_v56, %v2527_v38  ;;  %v2419_v55 = vadd.f32 %v2418_v35, %v2351_v50  ;;  %v2528_v1 = vmul.f32 %v2351_v50, %v2351_v50  ;;  %v3548_v28 = vpack.c.bf16 %v2351_v50, %v2350_v5  ;;  %v3933_v13 = vpop.f32.mrb[67].mxu0 }
 0x1f1   : > { %v2288_v43 = vadd.f32 %v4889_v12, %v2204_v27  ;;  %v2207_v52 = vadd.f32 %v3928_v33, %v3816_v51  ;;  %v3934_v62 = vadd.f32 %v3933_v13, %v3932_v3 }
 0x1f2   : > { %v2559_v34 = vadd.f32 %v2558_v59, %v2528_v1  ;;  %3631 = vst [vmem:[%s4898_s30 + $0x68] sm:$0xff] %v3548_v28  }
 0x1f3   : > { %v2352_v6 = vmax.f32 %v2288_v43, 0.0  ;;  %v2289_v42 = vadd.f32 %v4889_v12, %v2207_v52  ;;  %v3817_v22 = vpop.f32.mrb[64].mxu1 }
 0x1f4   : > { %v3818_v24 = vpop.f32.mrb[65].mxu1 }
 0x1f5   : > { %v2420_v7 = vadd.f32 %v2419_v55, %v2352_v6  ;;  %v2529_v32 = vmul.f32 %v2352_v6, %v2352_v6  ;;  %v2353_v45 = vmax.f32 %v2289_v42, 0.0  ;;  %v3819_v29 = vadd.f32 %v3818_v24, %v3817_v22  ;;  %v3820_v37 = vpop.f32.mrb[66].mxu1  ;;  %v3935_v53 = vpop.f32.mrb[68].mxu0 }
 0x1f6   : > { %v3821_v0 = vpop.f32.mrb[67].mxu1  ;;  %v3936_v10 = vpop.f32.mrb[69].mxu0 }
 0x1f7   : > { %v2560_v26 = vadd.f32 %v2559_v34, %v2529_v32  ;;  %v2421_v31 = vadd.f32 %v2420_v7, %v2353_v45  ;;  %v2530_v2 = vmul.f32 %v2353_v45, %v2353_v45  ;;  %v3553_v14 = vpack.c.bf16 %v2353_v45, %v2352_v6  ;;  %v3938_v54 = vpop.f32.mrb[70].mxu0 }
 0x1f8   : > { %v2212_v11 = vadd.f32 %v3931_v30, %v3819_v29  ;;  %v3822_v16 = vadd.f32 %v3821_v0, %v3820_v37  ;;  %v3937_v17 = vadd.f32 %v3936_v10, %v3935_v53  ;;  %v3939_v12 = vpop.f32.mrb[71].mxu0 }
 0x1f9   : > { %v2561_v60 = vadd.f32 %v2560_v26, %v2530_v2  ;;  %3632 = vst [vmem:[%s4898_s30 + $0x78] sm:$0xff] %v3553_v14   ;;  %v3940_v47 = vadd.f32 %v3939_v12, %v3938_v54 }
 0x1fa   : > { %v2290_v20 = vadd.f32 %v5073_v41, %v2212_v11  ;;  %v2215_v21 = vadd.f32 %v3934_v62, %v3822_v16 }
 0x1fb   : > { %v3823_v23 = vpop.f32.mrb[68].mxu1 }
 0x1fc   : > { %v2354_v25 = vmax.f32 %v2290_v20, 0.0  ;;  %v2291_v8 = vadd.f32 %v5073_v41, %v2215_v21  ;;  %v3824_v40 = vpop.f32.mrb[69].mxu1 }
 0x1fd   : > { %v3825_v58 = vadd.f32 %v3824_v40, %v3823_v23  ;;  %v3826_v61 = vpop.f32.mrb[70].mxu1  ;;  %v3941_v46 = vpop.f32.mrb[72].mxu0 }
 0x1fe   : > { %v2422_v56 = vadd.f32 %v2421_v31, %v2354_v25  ;;  %v2531_v33 = vmul.f32 %v2354_v25, %v2354_v25  ;;  %v2355_v4 = vmax.f32 %v2291_v8, 0.0  ;;  %v3827_v36 = vpop.f32.mrb[71].mxu1  ;;  %v3942_v63 = vpop.f32.mrb[73].mxu0 }
 0x1ff   : > { %v2220_v5 = vadd.f32 %v3937_v17, %v3825_v58  ;;  %v3828_v19 = vadd.f32 %v3827_v36, %v3826_v61  ;;  %v3943_v15 = vadd.f32 %v3942_v63, %v3941_v46  ;;  %v3944_v48 = vpop.f32.mrb[74].mxu0 }
 0x200   : > { %v2562_v44 = vadd.f32 %v2561_v60, %v2531_v33  ;;  %v2423_v49 = vadd.f32 %v2422_v56, %v2355_v4  ;;  %v2532_v35 = vmul.f32 %v2355_v4, %v2355_v4  ;;  %v3558_v38 = vpack.c.bf16 %v2355_v4, %v2354_v25  ;;  %v3945_v50 = vpop.f32.mrb[75].mxu0 }
 0x201   : > { %v2292_v39 = vadd.f32 %v5073_v41, %v2220_v5  ;;  %v2223_v57 = vadd.f32 %v3940_v47, %v3828_v19  ;;  %v3946_v27 = vadd.f32 %v3945_v50, %v3944_v48 }
 0x202   : > { %v2563_v51 = vadd.f32 %v2562_v44, %v2532_v35  ;;  %3633 = vst [vmem:[%s4898_s30 + $0x88] sm:$0xff] %v3558_v38  }
 0x203   : > { %v2356_v30 = vmax.f32 %v2292_v39, 0.0  ;;  %v2293_v3 = vadd.f32 %v5073_v41, %v2223_v57  ;;  %v3829_v59 = vpop.f32.mrb[72].mxu1 }
 0x204   : > { %v3830_v55 = vpop.f32.mrb[73].mxu1 }
 0x205   : > { %v2424_v1 = vadd.f32 %v2423_v49, %v2356_v30  ;;  %v2533_v28 = vmul.f32 %v2356_v30, %v2356_v30  ;;  %v2357_v13 = vmax.f32 %v2293_v3, 0.0  ;;  %v3831_v43 = vadd.f32 %v3830_v55, %v3829_v59  ;;  %v3832_v52 = vpop.f32.mrb[74].mxu1  ;;  %v3947_v62 = vpop.f32.mrb[76].mxu0 }
 0x206   : > { %v3833_v34 = vpop.f32.mrb[75].mxu1  ;;  %v3948_v6 = vpop.f32.mrb[77].mxu0 }
 0x207   : > { %v2564_v42 = vadd.f32 %v2563_v51, %v2533_v28  ;;  %v2425_v22 = vadd.f32 %v2424_v1, %v2357_v13  ;;  %v2534_v24 = vmul.f32 %v2357_v13, %v2357_v13  ;;  %v3563_v7 = vpack.c.bf16 %v2357_v13, %v2356_v30  ;;  %v3950_v32 = vpop.f32.mrb[78].mxu0 }
 0x208   : > { %v2228_v45 = vadd.f32 %v3943_v15, %v3831_v43  ;;  %v3834_v29 = vadd.f32 %v3833_v34, %v3832_v52  ;;  %v3949_v37 = vadd.f32 %v3948_v6, %v3947_v62  ;;  %v3951_v53 = vpop.f32.mrb[79].mxu0 }
 0x209   : > { %v2565_v0 = vadd.f32 %v2564_v42, %v2534_v24  ;;  %3634 = vst [vmem:[%s4898_s30 + $0x98] sm:$0xff] %v3563_v7   ;;  %v3952_v10 = vadd.f32 %v3951_v53, %v3950_v32 }
 0x20a   : > { %v2294_v26 = vadd.f32 %v5073_v41, %v2228_v45  ;;  %v2231_v31 = vadd.f32 %v3946_v27, %v3834_v29 }
 0x20b   : > { %v3835_v2 = vpop.f32.mrb[76].mxu1 }
 0x20c   : > { %v2358_v14 = vmax.f32 %v2294_v26, 0.0  ;;  %v2295_v54 = vadd.f32 %v5073_v41, %v2231_v31  ;;  %v3836_v11 = vpop.f32.mrb[77].mxu1 }
 0x20d   : > { %v3837_v16 = vadd.f32 %v3836_v11, %v3835_v2  ;;  %v3838_v17 = vpop.f32.mrb[78].mxu1  ;;  %v3953_v12 = vpop.f32.mrb[80].mxu0 }
 0x20e   : > { %v2426_v60 = vadd.f32 %v2425_v22, %v2358_v14  ;;  %v2535_v47 = vmul.f32 %v2358_v14, %v2358_v14  ;;  %v2359_v20 = vmax.f32 %v2295_v54, 0.0  ;;  %v3839_v21 = vpop.f32.mrb[79].mxu1  ;;  %v3954_v23 = vpop.f32.mrb[81].mxu0 }
 0x20f   : > { %v2236_v25 = vadd.f32 %v3949_v37, %v3837_v16  ;;  %v3840_v8 = vadd.f32 %v3839_v21, %v3838_v17  ;;  %v3955_v40 = vadd.f32 %v3954_v23, %v3953_v12  ;;  %v3956_v58 = vpop.f32.mrb[82].mxu0 }
 0x210   : > { %v2566_v61 = vadd.f32 %v2565_v0, %v2535_v47  ;;  %v2427_v46 = vadd.f32 %v2426_v60, %v2359_v20  ;;  %v2536_v56 = vmul.f32 %v2359_v20, %v2359_v20  ;;  %v3568_v33 = vpack.c.bf16 %v2359_v20, %v2358_v14  ;;  %v3957_v4 = vpop.f32.mrb[83].mxu0 }
 0x211   : > { %v2296_v36 = vadd.f32 %v5073_v41, %v2236_v25  ;;  %v2239_v63 = vadd.f32 %v3952_v10, %v3840_v8  ;;  %v3958_v5 = vadd.f32 %v3957_v4, %v3956_v58 }
 0x212   : > { %v2567_v19 = vadd.f32 %v2566_v61, %v2536_v56  ;;  %3635 = vst [vmem:[%s4898_s30 + $0xa8] sm:$0xff] %v3568_v33  }
 0x213   : > { %v2360_v15 = vmax.f32 %v2296_v36, 0.0  ;;  %v2297_v48 = vadd.f32 %v5073_v41, %v2239_v63  ;;  %v3841_v44 = vpop.f32.mrb[80].mxu1 }
 0x214   : > { %v3842_v49 = vpop.f32.mrb[81].mxu1 }
 0x215   : > { %v2428_v35 = vadd.f32 %v2427_v46, %v2360_v15  ;;  %v2537_v38 = vmul.f32 %v2360_v15, %v2360_v15  ;;  %v2361_v50 = vmax.f32 %v2297_v48, 0.0  ;;  %v3843_v39 = vadd.f32 %v3842_v49, %v3841_v44  ;;  %v3844_v57 = vpop.f32.mrb[82].mxu1  ;;  %v3959_v27 = vpop.f32.mrb[84].mxu0 }
 0x216   : > { %v3845_v51 = vpop.f32.mrb[83].mxu1  ;;  %v3960_v30 = vpop.f32.mrb[85].mxu0 }
 0x217   : > { %v2568_v3 = vadd.f32 %v2567_v19, %v2537_v38  ;;  %v2429_v59 = vadd.f32 %v2428_v35, %v2361_v50  ;;  %v2538_v55 = vmul.f32 %v2361_v50, %v2361_v50  ;;  %v3573_v1 = vpack.c.bf16 %v2361_v50, %v2360_v15  ;;  %v3962_v28 = vpop.f32.mrb[86].mxu0 }
 0x218   : > { %v2244_v13 = vadd.f32 %v3955_v40, %v3843_v39  ;;  %v3846_v43 = vadd.f32 %v3845_v51, %v3844_v57  ;;  %v3961_v52 = vadd.f32 %v3960_v30, %v3959_v27  ;;  %v3963_v62 = vpop.f32.mrb[87].mxu0 }
 0x219   : > { %v2569_v34 = vadd.f32 %v2568_v3, %v2538_v55  ;;  %3636 = vst [vmem:[%s4898_s30 + $0xb8] sm:$0xff] %v3573_v1   ;;  %v3964_v6 = vadd.f32 %v3963_v62, %v3962_v28  ;;  %v2401_v62 = vrot.slane %v5050_v9, 4 }
 0x21a   : > { %v2298_v42 = vadd.f32 %v5073_v41, %v2244_v13  ;;  %v2247_v22 = vadd.f32 %v3958_v5, %v3846_v43 }
 0x21b   : > { %v3847_v24 = vpop.f32.mrb[84].mxu1 }
 0x21c   : > { %v2362_v7 = vmax.f32 %v2298_v42, 0.0  ;;  %v2299_v32 = vadd.f32 %v5073_v41, %v2247_v22  ;;  %v3848_v45 = vpop.f32.mrb[85].mxu1 }
 0x21d   : > { %v3849_v29 = vadd.f32 %v3848_v45, %v3847_v24  ;;  %v3850_v37 = vpop.f32.mrb[86].mxu1  ;;  %v3965_v53 = vpop.f32.mrb[88].mxu0 }
 0x21e   : > { %v2430_v0 = vadd.f32 %v2429_v59, %v2362_v7  ;;  %v2539_v10 = vmul.f32 %v2362_v7, %v2362_v7  ;;  %v2363_v26 = vmax.f32 %v2299_v32, 0.0  ;;  %v3851_v31 = vpop.f32.mrb[87].mxu1  ;;  %v3966_v2 = vpop.f32.mrb[89].mxu0 }
 0x21f   : > { %v2252_v14 = vadd.f32 %v3961_v52, %v3849_v29  ;;  %v3852_v54 = vadd.f32 %v3851_v31, %v3850_v37  ;;  %v3967_v11 = vadd.f32 %v3966_v2, %v3965_v53  ;;  %v3968_v16 = vpop.f32.mrb[90].mxu0  ;;  %v2509_v53 = vrot.slane %v5053_v18, 4 }
 0x220   : > { %v2570_v17 = vadd.f32 %v2569_v34, %v2539_v10  ;;  %v2431_v12 = vadd.f32 %v2430_v0, %v2363_v26  ;;  %v2540_v60 = vmul.f32 %v2363_v26, %v2363_v26  ;;  %v3578_v47 = vpack.c.bf16 %v2363_v26, %v2362_v7  ;;  %v3969_v20 = vpop.f32.mrb[91].mxu0 }
 0x221   : > { %v2300_v21 = vadd.f32 %v5073_v41, %v2252_v14  ;;  %v2255_v23 = vadd.f32 %v3964_v6, %v3852_v54  ;;  %v3970_v25 = vadd.f32 %v3969_v20, %v3968_v16  ;;  %v2402_v26 = vadd.f32 %v2401_v62, %v5050_v9 }
 0x222   : > { %v2571_v8 = vadd.f32 %v2570_v17, %v2540_v60  ;;  %3637 = vst [vmem:[%s4898_s30 + $0xc8] sm:$0xff] %v3578_v47   ;;  %v2510_v54 = vadd.f32 %v2509_v53, %v5053_v18 }
 0x223   : > { %v2364_v40 = vmax.f32 %v2300_v21, 0.0  ;;  %v2301_v58 = vadd.f32 %v5073_v41, %v2255_v23  ;;  %v3853_v61 = vpop.f32.mrb[88].mxu1 }
 0x224   : > { %v3854_v46 = vpop.f32.mrb[89].mxu1  ;;  %v2511_v23 = vrot.slane %v2510_v54, 2 }
 0x225   : > { %v2432_v56 = vadd.f32 %v2431_v12, %v2364_v40  ;;  %v2541_v33 = vmul.f32 %v2364_v40, %v2364_v40  ;;  %v2365_v4 = vmax.f32 %v2301_v58, 0.0  ;;  %v3855_v36 = vadd.f32 %v3854_v46, %v3853_v61  ;;  %v3856_v63 = vpop.f32.mrb[90].mxu1  ;;  %v3971_v5 = vpop.f32.mrb[92].mxu0 }
 0x226   : > { %v3857_v19 = vpop.f32.mrb[91].mxu1  ;;  %v3972_v15 = vpop.f32.mrb[93].mxu0  ;;  %v2403_v12 = vrot.slane %v2402_v26, 2  ;;  %v2512_v61 = vadd.f32 %v2511_v23, %v2510_v54 }
 0x227   : > { %v2572_v48 = vadd.f32 %v2571_v8, %v2541_v33  ;;  %v2433_v44 = vadd.f32 %v2432_v56, %v2365_v4  ;;  %v2542_v49 = vmul.f32 %v2365_v4, %v2365_v4  ;;  %v3583_v35 = vpack.c.bf16 %v2365_v4, %v2364_v40  ;;  %v3974_v38 = vpop.f32.mrb[94].mxu0 }
 0x228   : > { %v2260_v50 = vadd.f32 %v3967_v11, %v3855_v36  ;;  %v3858_v39 = vadd.f32 %v3857_v19, %v3856_v63  ;;  %v3973_v57 = vadd.f32 %v3972_v15, %v3971_v5  ;;  %v3975_v27 = vpop.f32.mrb[95].mxu0  ;;  %v2404_v9 = vadd.f32 %v2403_v12, %v2402_v26 }
 0x229   : > { %v2573_v51 = vadd.f32 %v2572_v48, %v2542_v49  ;;  %3638 = vst [vmem:[%s4898_s30 + $0xd8] sm:$0xff] %v3583_v35   ;;  %v3976_v30 = vadd.f32 %v3975_v27, %v3974_v38  ;;  %v2513_v4 = vrot.slane %v2512_v61, 1 }
 0x22a   : > { %v2302_v3 = vadd.f32 %v5073_v41, %v2260_v50  ;;  %v2263_v59 = vadd.f32 %v3970_v25, %v3858_v39  ;;  %v2405_v46 = vrot.slane %v2404_v9, 1 }
 0x22b   : > { %v3859_v55 = vpop.f32.mrb[92].mxu1  ;;  %v2514_v48 = vadd.f32 %v2513_v4, %v2512_v61 }
 0x22c   : > { %v2366_v1 = vmax.f32 %v2302_v3, 0.0  ;;  %v2303_v28 = vadd.f32 %v5073_v41, %v2263_v59  ;;  %v3860_v13 = vpop.f32.mrb[93].mxu1  ;;  %v2406_v5 = vadd.f32 %v2405_v46, %v2404_v9 }
 0x22d   : > { %v3861_v43 = vadd.f32 %v3860_v13, %v3859_v55  ;;  %v3862_v52 = vpop.f32.mrb[94].mxu1 }
 0x22e   : > { %v2434_v34 = vadd.f32 %v2433_v44, %v2366_v1  ;;  %v2543_v6 = vmul.f32 %v2366_v1, %v2366_v1  ;;  %v2367_v42 = vmax.f32 %v2303_v28, 0.0  ;;  %v3863_v22 = vpop.f32.mrb[95].mxu1 }
 0x22f   : > { %v2268_v24 = vadd.f32 %v3973_v57, %v3861_v43  ;;  %v3864_v7 = vadd.f32 %v3863_v22, %v3862_v52 }
 0x230   : > { %v2574_v32 = vadd.f32 %v2573_v51, %v2543_v6  ;;  %v2435_v45 = vadd.f32 %v2434_v34, %v2367_v42  ;;  %v2544_v29 = vmul.f32 %v2367_v42, %v2367_v42  ;;  %v3588_v37 = vpack.c.bf16 %v2367_v42, %v2366_v1 }
 0x231   : > { %v2304_v0 = vadd.f32 %v5073_v41, %v2268_v24  ;;  %v2271_v10 = vadd.f32 %v3976_v30, %v3864_v7 }
 0x232   : > { %v2575_v31 = vadd.f32 %v2574_v32, %v2544_v29  ;;  %3639 = vst [vmem:[%s4898_s30 + $0xe8] sm:$0xff] %v3588_v37  }
 0x233   : > { %v2368_v2 = vmax.f32 %v2304_v0, 0.0  ;;  %v2305_v14 = vadd.f32 %v5073_v41, %v2271_v10 }
 0x235   : > { %v2436_v11 = vadd.f32 %v2435_v45, %v2368_v2  ;;  %v2545_v16 = vmul.f32 %v2368_v2, %v2368_v2  ;;  %v2369_v17 = vmax.f32 %v2305_v14, 0.0 }
 0x237   : > { %v2576_v60 = vadd.f32 %v2575_v31, %v2545_v16  ;;  %v2437_v47 = vadd.f32 %v2436_v11, %v2369_v17  ;;  %v2546_v20 = vmul.f32 %v2369_v17, %v2369_v17  ;;  %v3593_v21 = vpack.c.bf16 %v2369_v17, %v2368_v2 }
 0x239   : > { %v2438_v25 = vrot.slane %v2437_v47, 4  ;;  %v2577_v8 = vadd.f32 %v2576_v60, %v2546_v20  ;;  %3640 = vst [vmem:[%s4898_s30 + $0xf8] sm:$0xff] %v3593_v21  }
 0x23b   : > { %v2439_v40 = vadd.f32 %v2438_v25, %v2437_v47  ;;  %v2578_v58 = vrot.slane %v2577_v8, 4 }
 0x23d   : > { %v2440_v41 = vrot.slane %v2439_v40, 2  ;;  %v2579_v18 = vadd.f32 %v2578_v58, %v2577_v8 }
 0x23f   : > { %v2441_v56 = vadd.f32 %v2440_v41, %v2439_v40  ;;  %v2580_v33 = vrot.slane %v2579_v18, 2 }
 0x241   : > { %v2442_v36 = vrot.slane %v2441_v56, 1  ;;  %v2581_v63 = vadd.f32 %v2580_v33, %v2579_v18 }
 0x243   : > { %v2443_v19 = vadd.f32 %v2442_v36, %v2441_v56  ;;  %v2582_v15 = vrot.slane %v2581_v63, 1 }
 0x245   : > { %v2444_v44 = vadd.f32 %v2443_v19, %v2406_v5  ;;  %v2583_v49 = vadd.f32 %v2582_v15, %v2581_v63 }
 0x247   : > { %2445 = vst [vmem:[%s620_s27] sm:$0x1] %v2444_v44  ;;  %v2584_v35 = vadd.f32 %v2583_v49, %v2514_v48 }
 0x249   : > { %2585 = vst [vmem:[%s626_s29] sm:$0x1] %v2584_v35 }
 0x24a PF: > { %s22_s17 = sadd.s32 1, %s4095_s17   ;;  %s5134_s16 = smov %s4091_s5 }
 0x24b   : > { %p19_p5 = scmp.ge.s32.totalorder %s22_s17, 4   ;;  %s5135_s5 = smov %s5137_s18 }
 0x24d   :  { %21 = sbr.rel (!%p19_p5) target bundleno = 2 (0x2), region = 120 }

</bundles_post_ra>
